<compile_context>
chip_gen: v5e
topology: v5e:2x2
jax: 0.10.0
libtpu: 0.0.40
codegen_flags: <defaults>
</compile_context>

<pallas_src>
import functools
import math

import jax
import jax.numpy as jnp
from jax import lax
from jax.experimental import pallas as pl
from jax.experimental.pallas import tpu as pltpu

NEG_INF = -1e9  # additive mask bias (equivalent to masked_fill(-1e18) for softmax)


# ----------------------------- in-kernel helpers -----------------------------

def _layer_norm(v, g, b, eps=1e-6):
    # v: [B, T, D] f32;  g, b: [1, D] f32.  (c2nl uses LayerNorm eps=1e-6.)
    mu = jnp.mean(v, axis=-1, keepdims=True)
    c = v - mu
    var = jnp.mean(c * c, axis=-1, keepdims=True)
    return c * lax.rsqrt(var + eps) * g + b


def _linear(v, w, b):
    # v: [B, L, Din] (f32 or bf16), w: [Din, Dout] bf16, b: [1, Dout] f32
    return jnp.einsum('bld,de->ble', v.astype(jnp.bfloat16), w,
                      preferred_element_type=jnp.float32) + b


def _mha(q_in, kv_in, wq, bq, wk, bk, wv, bv, wo, bo, bias, heads, d_k, d_v):
    """Multi-head attention, heads batched into the matmul batch dimension.

    q_in: [B, Tq, D] f32; kv_in: [B, Tk, D] f32/bf16;
    bias: [B, Tq, Tk] or [B, 1, Tk] additive mask bias (f32).
    Returns (out [B, Tq, D] f32, probs [H*B, Tq, Tk] f32, head-major).
    """
    B, Tq, _ = q_in.shape
    Tk = kv_in.shape[1]
    scale = 1.0 / math.sqrt(d_k)

    q = _linear(q_in, wq, bq) * scale        # [B, Tq, H*dk]  (f32)
    k = _linear(kv_in, wk, bk)               # [B, Tk, H*dk]
    v = _linear(kv_in, wv, bv)               # [B, Tk, H*dv]

    # regroup head-major along the leading (batch) axis -> [H*B, T, d]
    qf = jnp.concatenate([q[:, :, h * d_k:(h + 1) * d_k] for h in range(heads)], axis=0)
    kf = jnp.concatenate([k[:, :, h * d_k:(h + 1) * d_k] for h in range(heads)], axis=0)
    vf = jnp.concatenate([v[:, :, h * d_v:(h + 1) * d_v] for h in range(heads)], axis=0)

    # single batched score matmul for all heads (bf16 in, f32 acc)
    sc = jnp.einsum('bqd,bkd->bqk', qf.astype(jnp.bfloat16), kf.astype(jnp.bfloat16),
                    preferred_element_type=jnp.float32)        # [H*B, Tq, Tk]
    sc = sc + jnp.concatenate([bias] * heads, axis=0)          # additive mask bias

    # numerically-stable softmax in f32 (reciprocal on the EUP)
    sc = sc - jnp.max(sc, axis=-1, keepdims=True)
    p = jnp.exp(sc)
    p = p * pl.reciprocal(jnp.sum(p, axis=-1, keepdims=True), approx=True)

    # single batched context matmul for all heads
    ctx = jnp.einsum('bqk,bkd->bqd', p.astype(jnp.bfloat16), vf.astype(jnp.bfloat16),
                     preferred_element_type=jnp.float32)       # [H*B, Tq, dv]

    # concat heads back on the lane axis and do ONE wide output projection
    ctx_cat = jnp.concatenate([ctx[h * B:(h + 1) * B] for h in range(heads)],
                              axis=-1)                         # [B, Tq, H*dv]
    out = jnp.einsum('bqd,de->bqe', ctx_cat.astype(jnp.bfloat16), wo,
                     preferred_element_type=jnp.float32) + bo  # [B, Tq, D]
    return out, p


# ------------------------------- fused kernel --------------------------------

def _decoder_kernel(emb_ref, mem_ref, tgt_bias_ref, src_bias_ref, *refs,
                    heads, d_k, d_v):
    (s_wq, s_bq, s_wk, s_bk, s_wv, s_bv, s_wo, s_bo,
     ln1_g, ln1_b,
     c_wq, c_bq, c_wk, c_bk, c_wv, c_bv, c_wo, c_bo,
     ln2_g, ln2_b,
     ln3_g, ln3_b,
     w1, b1, w2, b2) = refs[:26]
    rep_ref, attn_ref, x_sc = refs[26], refs[27], refs[28]

    l = pl.program_id(0)
    num_layers = pl.num_programs(0)

    # layer 0: load the target embeddings into the resident activation scratch
    @pl.when(l == 0)
    def _init():
        x_sc[...] = emb_ref[...]

    x = x_sc[...]                                  # [B, T, D] f32
    mem = mem_ref[...]                             # [B, S, D] bf16
    B, T, _ = x.shape

    # additive attention-mask biases, built in-kernel (no [B,T,T] HBM traffic)
    q_idx = lax.broadcasted_iota(jnp.int32, (T, T), 0)
    k_idx = lax.broadcasted_iota(jnp.int32, (T, T), 1)
    causal = jnp.where(k_idx > q_idx, NEG_INF, 0.0).astype(jnp.float32)   # [T, T]
    dec_bias = tgt_bias_ref[...] + causal[None]     # [B,1,T] + [1,T,T] -> [B,T,T]
    src_bias = src_bias_ref[...]                    # [B, 1, S]

    # masked multi-head self-attention + residual + LayerNorm
    self_out, _ = _mha(x, x, s_wq[...], s_bq[...], s_wk[...], s_bk[...],
                       s_wv[...], s_bv[...], s_wo[...], s_bo[...],
                       dec_bias, heads, d_k, d_v)
    query_norm = _layer_norm(self_out + x, ln1_g[...], ln1_b[...])

    # cross-attention over encoder memory + residual + LayerNorm
    ctx_out, probs = _mha(query_norm, mem, c_wq[...], c_bq[...], c_wk[...], c_bk[...],
                          c_wv[...], c_bv[...], c_wo[...], c_bo[...],
                          src_bias, heads, d_k, d_v)
    mid_norm = _layer_norm(ctx_out + query_norm, ln2_g[...], ln2_b[...])

    # position-wise feed-forward (LN inside, residual outside)
    ff_in = _layer_norm(mid_norm, ln3_g[...], ln3_b[...])
    inter = jnp.maximum(_linear(ff_in, w1[...], b1[...]), 0.0)
    out = _linear(inter, w2[...], b2[...]) + mid_norm

    x_sc[...] = out                                # carry activation to next layer
    rep_ref[...] = out.astype(rep_ref.dtype)       # per-layer representation

    # only the last layer's cross-attention probs are consumed downstream
    @pl.when(l == num_layers - 1)
    def _store_attn():
        attn_ref[...] = probs.astype(attn_ref.dtype)


# ------------------------------ host-side glue --------------------------------

# indices (within a per-layer param tuple) of matmul weights -> stored as bf16
_WEIGHT_IDX = frozenset({0, 2, 4, 6, 10, 12, 14, 16, 22, 24})


def decoder_forward(memory_bank, memory_len, tgt_pad_mask, tgt_emb, params,
                    heads, d_k, d_v):
    """Equivalent of Decoder.forward (init_state + TransformerDecoder.forward)."""
    B, S, D = memory_bank.shape
    T = tgt_emb.shape[1]
    L = len(params)
    n_params = len(params[0])

    # stack per-layer parameters -> [L, ...]; matmul weights in bf16, rest f32
    stacked = []
    for i in range(n_params):
        arr = jnp.stack([p[i] for p in params], axis=0)
        arr = arr.astype(jnp.bfloat16 if i in _WEIGHT_IDX else jnp.float32)
        stacked.append(arr)

    # init_state: additive src-pad bias from memory_len; tgt-pad bias from mask
    src_bias = jnp.where(jnp.arange(S)[None, :] >= memory_len[:, None],
                         NEG_INF, 0.0).astype(jnp.float32)[:, None, :]     # [B,1,S]
    tgt_bias = jnp.where(tgt_pad_mask, NEG_INF,
                         0.0).astype(jnp.float32)[:, None, :]              # [B,1,T]

    emb = tgt_emb.astype(jnp.float32)
    mem = memory_bank.astype(jnp.bfloat16)

    in_specs = [
        pl.BlockSpec((B, T, D), lambda l: (0, 0, 0)),   # tgt embeddings (loaded once)
        pl.BlockSpec((B, S, D), lambda l: (0, 0, 0)),   # encoder memory (resident)
        pl.BlockSpec((B, 1, T), lambda l: (0, 0, 0)),   # tgt pad bias
        pl.BlockSpec((B, 1, S), lambda l: (0, 0, 0)),   # src pad bias
    ]
    # stacked layer params: stream layer l's slice, double-buffered by the pipeline
    for arr in stacked:
        in_specs.append(pl.BlockSpec((None,) + arr.shape[1:], lambda l: (l, 0, 0)))

    out_shape = (
        jax.ShapeDtypeStruct((L, B, T, D), jnp.float32),      # per-layer outputs
        jax.ShapeDtypeStruct((heads * B, T, S), jnp.float32), # last-layer attn probs
    )
    out_specs = (
        pl.BlockSpec((None, B, T, D), lambda l: (l, 0, 0, 0)),
        pl.BlockSpec((heads * B, T, S), lambda l: (0, 0, 0)),  # resident, 1 writeback
    )

    kernel = functools.partial(_decoder_kernel, heads=heads, d_k=d_k, d_v=d_v)
    reps, attn = pl.pallas_call(
        kernel,
        grid=(L,),
        out_shape=out_shape,
        in_specs=in_specs,
        out_specs=out_specs,
        scratch_shapes=[pltpu.VMEM((B, T, D), jnp.float32)],   # resident activation
        compiler_params=pltpu.CompilerParams(
            dimension_semantics=("arbitrary",),                # layers are sequential
            vmem_limit_bytes=48 * 1024 * 1024),
    )(emb, mem, tgt_bias, src_bias, *stacked)

    representations = [reps[l] for l in range(L)]
    attn = attn.reshape(heads, B, T, S)                        # head-major slab
    attns = {"std": [attn[h] for h in range(heads)], "coverage": None}
    # TODO(synk): incremental decoding cache (step/layer_cache) and coverage
    # attention are not exercised by this forward (step=None, coverage_attn=False)
    # and are not implemented.
    return representations, attns


def init_layer_params(key, d_model, heads, d_k, d_v, d_ff):
    ks = iter(jax.random.split(key, 20))

    def lin(din, dout, scale=0.05):
        w = scale * jax.random.normal(next(ks), (din, dout), jnp.float32)
        b = 0.01 * jax.random.normal(next(ks), (1, dout), jnp.float32)
        return w, b

    p = []
    # self-attention: q, k, v, output
    for din, dout in [(d_model, heads * d_k), (d_model, heads * d_k),
                      (d_model, heads * d_v), (heads * d_v, d_model)]:
        w, b = lin(din, dout)
        p += [w, b]
    p += [jnp.ones((1, d_model), jnp.float32),
          jnp.zeros((1, d_model), jnp.float32)]                    # layer_norm 1
    # cross-attention: q, k, v, output
    for din, dout in [(d_model, heads * d_k), (d_model, heads * d_k),
                      (d_model, heads * d_v), (heads * d_v, d_model)]:
        w, b = lin(din, dout)
        p += [w, b]
    p += [jnp.ones((1, d_model), jnp.float32),
          jnp.zeros((1, d_model), jnp.float32)]                    # layer_norm 2
    p += [jnp.ones((1, d_model), jnp.float32),
          jnp.zeros((1, d_model), jnp.float32)]                    # FFN layer_norm
    w1, b1 = lin(d_model, d_ff)
    w2, b2 = lin(d_ff, d_model)
    p += [w1, b1, w2, b2]
    return tuple(p)


if __name__ == "__main__":
    # small config consistent with the module's constructor args
    B, S, T = 2, 16, 8
    d_model, heads, d_k, d_v, d_ff, nlayers = 32, 4, 8, 8, 64, 2

    key = jax.random.PRNGKey(0)
    k_mem, k_emb, k_par = jax.random.split(key, 3)

    memory_bank = jax.random.normal(k_mem, (B, S, d_model), jnp.float32)
    tgt_emb = jax.random.normal(k_emb, (B, T, d_model), jnp.float32)
    memory_len = jnp.array([16, 11], jnp.int32)
    tgt_lens = jnp.array([8, 5], jnp.int32)
    tgt_pad_mask = jnp.arange(T)[None, :] >= tgt_lens[:, None]     # True = PAD

    params = [init_layer_params(k, d_model, heads, d_k, d_v, d_ff)
              for k in jax.random.split(k_par, nlayers)]

    decoder_outputs, attns = decoder_forward(
        memory_bank, memory_len, tgt_pad_mask, tgt_emb, params,
        heads, d_k, d_v)

    jax.block_until_ready(decoder_outputs)
    jax.block_until_ready(attns["std"])
    assert decoder_outputs[-1].shape == (B, T, d_model)
    assert attns["std"][0].shape == (B, T, S)
    print("KERNEL_OK")
</pallas_src>

<mosaic_0001>
module attributes {stable_mosaic.version = 11 : i64} {
  func.func @_decoder_kernel(%arg0: i32, %arg1: memref<2x8x32xf32, #tpu.memory_space<vmem>>, %arg2: memref<2x16x32xbf16, #tpu.memory_space<vmem>>, %arg3: memref<2x1x8xf32, #tpu.memory_space<vmem>>, %arg4: memref<2x1x16xf32, #tpu.memory_space<vmem>>, %arg5: memref<1x32x32xbf16, #tpu.memory_space<vmem>>, %arg6: memref<1x1x32xf32, #tpu.memory_space<vmem>>, %arg7: memref<1x32x32xbf16, #tpu.memory_space<vmem>>, %arg8: memref<1x1x32xf32, #tpu.memory_space<vmem>>, %arg9: memref<1x32x32xbf16, #tpu.memory_space<vmem>>, %arg10: memref<1x1x32xf32, #tpu.memory_space<vmem>>, %arg11: memref<1x32x32xbf16, #tpu.memory_space<vmem>>, %arg12: memref<1x1x32xf32, #tpu.memory_space<vmem>>, %arg13: memref<1x1x32xf32, #tpu.memory_space<vmem>>, %arg14: memref<1x1x32xf32, #tpu.memory_space<vmem>>, %arg15: memref<1x32x32xbf16, #tpu.memory_space<vmem>>, %arg16: memref<1x1x32xf32, #tpu.memory_space<vmem>>, %arg17: memref<1x32x32xbf16, #tpu.memory_space<vmem>>, %arg18: memref<1x1x32xf32, #tpu.memory_space<vmem>>, %arg19: memref<1x32x32xbf16, #tpu.memory_space<vmem>>, %arg20: memref<1x1x32xf32, #tpu.memory_space<vmem>>, %arg21: memref<1x32x32xbf16, #tpu.memory_space<vmem>>, %arg22: memref<1x1x32xf32, #tpu.memory_space<vmem>>, %arg23: memref<1x1x32xf32, #tpu.memory_space<vmem>>, %arg24: memref<1x1x32xf32, #tpu.memory_space<vmem>>, %arg25: memref<1x1x32xf32, #tpu.memory_space<vmem>>, %arg26: memref<1x1x32xf32, #tpu.memory_space<vmem>>, %arg27: memref<1x32x64xbf16, #tpu.memory_space<vmem>>, %arg28: memref<1x1x64xf32, #tpu.memory_space<vmem>>, %arg29: memref<1x64x32xbf16, #tpu.memory_space<vmem>>, %arg30: memref<1x1x32xf32, #tpu.memory_space<vmem>>, %arg31: memref<1x2x8x32xf32, #tpu.memory_space<vmem>>, %arg32: memref<8x8x16xf32, #tpu.memory_space<vmem>>, %arg33: memref<2x8x32xf32, #tpu.memory_space<vmem>>) attributes {dimension_semantics = [#tpu.dimension_semantics<arbitrary>], iteration_bounds = array<i64: 2>, scalar_prefetch = 0 : i64, scratch_operands = 1 : i64, tpu.core_type = #tpu.core_type<tc>, window_params = [{pipeline_mode = #tpu.pipeline_mode<synchronous>, transform_indices = @transform_0, window_bounds = array<i64: 2, 8, 32>}, {pipeline_mode = #tpu.pipeline_mode<synchronous>, transform_indices = @transform_1, window_bounds = array<i64: 2, 16, 32>}, {pipeline_mode = #tpu.pipeline_mode<synchronous>, transform_indices = @transform_2, window_bounds = array<i64: 2, 1, 8>}, {pipeline_mode = #tpu.pipeline_mode<synchronous>, transform_indices = @transform_3, window_bounds = array<i64: 2, 1, 16>}, {transform_indices = @transform_4, window_bounds = array<i64: 1, 32, 32>}, {transform_indices = @transform_5, window_bounds = array<i64: 1, 1, 32>}, {transform_indices = @transform_6, window_bounds = array<i64: 1, 32, 32>}, {transform_indices = @transform_7, window_bounds = array<i64: 1, 1, 32>}, {transform_indices = @transform_8, window_bounds = array<i64: 1, 32, 32>}, {transform_indices = @transform_9, window_bounds = array<i64: 1, 1, 32>}, {transform_indices = @transform_10, window_bounds = array<i64: 1, 32, 32>}, {transform_indices = @transform_11, window_bounds = array<i64: 1, 1, 32>}, {transform_indices = @transform_12, window_bounds = array<i64: 1, 1, 32>}, {transform_indices = @transform_13, window_bounds = array<i64: 1, 1, 32>}, {transform_indices = @transform_14, window_bounds = array<i64: 1, 32, 32>}, {transform_indices = @transform_15, window_bounds = array<i64: 1, 1, 32>}, {transform_indices = @transform_16, window_bounds = array<i64: 1, 32, 32>}, {transform_indices = @transform_17, window_bounds = array<i64: 1, 1, 32>}, {transform_indices = @transform_18, window_bounds = array<i64: 1, 32, 32>}, {transform_indices = @transform_19, window_bounds = array<i64: 1, 1, 32>}, {transform_indices = @transform_20, window_bounds = array<i64: 1, 32, 32>}, {transform_indices = @transform_21, window_bounds = array<i64: 1, 1, 32>}, {transform_indices = @transform_22, window_bounds = array<i64: 1, 1, 32>}, {transform_indices = @transform_23, window_bounds = array<i64: 1, 1, 32>}, {transform_indices = @transform_24, window_bounds = array<i64: 1, 1, 32>}, {transform_indices = @transform_25, window_bounds = array<i64: 1, 1, 32>}, {transform_indices = @transform_26, window_bounds = array<i64: 1, 32, 64>}, {transform_indices = @transform_27, window_bounds = array<i64: 1, 1, 64>}, {transform_indices = @transform_28, window_bounds = array<i64: 1, 64, 32>}, {transform_indices = @transform_29, window_bounds = array<i64: 1, 1, 32>}, {transform_indices = @transform_30, window_bounds = array<i64: 1, 2, 8, 32>}, {pipeline_mode = #tpu.pipeline_mode<synchronous>, transform_indices = @transform_31, window_bounds = array<i64: 8, 8, 16>}]} {
    %c0_i32 = arith.constant 0 : i32
    %0 = arith.cmpi eq, %arg0, %c0_i32 : i32
    %1 = arith.extui %0 : i1 to i32
    %c0_i32_0 = arith.constant 0 : i32
    %2 = arith.cmpi ne, %1, %c0_i32_0 : i32
    scf.if %2 {
      %c0_135 = arith.constant 0 : index
      %c0_136 = arith.constant 0 : index
      %c0_137 = arith.constant 0 : index
      %276 = vector.load %arg1[%c0_135, %c0_136, %c0_137] : memref<2x8x32xf32, #tpu.memory_space<vmem>>, vector<2x8x32xf32>
      %c0_138 = arith.constant 0 : index
      %c0_139 = arith.constant 0 : index
      %c0_140 = arith.constant 0 : index
      %277 = vector.load %arg33[%c0_138, %c0_139, %c0_140] : memref<2x8x32xf32, #tpu.memory_space<vmem>>, vector<2x8x32xf32>
      tpu.vector_store %arg33[%c0_138, %c0_139, %c0_140], %276 {strides = array<i32>} : memref<2x8x32xf32, #tpu.memory_space<vmem>>, vector<2x8x32xf32>,
    } else {
    }
    %c0 = arith.constant 0 : index
    %c0_1 = arith.constant 0 : index
    %c0_2 = arith.constant 0 : index
    %3 = vector.load %arg33[%c0, %c0_1, %c0_2] : memref<2x8x32xf32, #tpu.memory_space<vmem>>, vector<2x8x32xf32>
    %c0_3 = arith.constant 0 : index
    %c0_4 = arith.constant 0 : index
    %c0_5 = arith.constant 0 : index
    %4 = vector.load %arg2[%c0_3, %c0_4, %c0_5] : memref<2x16x32xbf16, #tpu.memory_space<vmem>>, vector<2x16x32xbf16>
    %5 = tpu.iota {dimensions = array<i32: 0>} : vector<8x8xi32>
    %6 = tpu.iota {dimensions = array<i32: 1>} : vector<8x8xi32>
    %7 = arith.cmpi sgt, %6, %5 : vector<8x8xi32>
    %cst = arith.constant -1.000000e+09 : f32
    %cst_6 = arith.constant 0.000000e+00 : f32
    %8 = vector.broadcast %cst : f32 to vector<8x8xf32>
    %9 = vector.broadcast %cst_6 : f32 to vector<8x8xf32>
    %10 = arith.select %7, %8, %9 : vector<8x8xi1>, vector<8x8xf32>
    %c0_7 = arith.constant 0 : index
    %c0_8 = arith.constant 0 : index
    %c0_9 = arith.constant 0 : index
    %11 = vector.load %arg3[%c0_7, %c0_8, %c0_9] : memref<2x1x8xf32, #tpu.memory_space<vmem>>, vector<2x1x8xf32>
    %12 = vector.shape_cast %10 : vector<8x8xf32> to vector<1x8x8xf32>
    %13 = vector.broadcast %11 : vector<2x1x8xf32> to vector<2x8x8xf32>
    %14 = vector.broadcast %12 : vector<1x8x8xf32> to vector<2x8x8xf32>
    %15 = arith.addf %13, %14 : vector<2x8x8xf32>
    %c0_10 = arith.constant 0 : index
    %c0_11 = arith.constant 0 : index
    %c0_12 = arith.constant 0 : index
    %16 = vector.load %arg4[%c0_10, %c0_11, %c0_12] : memref<2x1x16xf32, #tpu.memory_space<vmem>>, vector<2x1x16xf32>
    %c0_13 = arith.constant 0 : index
    %c0_14 = arith.constant 0 : index
    %c0_15 = arith.constant 0 : index
    %17 = vector.load %arg5[%c0_13, %c0_14, %c0_15] : memref<1x32x32xbf16, #tpu.memory_space<vmem>>, vector<1x32x32xbf16>
    %18 = vector.shape_cast %17 : vector<1x32x32xbf16> to vector<32x32xbf16>
    %c0_16 = arith.constant 0 : index
    %c0_17 = arith.constant 0 : index
    %c0_18 = arith.constant 0 : index
    %19 = vector.load %arg6[%c0_16, %c0_17, %c0_18] : memref<1x1x32xf32, #tpu.memory_space<vmem>>, vector<1x1x32xf32>
    %20 = vector.shape_cast %19 : vector<1x1x32xf32> to vector<1x32xf32>
    %c0_19 = arith.constant 0 : index
    %c0_20 = arith.constant 0 : index
    %c0_21 = arith.constant 0 : index
    %21 = vector.load %arg7[%c0_19, %c0_20, %c0_21] : memref<1x32x32xbf16, #tpu.memory_space<vmem>>, vector<1x32x32xbf16>
    %22 = vector.shape_cast %21 : vector<1x32x32xbf16> to vector<32x32xbf16>
    %c0_22 = arith.constant 0 : index
    %c0_23 = arith.constant 0 : index
    %c0_24 = arith.constant 0 : index
    %23 = vector.load %arg8[%c0_22, %c0_23, %c0_24] : memref<1x1x32xf32, #tpu.memory_space<vmem>>, vector<1x1x32xf32>
    %24 = vector.shape_cast %23 : vector<1x1x32xf32> to vector<1x32xf32>
    %c0_25 = arith.constant 0 : index
    %c0_26 = arith.constant 0 : index
    %c0_27 = arith.constant 0 : index
    %25 = vector.load %arg9[%c0_25, %c0_26, %c0_27] : memref<1x32x32xbf16, #tpu.memory_space<vmem>>, vector<1x32x32xbf16>
    %26 = vector.shape_cast %25 : vector<1x32x32xbf16> to vector<32x32xbf16>
    %c0_28 = arith.constant 0 : index
    %c0_29 = arith.constant 0 : index
    %c0_30 = arith.constant 0 : index
    %27 = vector.load %arg10[%c0_28, %c0_29, %c0_30] : memref<1x1x32xf32, #tpu.memory_space<vmem>>, vector<1x1x32xf32>
    %28 = vector.shape_cast %27 : vector<1x1x32xf32> to vector<1x32xf32>
    %c0_31 = arith.constant 0 : index
    %c0_32 = arith.constant 0 : index
    %c0_33 = arith.constant 0 : index
    %29 = vector.load %arg11[%c0_31, %c0_32, %c0_33] : memref<1x32x32xbf16, #tpu.memory_space<vmem>>, vector<1x32x32xbf16>
    %30 = vector.shape_cast %29 : vector<1x32x32xbf16> to vector<32x32xbf16>
    %c0_34 = arith.constant 0 : index
    %c0_35 = arith.constant 0 : index
    %c0_36 = arith.constant 0 : index
    %31 = vector.load %arg12[%c0_34, %c0_35, %c0_36] : memref<1x1x32xf32, #tpu.memory_space<vmem>>, vector<1x1x32xf32>
    %32 = vector.shape_cast %31 : vector<1x1x32xf32> to vector<1x32xf32>
    %33 = arith.truncf %3 : vector<2x8x32xf32> to vector<2x8x32xbf16>
    "tpu.trace_start"() <{level = 10 : i32, message = "bld,de->ble"}> : () -> ()
    %cst_37 = arith.constant dense<0.000000e+00> : vector<2x8x32xf32>
    %34 = tpu.matmul %33, %18, %cst_37 {dimension_numbers = #tpu.dot_dimension_numbers<[2], [0], [0, 1], [1], [0, 0, 0, 1, 1, 1], [], []>} : vector<2x8x32xbf16>, vector<32x32xbf16>, vector<2x8x32xf32> -> vector<2x8x32xf32>
    "tpu.trace_stop"() : () -> ()
    %35 = vector.shape_cast %20 : vector<1x32xf32> to vector<1x1x32xf32>
    %36 = vector.broadcast %35 : vector<1x1x32xf32> to vector<2x8x32xf32>
    %37 = arith.addf %34, %36 : vector<2x8x32xf32>
    %cst_38 = arith.constant 0.353553385 : f32
    %38 = vector.broadcast %cst_38 : f32 to vector<2x8x32xf32>
    %39 = arith.mulf %37, %38 : vector<2x8x32xf32>
    %40 = arith.truncf %3 : vector<2x8x32xf32> to vector<2x8x32xbf16>
    "tpu.trace_start"() <{level = 10 : i32, message = "bld,de->ble"}> : () -> ()
    %cst_39 = arith.constant dense<0.000000e+00> : vector<2x8x32xf32>
    %41 = tpu.matmul %40, %22, %cst_39 {dimension_numbers = #tpu.dot_dimension_numbers<[2], [0], [0, 1], [1], [0, 0, 0, 1, 1, 1], [], []>} : vector<2x8x32xbf16>, vector<32x32xbf16>, vector<2x8x32xf32> -> vector<2x8x32xf32>
    "tpu.trace_stop"() : () -> ()
    %42 = vector.shape_cast %24 : vector<1x32xf32> to vector<1x1x32xf32>
    %43 = vector.broadcast %42 : vector<1x1x32xf32> to vector<2x8x32xf32>
    %44 = arith.addf %41, %43 : vector<2x8x32xf32>
    %45 = arith.truncf %3 : vector<2x8x32xf32> to vector<2x8x32xbf16>
    "tpu.trace_start"() <{level = 10 : i32, message = "bld,de->ble"}> : () -> ()
    %cst_40 = arith.constant dense<0.000000e+00> : vector<2x8x32xf32>
    %46 = tpu.matmul %45, %26, %cst_40 {dimension_numbers = #tpu.dot_dimension_numbers<[2], [0], [0, 1], [1], [0, 0, 0, 1, 1, 1], [], []>} : vector<2x8x32xbf16>, vector<32x32xbf16>, vector<2x8x32xf32> -> vector<2x8x32xf32>
    "tpu.trace_stop"() : () -> ()
    %47 = vector.shape_cast %28 : vector<1x32xf32> to vector<1x1x32xf32>
    %48 = vector.broadcast %47 : vector<1x1x32xf32> to vector<2x8x32xf32>
    %49 = arith.addf %46, %48 : vector<2x8x32xf32>
    %50 = vector.extract_strided_slice %39 {offsets = [0, 0, 0], sizes = [2, 8, 8], strides = [1, 1, 1]} : vector<2x8x32xf32> to vector<2x8x8xf32>
    %51 = vector.extract_strided_slice %39 {offsets = [0, 0, 8], sizes = [2, 8, 8], strides = [1, 1, 1]} : vector<2x8x32xf32> to vector<2x8x8xf32>
    %52 = vector.extract_strided_slice %39 {offsets = [0, 0, 16], sizes = [2, 8, 8], strides = [1, 1, 1]} : vector<2x8x32xf32> to vector<2x8x8xf32>
    %53 = vector.extract_strided_slice %39 {offsets = [0, 0, 24], sizes = [2, 8, 8], strides = [1, 1, 1]} : vector<2x8x32xf32> to vector<2x8x8xf32>
    %54 = tpu.concatenate %50, %51, %52, %53 in 0 : vector<2x8x8xf32>, vector<2x8x8xf32>, vector<2x8x8xf32>, vector<2x8x8xf32> -> vector<8x8x8xf32>
    %55 = vector.extract_strided_slice %44 {offsets = [0, 0, 0], sizes = [2, 8, 8], strides = [1, 1, 1]} : vector<2x8x32xf32> to vector<2x8x8xf32>
    %56 = vector.extract_strided_slice %44 {offsets = [0, 0, 8], sizes = [2, 8, 8], strides = [1, 1, 1]} : vector<2x8x32xf32> to vector<2x8x8xf32>
    %57 = vector.extract_strided_slice %44 {offsets = [0, 0, 16], sizes = [2, 8, 8], strides = [1, 1, 1]} : vector<2x8x32xf32> to vector<2x8x8xf32>
    %58 = vector.extract_strided_slice %44 {offsets = [0, 0, 24], sizes = [2, 8, 8], strides = [1, 1, 1]} : vector<2x8x32xf32> to vector<2x8x8xf32>
    %59 = tpu.concatenate %55, %56, %57, %58 in 0 : vector<2x8x8xf32>, vector<2x8x8xf32>, vector<2x8x8xf32>, vector<2x8x8xf32> -> vector<8x8x8xf32>
    %60 = vector.extract_strided_slice %49 {offsets = [0, 0, 0], sizes = [2, 8, 8], strides = [1, 1, 1]} : vector<2x8x32xf32> to vector<2x8x8xf32>
    %61 = vector.extract_strided_slice %49 {offsets = [0, 0, 8], sizes = [2, 8, 8], strides = [1, 1, 1]} : vector<2x8x32xf32> to vector<2x8x8xf32>
    %62 = vector.extract_strided_slice %49 {offsets = [0, 0, 16], sizes = [2, 8, 8], strides = [1, 1, 1]} : vector<2x8x32xf32> to vector<2x8x8xf32>
    %63 = vector.extract_strided_slice %49 {offsets = [0, 0, 24], sizes = [2, 8, 8], strides = [1, 1, 1]} : vector<2x8x32xf32> to vector<2x8x8xf32>
    %64 = tpu.concatenate %60, %61, %62, %63 in 0 : vector<2x8x8xf32>, vector<2x8x8xf32>, vector<2x8x8xf32>, vector<2x8x8xf32> -> vector<8x8x8xf32>
    %65 = arith.truncf %54 : vector<8x8x8xf32> to vector<8x8x8xbf16>
    %66 = arith.truncf %59 : vector<8x8x8xf32> to vector<8x8x8xbf16>
    "tpu.trace_start"() <{level = 10 : i32, message = "bqd,bkd->bqk"}> : () -> ()
    %cst_41 = arith.constant dense<0.000000e+00> : vector<8x8x8xf32>
    %67 = tpu.matmul %65, %66, %cst_41 {dimension_numbers = #tpu.dot_dimension_numbers<[2], [2], [1], [1], [0, 0, 0, 1, 1, 1], [0], [0]>} : vector<8x8x8xbf16>, vector<8x8x8xbf16>, vector<8x8x8xf32> -> vector<8x8x8xf32>
    "tpu.trace_stop"() : () -> ()
    %68 = tpu.concatenate %15, %15, %15, %15 in 0 : vector<2x8x8xf32>, vector<2x8x8xf32>, vector<2x8x8xf32>, vector<2x8x8xf32> -> vector<8x8x8xf32>
    %69 = arith.addf %67, %68 : vector<8x8x8xf32>
    %cst_42 = arith.constant dense<0xFF800000> : vector<8x8xf32>
    %70 = vector.multi_reduction <maximumf>, %69, %cst_42 [2] : vector<8x8x8xf32> to vector<8x8xf32>
    %71 = vector.shape_cast %70 : vector<8x8xf32> to vector<8x8x1xf32>
    %72 = vector.broadcast %71 : vector<8x8x1xf32> to vector<8x8x8xf32>
    %73 = arith.subf %69, %72 : vector<8x8x8xf32>
    %74 = math.exp %73 : vector<8x8x8xf32>
    %cst_43 = arith.constant dense<0.000000e+00> : vector<8x8xf32>
    %75 = vector.multi_reduction <add>, %74, %cst_43 [2] : vector<8x8x8xf32> to vector<8x8xf32>
    %76 = vector.shape_cast %75 : vector<8x8xf32> to vector<8x8x1xf32>
    %77 = tpu.reciprocal %76 {approx = true} : vector<8x8x1xf32> -> vector<8x8x1xf32>
    %78 = vector.broadcast %77 : vector<8x8x1xf32> to vector<8x8x8xf32>
    %79 = arith.mulf %74, %78 : vector<8x8x8xf32>
    %80 = arith.truncf %79 : vector<8x8x8xf32> to vector<8x8x8xbf16>
    %81 = arith.truncf %64 : vector<8x8x8xf32> to vector<8x8x8xbf16>
    "tpu.trace_start"() <{level = 10 : i32, message = "bqk,bkd->bqd"}> : () -> ()
    %cst_44 = arith.constant dense<0.000000e+00> : vector<8x8x8xf32>
    %82 = tpu.matmul %80, %81, %cst_44 {dimension_numbers = #tpu.dot_dimension_numbers<[2], [1], [1], [2], [0, 0, 0, 1, 1, 2], [0], [0]>} : vector<8x8x8xbf16>, vector<8x8x8xbf16>, vector<8x8x8xf32> -> vector<8x8x8xf32>
    "tpu.trace_stop"() : () -> ()
    %83 = vector.extract_strided_slice %82 {offsets = [0, 0, 0], sizes = [2, 8, 8], strides = [1, 1, 1]} : vector<8x8x8xf32> to vector<2x8x8xf32>
    %84 = vector.extract_strided_slice %82 {offsets = [2, 0, 0], sizes = [2, 8, 8], strides = [1, 1, 1]} : vector<8x8x8xf32> to vector<2x8x8xf32>
    %85 = vector.extract_strided_slice %82 {offsets = [4, 0, 0], sizes = [2, 8, 8], strides = [1, 1, 1]} : vector<8x8x8xf32> to vector<2x8x8xf32>
    %86 = vector.extract_strided_slice %82 {offsets = [6, 0, 0], sizes = [2, 8, 8], strides = [1, 1, 1]} : vector<8x8x8xf32> to vector<2x8x8xf32>
    %87 = tpu.concatenate %83, %84, %85, %86 in 2 : vector<2x8x8xf32>, vector<2x8x8xf32>, vector<2x8x8xf32>, vector<2x8x8xf32> -> vector<2x8x32xf32>
    %88 = arith.truncf %87 : vector<2x8x32xf32> to vector<2x8x32xbf16>
    "tpu.trace_start"() <{level = 10 : i32, message = "bqd,de->bqe"}> : () -> ()
    %cst_45 = arith.constant dense<0.000000e+00> : vector<2x8x32xf32>
    %89 = tpu.matmul %88, %30, %cst_45 {dimension_numbers = #tpu.dot_dimension_numbers<[2], [0], [0, 1], [1], [0, 0, 0, 1, 1, 1], [], []>} : vector<2x8x32xbf16>, vector<32x32xbf16>, vector<2x8x32xf32> -> vector<2x8x32xf32>
    "tpu.trace_stop"() : () -> ()
    %90 = vector.shape_cast %32 : vector<1x32xf32> to vector<1x1x32xf32>
    %91 = vector.broadcast %90 : vector<1x1x32xf32> to vector<2x8x32xf32>
    %92 = arith.addf %89, %91 : vector<2x8x32xf32>
    %93 = arith.addf %92, %3 : vector<2x8x32xf32>
    %c0_46 = arith.constant 0 : index
    %c0_47 = arith.constant 0 : index
    %c0_48 = arith.constant 0 : index
    %94 = vector.load %arg13[%c0_46, %c0_47, %c0_48] : memref<1x1x32xf32, #tpu.memory_space<vmem>>, vector<1x1x32xf32>
    %95 = vector.shape_cast %94 : vector<1x1x32xf32> to vector<1x32xf32>
    %c0_49 = arith.constant 0 : index
    %c0_50 = arith.constant 0 : index
    %c0_51 = arith.constant 0 : index
    %96 = vector.load %arg14[%c0_49, %c0_50, %c0_51] : memref<1x1x32xf32, #tpu.memory_space<vmem>>, vector<1x1x32xf32>
    %97 = vector.shape_cast %96 : vector<1x1x32xf32> to vector<1x32xf32>
    %cst_52 = arith.constant dense<0.000000e+00> : vector<2x8xf32>
    %98 = vector.multi_reduction <add>, %93, %cst_52 [2] : vector<2x8x32xf32> to vector<2x8xf32>
    %99 = vector.shape_cast %98 : vector<2x8xf32> to vector<2x8x1xf32>
    %cst_53 = arith.constant 3.200000e+01 : f32
    %100 = vector.broadcast %cst_53 : f32 to vector<2x8x1xf32>
    %101 = arith.divf %99, %100 : vector<2x8x1xf32>
    %102 = vector.broadcast %101 : vector<2x8x1xf32> to vector<2x8x32xf32>
    %103 = arith.subf %93, %102 : vector<2x8x32xf32>
    %104 = arith.mulf %103, %103 : vector<2x8x32xf32>
    %cst_54 = arith.constant dense<0.000000e+00> : vector<2x8xf32>
    %105 = vector.multi_reduction <add>, %104, %cst_54 [2] : vector<2x8x32xf32> to vector<2x8xf32>
    %106 = vector.shape_cast %105 : vector<2x8xf32> to vector<2x8x1xf32>
    %cst_55 = arith.constant 3.200000e+01 : f32
    %107 = vector.broadcast %cst_55 : f32 to vector<2x8x1xf32>
    %108 = arith.divf %106, %107 : vector<2x8x1xf32>
    %cst_56 = arith.constant 9.99999997E-7 : f32
    %109 = vector.broadcast %cst_56 : f32 to vector<2x8x1xf32>
    %110 = arith.addf %108, %109 : vector<2x8x1xf32>
    %111 = math.rsqrt %110 : vector<2x8x1xf32>
    %112 = vector.broadcast %111 : vector<2x8x1xf32> to vector<2x8x32xf32>
    %113 = arith.mulf %103, %112 : vector<2x8x32xf32>
    %114 = vector.shape_cast %95 : vector<1x32xf32> to vector<1x1x32xf32>
    %115 = vector.broadcast %114 : vector<1x1x32xf32> to vector<2x8x32xf32>
    %116 = arith.mulf %113, %115 : vector<2x8x32xf32>
    %117 = vector.shape_cast %97 : vector<1x32xf32> to vector<1x1x32xf32>
    %118 = vector.broadcast %117 : vector<1x1x32xf32> to vector<2x8x32xf32>
    %119 = arith.addf %116, %118 : vector<2x8x32xf32>
    %c0_57 = arith.constant 0 : index
    %c0_58 = arith.constant 0 : index
    %c0_59 = arith.constant 0 : index
    %120 = vector.load %arg15[%c0_57, %c0_58, %c0_59] : memref<1x32x32xbf16, #tpu.memory_space<vmem>>, vector<1x32x32xbf16>
    %121 = vector.shape_cast %120 : vector<1x32x32xbf16> to vector<32x32xbf16>
    %c0_60 = arith.constant 0 : index
    %c0_61 = arith.constant 0 : index
    %c0_62 = arith.constant 0 : index
    %122 = vector.load %arg16[%c0_60, %c0_61, %c0_62] : memref<1x1x32xf32, #tpu.memory_space<vmem>>, vector<1x1x32xf32>
    %123 = vector.shape_cast %122 : vector<1x1x32xf32> to vector<1x32xf32>
    %c0_63 = arith.constant 0 : index
    %c0_64 = arith.constant 0 : index
    %c0_65 = arith.constant 0 : index
    %124 = vector.load %arg17[%c0_63, %c0_64, %c0_65] : memref<1x32x32xbf16, #tpu.memory_space<vmem>>, vector<1x32x32xbf16>
    %125 = vector.shape_cast %124 : vector<1x32x32xbf16> to vector<32x32xbf16>
    %c0_66 = arith.constant 0 : index
    %c0_67 = arith.constant 0 : index
    %c0_68 = arith.constant 0 : index
    %126 = vector.load %arg18[%c0_66, %c0_67, %c0_68] : memref<1x1x32xf32, #tpu.memory_space<vmem>>, vector<1x1x32xf32>
    %127 = vector.shape_cast %126 : vector<1x1x32xf32> to vector<1x32xf32>
    %c0_69 = arith.constant 0 : index
    %c0_70 = arith.constant 0 : index
    %c0_71 = arith.constant 0 : index
    %128 = vector.load %arg19[%c0_69, %c0_70, %c0_71] : memref<1x32x32xbf16, #tpu.memory_space<vmem>>, vector<1x32x32xbf16>
    %129 = vector.shape_cast %128 : vector<1x32x32xbf16> to vector<32x32xbf16>
    %c0_72 = arith.constant 0 : index
    %c0_73 = arith.constant 0 : index
    %c0_74 = arith.constant 0 : index
    %130 = vector.load %arg20[%c0_72, %c0_73, %c0_74] : memref<1x1x32xf32, #tpu.memory_space<vmem>>, vector<1x1x32xf32>
    %131 = vector.shape_cast %130 : vector<1x1x32xf32> to vector<1x32xf32>
    %c0_75 = arith.constant 0 : index
    %c0_76 = arith.constant 0 : index
    %c0_77 = arith.constant 0 : index
    %132 = vector.load %arg21[%c0_75, %c0_76, %c0_77] : memref<1x32x32xbf16, #tpu.memory_space<vmem>>, vector<1x32x32xbf16>
    %133 = vector.shape_cast %132 : vector<1x32x32xbf16> to vector<32x32xbf16>
    %c0_78 = arith.constant 0 : index
    %c0_79 = arith.constant 0 : index
    %c0_80 = arith.constant 0 : index
    %134 = vector.load %arg22[%c0_78, %c0_79, %c0_80] : memref<1x1x32xf32, #tpu.memory_space<vmem>>, vector<1x1x32xf32>
    %135 = vector.shape_cast %134 : vector<1x1x32xf32> to vector<1x32xf32>
    %136 = arith.truncf %119 : vector<2x8x32xf32> to vector<2x8x32xbf16>
    "tpu.trace_start"() <{level = 10 : i32, message = "bld,de->ble"}> : () -> ()
    %cst_81 = arith.constant dense<0.000000e+00> : vector<2x8x32xf32>
    %137 = tpu.matmul %136, %121, %cst_81 {dimension_numbers = #tpu.dot_dimension_numbers<[2], [0], [0, 1], [1], [0, 0, 0, 1, 1, 1], [], []>} : vector<2x8x32xbf16>, vector<32x32xbf16>, vector<2x8x32xf32> -> vector<2x8x32xf32>
    "tpu.trace_stop"() : () -> ()
    %138 = vector.shape_cast %123 : vector<1x32xf32> to vector<1x1x32xf32>
    %139 = vector.broadcast %138 : vector<1x1x32xf32> to vector<2x8x32xf32>
    %140 = arith.addf %137, %139 : vector<2x8x32xf32>
    %cst_82 = arith.constant 0.353553385 : f32
    %141 = vector.broadcast %cst_82 : f32 to vector<2x8x32xf32>
    %142 = arith.mulf %140, %141 : vector<2x8x32xf32>
    "tpu.trace_start"() <{level = 10 : i32, message = "bld,de->ble"}> : () -> ()
    %cst_83 = arith.constant dense<0.000000e+00> : vector<2x16x32xf32>
    %143 = tpu.matmul %4, %125, %cst_83 {dimension_numbers = #tpu.dot_dimension_numbers<[2], [0], [0, 1], [1], [0, 0, 0, 1, 1, 1], [], []>} : vector<2x16x32xbf16>, vector<32x32xbf16>, vector<2x16x32xf32> -> vector<2x16x32xf32>
    "tpu.trace_stop"() : () -> ()
    %144 = vector.shape_cast %127 : vector<1x32xf32> to vector<1x1x32xf32>
    %145 = vector.broadcast %144 : vector<1x1x32xf32> to vector<2x16x32xf32>
    %146 = arith.addf %143, %145 : vector<2x16x32xf32>
    "tpu.trace_start"() <{level = 10 : i32, message = "bld,de->ble"}> : () -> ()
    %cst_84 = arith.constant dense<0.000000e+00> : vector<2x16x32xf32>
    %147 = tpu.matmul %4, %129, %cst_84 {dimension_numbers = #tpu.dot_dimension_numbers<[2], [0], [0, 1], [1], [0, 0, 0, 1, 1, 1], [], []>} : vector<2x16x32xbf16>, vector<32x32xbf16>, vector<2x16x32xf32> -> vector<2x16x32xf32>
    "tpu.trace_stop"() : () -> ()
    %148 = vector.shape_cast %131 : vector<1x32xf32> to vector<1x1x32xf32>
    %149 = vector.broadcast %148 : vector<1x1x32xf32> to vector<2x16x32xf32>
    %150 = arith.addf %147, %149 : vector<2x16x32xf32>
    %151 = vector.extract_strided_slice %142 {offsets = [0, 0, 0], sizes = [2, 8, 8], strides = [1, 1, 1]} : vector<2x8x32xf32> to vector<2x8x8xf32>
    %152 = vector.extract_strided_slice %142 {offsets = [0, 0, 8], sizes = [2, 8, 8], strides = [1, 1, 1]} : vector<2x8x32xf32> to vector<2x8x8xf32>
    %153 = vector.extract_strided_slice %142 {offsets = [0, 0, 16], sizes = [2, 8, 8], strides = [1, 1, 1]} : vector<2x8x32xf32> to vector<2x8x8xf32>
    %154 = vector.extract_strided_slice %142 {offsets = [0, 0, 24], sizes = [2, 8, 8], strides = [1, 1, 1]} : vector<2x8x32xf32> to vector<2x8x8xf32>
    %155 = tpu.concatenate %151, %152, %153, %154 in 0 : vector<2x8x8xf32>, vector<2x8x8xf32>, vector<2x8x8xf32>, vector<2x8x8xf32> -> vector<8x8x8xf32>
    %156 = vector.extract_strided_slice %146 {offsets = [0, 0, 0], sizes = [2, 16, 8], strides = [1, 1, 1]} : vector<2x16x32xf32> to vector<2x16x8xf32>
    %157 = vector.extract_strided_slice %146 {offsets = [0, 0, 8], sizes = [2, 16, 8], strides = [1, 1, 1]} : vector<2x16x32xf32> to vector<2x16x8xf32>
    %158 = vector.extract_strided_slice %146 {offsets = [0, 0, 16], sizes = [2, 16, 8], strides = [1, 1, 1]} : vector<2x16x32xf32> to vector<2x16x8xf32>
    %159 = vector.extract_strided_slice %146 {offsets = [0, 0, 24], sizes = [2, 16, 8], strides = [1, 1, 1]} : vector<2x16x32xf32> to vector<2x16x8xf32>
    %160 = tpu.concatenate %156, %157, %158, %159 in 0 : vector<2x16x8xf32>, vector<2x16x8xf32>, vector<2x16x8xf32>, vector<2x16x8xf32> -> vector<8x16x8xf32>
    %161 = vector.extract_strided_slice %150 {offsets = [0, 0, 0], sizes = [2, 16, 8], strides = [1, 1, 1]} : vector<2x16x32xf32> to vector<2x16x8xf32>
    %162 = vector.extract_strided_slice %150 {offsets = [0, 0, 8], sizes = [2, 16, 8], strides = [1, 1, 1]} : vector<2x16x32xf32> to vector<2x16x8xf32>
    %163 = vector.extract_strided_slice %150 {offsets = [0, 0, 16], sizes = [2, 16, 8], strides = [1, 1, 1]} : vector<2x16x32xf32> to vector<2x16x8xf32>
    %164 = vector.extract_strided_slice %150 {offsets = [0, 0, 24], sizes = [2, 16, 8], strides = [1, 1, 1]} : vector<2x16x32xf32> to vector<2x16x8xf32>
    %165 = tpu.concatenate %161, %162, %163, %164 in 0 : vector<2x16x8xf32>, vector<2x16x8xf32>, vector<2x16x8xf32>, vector<2x16x8xf32> -> vector<8x16x8xf32>
    %166 = arith.truncf %155 : vector<8x8x8xf32> to vector<8x8x8xbf16>
    %167 = arith.truncf %160 : vector<8x16x8xf32> to vector<8x16x8xbf16>
    "tpu.trace_start"() <{level = 10 : i32, message = "bqd,bkd->bqk"}> : () -> ()
    %cst_85 = arith.constant dense<0.000000e+00> : vector<8x8x16xf32>
    %168 = tpu.matmul %166, %167, %cst_85 {dimension_numbers = #tpu.dot_dimension_numbers<[2], [2], [1], [1], [0, 0, 0, 1, 1, 1], [0], [0]>} : vector<8x8x8xbf16>, vector<8x16x8xbf16>, vector<8x8x16xf32> -> vector<8x8x16xf32>
    "tpu.trace_stop"() : () -> ()
    %169 = tpu.concatenate %16, %16, %16, %16 in 0 : vector<2x1x16xf32>, vector<2x1x16xf32>, vector<2x1x16xf32>, vector<2x1x16xf32> -> vector<8x1x16xf32>
    %170 = vector.broadcast %169 : vector<8x1x16xf32> to vector<8x8x16xf32>
    %171 = arith.addf %168, %170 : vector<8x8x16xf32>
    %cst_86 = arith.constant dense<0xFF800000> : vector<8x8xf32>
    %172 = vector.multi_reduction <maximumf>, %171, %cst_86 [2] : vector<8x8x16xf32> to vector<8x8xf32>
    %173 = vector.shape_cast %172 : vector<8x8xf32> to vector<8x8x1xf32>
    %174 = vector.broadcast %173 : vector<8x8x1xf32> to vector<8x8x16xf32>
    %175 = arith.subf %171, %174 : vector<8x8x16xf32>
    %176 = math.exp %175 : vector<8x8x16xf32>
    %cst_87 = arith.constant dense<0.000000e+00> : vector<8x8xf32>
    %177 = vector.multi_reduction <add>, %176, %cst_87 [2] : vector<8x8x16xf32> to vector<8x8xf32>
    %178 = vector.shape_cast %177 : vector<8x8xf32> to vector<8x8x1xf32>
    %179 = tpu.reciprocal %178 {approx = true} : vector<8x8x1xf32> -> vector<8x8x1xf32>
    %180 = vector.broadcast %179 : vector<8x8x1xf32> to vector<8x8x16xf32>
    %181 = arith.mulf %176, %180 : vector<8x8x16xf32>
    %182 = arith.truncf %181 : vector<8x8x16xf32> to vector<8x8x16xbf16>
    %183 = arith.truncf %165 : vector<8x16x8xf32> to vector<8x16x8xbf16>
    "tpu.trace_start"() <{level = 10 : i32, message = "bqk,bkd->bqd"}> : () -> ()
    %cst_88 = arith.constant dense<0.000000e+00> : vector<8x8x8xf32>
    %184 = tpu.matmul %182, %183, %cst_88 {dimension_numbers = #tpu.dot_dimension_numbers<[2], [1], [1], [2], [0, 0, 0, 1, 1, 2], [0], [0]>} : vector<8x8x16xbf16>, vector<8x16x8xbf16>, vector<8x8x8xf32> -> vector<8x8x8xf32>
    "tpu.trace_stop"() : () -> ()
    %185 = vector.extract_strided_slice %184 {offsets = [0, 0, 0], sizes = [2, 8, 8], strides = [1, 1, 1]} : vector<8x8x8xf32> to vector<2x8x8xf32>
    %186 = vector.extract_strided_slice %184 {offsets = [2, 0, 0], sizes = [2, 8, 8], strides = [1, 1, 1]} : vector<8x8x8xf32> to vector<2x8x8xf32>
    %187 = vector.extract_strided_slice %184 {offsets = [4, 0, 0], sizes = [2, 8, 8], strides = [1, 1, 1]} : vector<8x8x8xf32> to vector<2x8x8xf32>
    %188 = vector.extract_strided_slice %184 {offsets = [6, 0, 0], sizes = [2, 8, 8], strides = [1, 1, 1]} : vector<8x8x8xf32> to vector<2x8x8xf32>
    %189 = tpu.concatenate %185, %186, %187, %188 in 2 : vector<2x8x8xf32>, vector<2x8x8xf32>, vector<2x8x8xf32>, vector<2x8x8xf32> -> vector<2x8x32xf32>
    %190 = arith.truncf %189 : vector<2x8x32xf32> to vector<2x8x32xbf16>
    "tpu.trace_start"() <{level = 10 : i32, message = "bqd,de->bqe"}> : () -> ()
    %cst_89 = arith.constant dense<0.000000e+00> : vector<2x8x32xf32>
    %191 = tpu.matmul %190, %133, %cst_89 {dimension_numbers = #tpu.dot_dimension_numbers<[2], [0], [0, 1], [1], [0, 0, 0, 1, 1, 1], [], []>} : vector<2x8x32xbf16>, vector<32x32xbf16>, vector<2x8x32xf32> -> vector<2x8x32xf32>
    "tpu.trace_stop"() : () -> ()
    %192 = vector.shape_cast %135 : vector<1x32xf32> to vector<1x1x32xf32>
    %193 = vector.broadcast %192 : vector<1x1x32xf32> to vector<2x8x32xf32>
    %194 = arith.addf %191, %193 : vector<2x8x32xf32>
    %195 = arith.addf %194, %119 : vector<2x8x32xf32>
    %c0_90 = arith.constant 0 : index
    %c0_91 = arith.constant 0 : index
    %c0_92 = arith.constant 0 : index
    %196 = vector.load %arg23[%c0_90, %c0_91, %c0_92] : memref<1x1x32xf32, #tpu.memory_space<vmem>>, vector<1x1x32xf32>
    %197 = vector.shape_cast %196 : vector<1x1x32xf32> to vector<1x32xf32>
    %c0_93 = arith.constant 0 : index
    %c0_94 = arith.constant 0 : index
    %c0_95 = arith.constant 0 : index
    %198 = vector.load %arg24[%c0_93, %c0_94, %c0_95] : memref<1x1x32xf32, #tpu.memory_space<vmem>>, vector<1x1x32xf32>
    %199 = vector.shape_cast %198 : vector<1x1x32xf32> to vector<1x32xf32>
    %cst_96 = arith.constant dense<0.000000e+00> : vector<2x8xf32>
    %200 = vector.multi_reduction <add>, %195, %cst_96 [2] : vector<2x8x32xf32> to vector<2x8xf32>
    %201 = vector.shape_cast %200 : vector<2x8xf32> to vector<2x8x1xf32>
    %cst_97 = arith.constant 3.200000e+01 : f32
    %202 = vector.broadcast %cst_97 : f32 to vector<2x8x1xf32>
    %203 = arith.divf %201, %202 : vector<2x8x1xf32>
    %204 = vector.broadcast %203 : vector<2x8x1xf32> to vector<2x8x32xf32>
    %205 = arith.subf %195, %204 : vector<2x8x32xf32>
    %206 = arith.mulf %205, %205 : vector<2x8x32xf32>
    %cst_98 = arith.constant dense<0.000000e+00> : vector<2x8xf32>
    %207 = vector.multi_reduction <add>, %206, %cst_98 [2] : vector<2x8x32xf32> to vector<2x8xf32>
    %208 = vector.shape_cast %207 : vector<2x8xf32> to vector<2x8x1xf32>
    %cst_99 = arith.constant 3.200000e+01 : f32
    %209 = vector.broadcast %cst_99 : f32 to vector<2x8x1xf32>
    %210 = arith.divf %208, %209 : vector<2x8x1xf32>
    %cst_100 = arith.constant 9.99999997E-7 : f32
    %211 = vector.broadcast %cst_100 : f32 to vector<2x8x1xf32>
    %212 = arith.addf %210, %211 : vector<2x8x1xf32>
    %213 = math.rsqrt %212 : vector<2x8x1xf32>
    %214 = vector.broadcast %213 : vector<2x8x1xf32> to vector<2x8x32xf32>
    %215 = arith.mulf %205, %214 : vector<2x8x32xf32>
    %216 = vector.shape_cast %197 : vector<1x32xf32> to vector<1x1x32xf32>
    %217 = vector.broadcast %216 : vector<1x1x32xf32> to vector<2x8x32xf32>
    %218 = arith.mulf %215, %217 : vector<2x8x32xf32>
    %219 = vector.shape_cast %199 : vector<1x32xf32> to vector<1x1x32xf32>
    %220 = vector.broadcast %219 : vector<1x1x32xf32> to vector<2x8x32xf32>
    %221 = arith.addf %218, %220 : vector<2x8x32xf32>
    %c0_101 = arith.constant 0 : index
    %c0_102 = arith.constant 0 : index
    %c0_103 = arith.constant 0 : index
    %222 = vector.load %arg25[%c0_101, %c0_102, %c0_103] : memref<1x1x32xf32, #tpu.memory_space<vmem>>, vector<1x1x32xf32>
    %223 = vector.shape_cast %222 : vector<1x1x32xf32> to vector<1x32xf32>
    %c0_104 = arith.constant 0 : index
    %c0_105 = arith.constant 0 : index
    %c0_106 = arith.constant 0 : index
    %224 = vector.load %arg26[%c0_104, %c0_105, %c0_106] : memref<1x1x32xf32, #tpu.memory_space<vmem>>, vector<1x1x32xf32>
    %225 = vector.shape_cast %224 : vector<1x1x32xf32> to vector<1x32xf32>
    %cst_107 = arith.constant dense<0.000000e+00> : vector<2x8xf32>
    %226 = vector.multi_reduction <add>, %221, %cst_107 [2] : vector<2x8x32xf32> to vector<2x8xf32>
    %227 = vector.shape_cast %226 : vector<2x8xf32> to vector<2x8x1xf32>
    %cst_108 = arith.constant 3.200000e+01 : f32
    %228 = vector.broadcast %cst_108 : f32 to vector<2x8x1xf32>
    %229 = arith.divf %227, %228 : vector<2x8x1xf32>
    %230 = vector.broadcast %229 : vector<2x8x1xf32> to vector<2x8x32xf32>
    %231 = arith.subf %221, %230 : vector<2x8x32xf32>
    %232 = arith.mulf %231, %231 : vector<2x8x32xf32>
    %cst_109 = arith.constant dense<0.000000e+00> : vector<2x8xf32>
    %233 = vector.multi_reduction <add>, %232, %cst_109 [2] : vector<2x8x32xf32> to vector<2x8xf32>
    %234 = vector.shape_cast %233 : vector<2x8xf32> to vector<2x8x1xf32>
    %cst_110 = arith.constant 3.200000e+01 : f32
    %235 = vector.broadcast %cst_110 : f32 to vector<2x8x1xf32>
    %236 = arith.divf %234, %235 : vector<2x8x1xf32>
    %cst_111 = arith.constant 9.99999997E-7 : f32
    %237 = vector.broadcast %cst_111 : f32 to vector<2x8x1xf32>
    %238 = arith.addf %236, %237 : vector<2x8x1xf32>
    %239 = math.rsqrt %238 : vector<2x8x1xf32>
    %240 = vector.broadcast %239 : vector<2x8x1xf32> to vector<2x8x32xf32>
    %241 = arith.mulf %231, %240 : vector<2x8x32xf32>
    %242 = vector.shape_cast %223 : vector<1x32xf32> to vector<1x1x32xf32>
    %243 = vector.broadcast %242 : vector<1x1x32xf32> to vector<2x8x32xf32>
    %244 = arith.mulf %241, %243 : vector<2x8x32xf32>
    %245 = vector.shape_cast %225 : vector<1x32xf32> to vector<1x1x32xf32>
    %246 = vector.broadcast %245 : vector<1x1x32xf32> to vector<2x8x32xf32>
    %247 = arith.addf %244, %246 : vector<2x8x32xf32>
    %c0_112 = arith.constant 0 : index
    %c0_113 = arith.constant 0 : index
    %c0_114 = arith.constant 0 : index
    %248 = vector.load %arg27[%c0_112, %c0_113, %c0_114] : memref<1x32x64xbf16, #tpu.memory_space<vmem>>, vector<1x32x64xbf16>
    %249 = vector.shape_cast %248 : vector<1x32x64xbf16> to vector<32x64xbf16>
    %c0_115 = arith.constant 0 : index
    %c0_116 = arith.constant 0 : index
    %c0_117 = arith.constant 0 : index
    %250 = vector.load %arg28[%c0_115, %c0_116, %c0_117] : memref<1x1x64xf32, #tpu.memory_space<vmem>>, vector<1x1x64xf32>
    %251 = vector.shape_cast %250 : vector<1x1x64xf32> to vector<1x64xf32>
    %252 = arith.truncf %247 : vector<2x8x32xf32> to vector<2x8x32xbf16>
    "tpu.trace_start"() <{level = 10 : i32, message = "bld,de->ble"}> : () -> ()
    %cst_118 = arith.constant dense<0.000000e+00> : vector<2x8x64xf32>
    %253 = tpu.matmul %252, %249, %cst_118 {dimension_numbers = #tpu.dot_dimension_numbers<[2], [0], [0, 1], [1], [0, 0, 0, 1, 1, 1], [], []>} : vector<2x8x32xbf16>, vector<32x64xbf16>, vector<2x8x64xf32> -> vector<2x8x64xf32>
    "tpu.trace_stop"() : () -> ()
    %254 = vector.shape_cast %251 : vector<1x64xf32> to vector<1x1x64xf32>
    %255 = vector.broadcast %254 : vector<1x1x64xf32> to vector<2x8x64xf32>
    %256 = arith.addf %253, %255 : vector<2x8x64xf32>
    %cst_119 = arith.constant 0.000000e+00 : f32
    %257 = vector.broadcast %cst_119 : f32 to vector<2x8x64xf32>
    %258 = arith.maximumf %256, %257 : vector<2x8x64xf32>
    %c0_120 = arith.constant 0 : index
    %c0_121 = arith.constant 0 : index
    %c0_122 = arith.constant 0 : index
    %259 = vector.load %arg29[%c0_120, %c0_121, %c0_122] : memref<1x64x32xbf16, #tpu.memory_space<vmem>>, vector<1x64x32xbf16>
    %260 = vector.shape_cast %259 : vector<1x64x32xbf16> to vector<64x32xbf16>
    %c0_123 = arith.constant 0 : index
    %c0_124 = arith.constant 0 : index
    %c0_125 = arith.constant 0 : index
    %261 = vector.load %arg30[%c0_123, %c0_124, %c0_125] : memref<1x1x32xf32, #tpu.memory_space<vmem>>, vector<1x1x32xf32>
    %262 = vector.shape_cast %261 : vector<1x1x32xf32> to vector<1x32xf32>
    %263 = arith.truncf %258 : vector<2x8x64xf32> to vector<2x8x64xbf16>
    "tpu.trace_start"() <{level = 10 : i32, message = "bld,de->ble"}> : () -> ()
    %cst_126 = arith.constant dense<0.000000e+00> : vector<2x8x32xf32>
    %264 = tpu.matmul %263, %260, %cst_126 {dimension_numbers = #tpu.dot_dimension_numbers<[2], [0], [0, 1], [1], [0, 0, 0, 1, 1, 1], [], []>} : vector<2x8x64xbf16>, vector<64x32xbf16>, vector<2x8x32xf32> -> vector<2x8x32xf32>
    "tpu.trace_stop"() : () -> ()
    %265 = vector.shape_cast %262 : vector<1x32xf32> to vector<1x1x32xf32>
    %266 = vector.broadcast %265 : vector<1x1x32xf32> to vector<2x8x32xf32>
    %267 = arith.addf %264, %266 : vector<2x8x32xf32>
    %268 = arith.addf %267, %221 : vector<2x8x32xf32>
    %c0_127 = arith.constant 0 : index
    %c0_128 = arith.constant 0 : index
    %c0_129 = arith.constant 0 : index
    %269 = vector.load %arg33[%c0_127, %c0_128, %c0_129] : memref<2x8x32xf32, #tpu.memory_space<vmem>>, vector<2x8x32xf32>
    tpu.vector_store %arg33[%c0_127, %c0_128, %c0_129], %268 {strides = array<i32>} : memref<2x8x32xf32, #tpu.memory_space<vmem>>, vector<2x8x32xf32>,
    %c0_130 = arith.constant 0 : index
    %c0_131 = arith.constant 0 : index
    %c0_132 = arith.constant 0 : index
    %c0_133 = arith.constant 0 : index
    %270 = vector.load %arg31[%c0_130, %c0_131, %c0_132, %c0_133] : memref<1x2x8x32xf32, #tpu.memory_space<vmem>>, vector<1x2x8x32xf32>
    %271 = vector.shape_cast %270 : vector<1x2x8x32xf32> to vector<2x8x32xf32>
    %272 = vector.shape_cast %268 : vector<2x8x32xf32> to vector<1x2x8x32xf32>
    tpu.vector_store %arg31[%c0_130, %c0_131, %c0_132, %c0_133], %272 {strides = array<i32>} : memref<1x2x8x32xf32, #tpu.memory_space<vmem>>, vector<1x2x8x32xf32>,
    %c1_i32 = arith.constant 1 : i32
    %273 = arith.cmpi eq, %arg0, %c1_i32 : i32
    %274 = arith.extui %273 : i1 to i32
    %c0_i32_134 = arith.constant 0 : i32
    %275 = arith.cmpi ne, %274, %c0_i32_134 : i32
    scf.if %275 {
      %c0_135 = arith.constant 0 : index
      %c0_136 = arith.constant 0 : index
      %c0_137 = arith.constant 0 : index
      %276 = vector.load %arg32[%c0_135, %c0_136, %c0_137] : memref<8x8x16xf32, #tpu.memory_space<vmem>>, vector<8x8x16xf32>
      tpu.vector_store %arg32[%c0_135, %c0_136, %c0_137], %181 {strides = array<i32>} : memref<8x8x16xf32, #tpu.memory_space<vmem>>, vector<8x8x16xf32>,
    } else {
    }
    return
  }
  func.func @transform_0(%arg0: i32) -> (i32, i32, i32) {
    %c0_i32 = arith.constant 0 : i32
    %c0_i32_0 = arith.constant 0 : i32
    %c0_i32_1 = arith.constant 0 : i32
    %c0_i32_2 = arith.constant 0 : i32
    return %c0_i32, %c0_i32_0, %c0_i32_1 : i32, i32, i32
  }
  func.func @transform_1(%arg0: i32) -> (i32, i32, i32) {
    %c0_i32 = arith.constant 0 : i32
    %c0_i32_0 = arith.constant 0 : i32
    %c0_i32_1 = arith.constant 0 : i32
    %c0_i32_2 = arith.constant 0 : i32
    return %c0_i32, %c0_i32_0, %c0_i32_1 : i32, i32, i32
  }
  func.func @transform_2(%arg0: i32) -> (i32, i32, i32) {
    %c0_i32 = arith.constant 0 : i32
    %c0_i32_0 = arith.constant 0 : i32
    %c0_i32_1 = arith.constant 0 : i32
    %c0_i32_2 = arith.constant 0 : i32
    return %c0_i32, %c0_i32_0, %c0_i32_1 : i32, i32, i32
  }
  func.func @transform_3(%arg0: i32) -> (i32, i32, i32) {
    %c0_i32 = arith.constant 0 : i32
    %c0_i32_0 = arith.constant 0 : i32
    %c0_i32_1 = arith.constant 0 : i32
    %c0_i32_2 = arith.constant 0 : i32
    return %c0_i32, %c0_i32_0, %c0_i32_1 : i32, i32, i32
  }
  func.func @transform_4(%arg0: i32) -> (i32, i32, i32) {
    %c0_i32 = arith.constant 0 : i32
    %c0_i32_0 = arith.constant 0 : i32
    %c0_i32_1 = arith.constant 0 : i32
    return %arg0, %c0_i32, %c0_i32_0 : i32, i32, i32
  }
  func.func @transform_5(%arg0: i32) -> (i32, i32, i32) {
    %c0_i32 = arith.constant 0 : i32
    %c0_i32_0 = arith.constant 0 : i32
    %c0_i32_1 = arith.constant 0 : i32
    return %arg0, %c0_i32, %c0_i32_0 : i32, i32, i32
  }
  func.func @transform_6(%arg0: i32) -> (i32, i32, i32) {
    %c0_i32 = arith.constant 0 : i32
    %c0_i32_0 = arith.constant 0 : i32
    %c0_i32_1 = arith.constant 0 : i32
    return %arg0, %c0_i32, %c0_i32_0 : i32, i32, i32
  }
  func.func @transform_7(%arg0: i32) -> (i32, i32, i32) {
    %c0_i32 = arith.constant 0 : i32
    %c0_i32_0 = arith.constant 0 : i32
    %c0_i32_1 = arith.constant 0 : i32
    return %arg0, %c0_i32, %c0_i32_0 : i32, i32, i32
  }
  func.func @transform_8(%arg0: i32) -> (i32, i32, i32) {
    %c0_i32 = arith.constant 0 : i32
    %c0_i32_0 = arith.constant 0 : i32
    %c0_i32_1 = arith.constant 0 : i32
    return %arg0, %c0_i32, %c0_i32_0 : i32, i32, i32
  }
  func.func @transform_9(%arg0: i32) -> (i32, i32, i32) {
    %c0_i32 = arith.constant 0 : i32
    %c0_i32_0 = arith.constant 0 : i32
    %c0_i32_1 = arith.constant 0 : i32
    return %arg0, %c0_i32, %c0_i32_0 : i32, i32, i32
  }
  func.func @transform_10(%arg0: i32) -> (i32, i32, i32) {
    %c0_i32 = arith.constant 0 : i32
    %c0_i32_0 = arith.constant 0 : i32
    %c0_i32_1 = arith.constant 0 : i32
    return %arg0, %c0_i32, %c0_i32_0 : i32, i32, i32
  }
  func.func @transform_11(%arg0: i32) -> (i32, i32, i32) {
    %c0_i32 = arith.constant 0 : i32
    %c0_i32_0 = arith.constant 0 : i32
    %c0_i32_1 = arith.constant 0 : i32
    return %arg0, %c0_i32, %c0_i32_0 : i32, i32, i32
  }
  func.func @transform_12(%arg0: i32) -> (i32, i32, i32) {
    %c0_i32 = arith.constant 0 : i32
    %c0_i32_0 = arith.constant 0 : i32
    %c0_i32_1 = arith.constant 0 : i32
    return %arg0, %c0_i32, %c0_i32_0 : i32, i32, i32
  }
  func.func @transform_13(%arg0: i32) -> (i32, i32, i32) {
    %c0_i32 = arith.constant 0 : i32
    %c0_i32_0 = arith.constant 0 : i32
    %c0_i32_1 = arith.constant 0 : i32
    return %arg0, %c0_i32, %c0_i32_0 : i32, i32, i32
  }
  func.func @transform_14(%arg0: i32) -> (i32, i32, i32) {
    %c0_i32 = arith.constant 0 : i32
    %c0_i32_0 = arith.constant 0 : i32
    %c0_i32_1 = arith.constant 0 : i32
    return %arg0, %c0_i32, %c0_i32_0 : i32, i32, i32
  }
  func.func @transform_15(%arg0: i32) -> (i32, i32, i32) {
    %c0_i32 = arith.constant 0 : i32
    %c0_i32_0 = arith.constant 0 : i32
    %c0_i32_1 = arith.constant 0 : i32
    return %arg0, %c0_i32, %c0_i32_0 : i32, i32, i32
  }
  func.func @transform_16(%arg0: i32) -> (i32, i32, i32) {
    %c0_i32 = arith.constant 0 : i32
    %c0_i32_0 = arith.constant 0 : i32
    %c0_i32_1 = arith.constant 0 : i32
    return %arg0, %c0_i32, %c0_i32_0 : i32, i32, i32
  }
  func.func @transform_17(%arg0: i32) -> (i32, i32, i32) {
    %c0_i32 = arith.constant 0 : i32
    %c0_i32_0 = arith.constant 0 : i32
    %c0_i32_1 = arith.constant 0 : i32
    return %arg0, %c0_i32, %c0_i32_0 : i32, i32, i32
  }
  func.func @transform_18(%arg0: i32) -> (i32, i32, i32) {
    %c0_i32 = arith.constant 0 : i32
    %c0_i32_0 = arith.constant 0 : i32
    %c0_i32_1 = arith.constant 0 : i32
    return %arg0, %c0_i32, %c0_i32_0 : i32, i32, i32
  }
  func.func @transform_19(%arg0: i32) -> (i32, i32, i32) {
    %c0_i32 = arith.constant 0 : i32
    %c0_i32_0 = arith.constant 0 : i32
    %c0_i32_1 = arith.constant 0 : i32
    return %arg0, %c0_i32, %c0_i32_0 : i32, i32, i32
  }
  func.func @transform_20(%arg0: i32) -> (i32, i32, i32) {
    %c0_i32 = arith.constant 0 : i32
    %c0_i32_0 = arith.constant 0 : i32
    %c0_i32_1 = arith.constant 0 : i32
    return %arg0, %c0_i32, %c0_i32_0 : i32, i32, i32
  }
  func.func @transform_21(%arg0: i32) -> (i32, i32, i32) {
    %c0_i32 = arith.constant 0 : i32
    %c0_i32_0 = arith.constant 0 : i32
    %c0_i32_1 = arith.constant 0 : i32
    return %arg0, %c0_i32, %c0_i32_0 : i32, i32, i32
  }
  func.func @transform_22(%arg0: i32) -> (i32, i32, i32) {
    %c0_i32 = arith.constant 0 : i32
    %c0_i32_0 = arith.constant 0 : i32
    %c0_i32_1 = arith.constant 0 : i32
    return %arg0, %c0_i32, %c0_i32_0 : i32, i32, i32
  }
  func.func @transform_23(%arg0: i32) -> (i32, i32, i32) {
    %c0_i32 = arith.constant 0 : i32
    %c0_i32_0 = arith.constant 0 : i32
    %c0_i32_1 = arith.constant 0 : i32
    return %arg0, %c0_i32, %c0_i32_0 : i32, i32, i32
  }
  func.func @transform_24(%arg0: i32) -> (i32, i32, i32) {
    %c0_i32 = arith.constant 0 : i32
    %c0_i32_0 = arith.constant 0 : i32
    %c0_i32_1 = arith.constant 0 : i32
    return %arg0, %c0_i32, %c0_i32_0 : i32, i32, i32
  }
  func.func @transform_25(%arg0: i32) -> (i32, i32, i32) {
    %c0_i32 = arith.constant 0 : i32
    %c0_i32_0 = arith.constant 0 : i32
    %c0_i32_1 = arith.constant 0 : i32
    return %arg0, %c0_i32, %c0_i32_0 : i32, i32, i32
  }
  func.func @transform_26(%arg0: i32) -> (i32, i32, i32) {
    %c0_i32 = arith.constant 0 : i32
    %c0_i32_0 = arith.constant 0 : i32
    %c0_i32_1 = arith.constant 0 : i32
    return %arg0, %c0_i32, %c0_i32_0 : i32, i32, i32
  }
  func.func @transform_27(%arg0: i32) -> (i32, i32, i32) {
    %c0_i32 = arith.constant 0 : i32
    %c0_i32_0 = arith.constant 0 : i32
    %c0_i32_1 = arith.constant 0 : i32
    return %arg0, %c0_i32, %c0_i32_0 : i32, i32, i32
  }
  func.func @transform_28(%arg0: i32) -> (i32, i32, i32) {
    %c0_i32 = arith.constant 0 : i32
    %c0_i32_0 = arith.constant 0 : i32
    %c0_i32_1 = arith.constant 0 : i32
    return %arg0, %c0_i32, %c0_i32_0 : i32, i32, i32
  }
  func.func @transform_29(%arg0: i32) -> (i32, i32, i32) {
    %c0_i32 = arith.constant 0 : i32
    %c0_i32_0 = arith.constant 0 : i32
    %c0_i32_1 = arith.constant 0 : i32
    return %arg0, %c0_i32, %c0_i32_0 : i32, i32, i32
  }
  func.func @transform_30(%arg0: i32) -> (i32, i32, i32, i32) {
    %c0_i32 = arith.constant 0 : i32
    %c0_i32_0 = arith.constant 0 : i32
    %c0_i32_1 = arith.constant 0 : i32
    %c0_i32_2 = arith.constant 0 : i32
    return %arg0, %c0_i32, %c0_i32_0, %c0_i32_1 : i32, i32, i32, i32
  }
  func.func @transform_31(%arg0: i32) -> (i32, i32, i32) {
    %c0_i32 = arith.constant 0 : i32
    %c0_i32_0 = arith.constant 0 : i32
    %c0_i32_1 = arith.constant 0 : i32
    %c0_i32_2 = arith.constant 0 : i32
    return %c0_i32, %c0_i32_0, %c0_i32_1 : i32, i32, i32
  }
}

</mosaic_0001>

<bundles_post_ra>
// kernel: tpu_custom_call.1
= control target key start
LH: loop header
LB: loop body
LE: loop exit
PB: predicated region body
PF: predicated region fallthrough
CT: control target
= control target key end

     0   :  { %s5055_s6 = smov 1   ;;  %s5056_s10 = smov 2   ;;  %s6079_s0 = inlined_call_operand.smem [shape: u32[32], index: -1, kind: input, shape index: {}] }
   0x1   :  { %s5114_s5 = sld [smem:[%s6079_s0]]   ;;  %s5057_s14 = smov 3  }
   0x2   :  { %s5119_s9 = sld [smem:[%s6079_s0 + %s5055_s6]]   ;;  %s5058_s18 = smov 4  }
   0x3   :  { %s5124_s13 = sld [smem:[%s6079_s0 + %s5056_s10]]   ;;  %s5059_s22 = smov 5  }
   0x4   :  { %s5129_s17 = sld [smem:[%s6079_s0 + %s5057_s14]]   ;;  %s5060_s26 = smov 6  }
   0x5   :  { %s5134_s21 = sld [smem:[%s6079_s0 + %s5058_s18]]   ;;  %s5061_s30 = smov 7  }
   0x6   :  { %s5139_s25 = sld [smem:[%s6079_s0 + %s5059_s22]]   ;;  %s5062_s4 = smov 8  }
   0x7   :  { %6114 = sst [smem:[#allocation29_spill]] %s5114_s5  ;;  %s5063_s10 = smov 9  }
   0x8   :  { %6115 = sst [smem:[#allocation30_spill]] %s5119_s9  ;;  %s5064_s15 = smov 10  }
   0x9   :  { %6116 = sst [smem:[#allocation31_spill]] %s5124_s13  ;;  %s5065_s20 = smov 11  }
   0xa   :  { %6117 = sst [smem:[#allocation32_spill]] %s5129_s17  ;;  %s5067_s1 = smov 13  }
   0xb   :  { %6118 = sst [smem:[#allocation33_spill]] %s5134_s21  ;;  %s5068_s7 = smov 14  }
   0xc   :  { %6119 = sst [smem:[#allocation34_spill]] %s5139_s25  ;;  %s5070_s22 = smov 16  }
   0xd   :  { %s5144_s29 = sld [smem:[%s6079_s0 + %s5060_s26]]   ;;  %s5066_s26 = smov 12  }
   0xe   :  { %s5149_s3 = sld [smem:[%s6079_s0 + %s5061_s30]]   ;;  %s5071_s28 = smov 17  }
   0xf   :  { %s5154_s8 = sld [smem:[%s6079_s0 + %s5062_s4]]  }
  0x10   :  { %s5159_s14 = sld [smem:[%s6079_s0 + %s5063_s10]]  }
  0x11   :  { %s5164_s19 = sld [smem:[%s6079_s0 + %s5064_s15]]   ;;  %s5069_s15 = smov 15  }
  0x12   :  { %s5169_s24 = sld [smem:[%s6079_s0 + %s5065_s20]]  }
  0x13   :  { %6120 = sst [smem:[#allocation35_spill]] %s5144_s29 }
  0x14   :  { %6121 = sst [smem:[#allocation36_spill]] %s5149_s3 }
  0x15   :  { %6122 = sst [smem:[#allocation37_spill]] %s5154_s8 }
  0x16   :  { %6123 = sst [smem:[#allocation38_spill]] %s5159_s14 }
  0x17   :  { %6124 = sst [smem:[#allocation39_spill]] %s5164_s19 }
  0x18   :  { %6125 = sst [smem:[#allocation40_spill]] %s5169_s24 }
  0x19   :  { %s5174_s30 = sld [smem:[%s6079_s0 + %s5066_s26]]  }
  0x1a   :  { %s5179_s6 = sld [smem:[%s6079_s0 + %s5067_s1]]  }
  0x1b   :  { %s5184_s12 = sld [smem:[%s6079_s0 + %s5068_s7]]   ;;  %s5072_s7 = smov 18  }
  0x1c   :  { %s5189_s20 = sld [smem:[%s6079_s0 + %s5069_s15]]   ;;  %s5073_s15 = smov 19  }
  0x1d   :  { %s5194_s27 = sld [smem:[%s6079_s0 + %s5070_s22]]   ;;  %s5074_s22 = smov 20  }
  0x1e   :  { %s5199_s4 = sld [smem:[%s6079_s0 + %s5071_s28]]   ;;  %s5075_s28 = smov 21  }
  0x1f   :  { %6126 = sst [smem:[#allocation41_spill]] %s5174_s30 }
  0x20   :  { %6127 = sst [smem:[#allocation42_spill]] %s5179_s6 }
  0x21   :  { %6128 = sst [smem:[#allocation43_spill]] %s5184_s12 }
  0x22   :  { %6129 = sst [smem:[#allocation44_spill]] %s5189_s20 }
  0x23   :  { %6130 = sst [smem:[#allocation45_spill]] %s5194_s27 }
  0x24   :  { %6131 = sst [smem:[#allocation46_spill]] %s5199_s4 }
  0x25   :  { %s5204_s30 = sld [smem:[%s6079_s0 + %s5072_s7]]   ;;  %s5076_s7 = smov 22  }
  0x26   :  { %s5209_s20 = sld [smem:[%s6079_s0 + %s5073_s15]]   ;;  %s5077_s15 = smov 23  }
  0x27   :  { %s5214_s24 = sld [smem:[%s6079_s0 + %s5074_s22]]   ;;  %s5078_s22 = smov 24  }
  0x28   :  { %s5219_s4 = sld [smem:[%s6079_s0 + %s5075_s28]]   ;;  %s5079_s28 = smov 25  }
  0x29   :  { %s5224_s14 = sld [smem:[%s6079_s0 + %s5076_s7]]   ;;  %s5080_s7 = smov 26  }
  0x2a   :  { %s5234_s8 = sld [smem:[%s6079_s0 + %s5078_s22]]   ;;  %s5082_s22 = smov 28  }
  0x2b   :  { %6132 = sst [smem:[#allocation47_spill]] %s5204_s30 }
  0x2c   :  { %6133 = sst [smem:[#allocation48_spill]] %s5209_s20 }
  0x2d   :  { %6134 = sst [smem:[#allocation49_spill]] %s5214_s24 }
  0x2e   :  { %6135 = sst [smem:[#allocation50_spill]] %s5219_s4 }
  0x2f   :  { %6136 = sst [smem:[#allocation51_spill]] %s5224_s14 }
  0x30   :  { %s5229_s20 = sld [smem:[%s6079_s0 + %s5077_s15]]   ;;  %s5081_s15 = smov 27  }
  0x31   :  { %6138 = sst [smem:[#allocation53_spill]] %s5234_s8 }
  0x32   :  { %s5239_s4 = sld [smem:[%s6079_s0 + %s5079_s28]]   ;;  %s5083_s28 = smov 29  }
  0x33   :  { %s5244_s14 = sld [smem:[%s6079_s0 + %s5080_s7]]   ;;  %s5084_s7 = smov 30  }
  0x34   :  { %s5249_s3 = sld [smem:[%s6079_s0 + %s5081_s15]]   ;;  %s5085_s15 = smov 31  }
  0x35   :  { %s5254_s8 = sld [smem:[%s6079_s0 + %s5082_s22]]  }
  0x36   :  { %6137 = sst [smem:[#allocation52_spill]] %s5229_s20 }
  0x37   :  { %s5259_s29 = sld [smem:[%s6079_s0 + %s5083_s28]]  }
  0x38   :  { %6139 = sst [smem:[#allocation54_spill]] %s5239_s4 }
  0x39   :  { %6140 = sst [smem:[#allocation55_spill]] %s5244_s14 }
  0x3a   :  { %6141 = sst [smem:[#allocation56_spill]] %s5249_s3 }
  0x3b   :  { %6142 = sst [smem:[#allocation57_spill]] %s5254_s8 }
  0x3c   :  { %s5264_s21 = sld [smem:[%s6079_s0 + %s5084_s7]]  }
  0x3d   :  { %6143 = sst [smem:[#allocation58_spill]] %s5259_s29 }
  0x3e   :  { %s5269_s3 = sld [smem:[%s6079_s0 + %s5085_s15]]  }
  0x42   :  { %6144 = sst [smem:[#allocation59_spill]] %s5264_s21 }
  0x44   :  { %6145 = sst [smem:[#allocation60_spill]] %s5269_s3 }
  0x45   :  { %69 = vsyncpa [#allocation4], 0 }
  0x46   :  { %70 = vsyncpa [#allocation7], 0 }
  0x47   :  { %71 = vsyncpa [#allocation10], 0 }
  0x48   :  { %72 = vsyncpa [#allocation5], 0 }
  0x49   :  { %74 = vsyncpa [#allocation5 + $0x1], 0 }
  0x4a   :  { %75 = vsyncpa [#allocation22], 0  ;;  %s5271_s22 = smov 0   ;;  %s5273_s23 = smov 0  }
  0x4b   :  { %s5275_s26 = smov 0   ;;  %s5277_s28 = smov 0  }
  0x4c LB: > { %s6146_s30 = sld [smem:[#allocation47_spill]]  ;;  %s5292_s0 = sadd.s32 4294967295, %s5053_s28   ;;  %s5041_s22 = sphi %s5271_s22, %s6243_s22   ;;  %s5053_s28 = sphi %s5277_s28, %s6242_s28   ;;  %s5049_s26 = sphi %s5275_s26, %s6245_s26   ;;  %s5045_s23 = sphi %s5273_s23, %s6244_s23  }
  0x4d   : > { %s6147_s27 = sld [smem:[#allocation45_spill]]  ;;  %s3931_s1 = sadd.s32 4294967294, %s5053_s28  }
  0x4e   : > { %s6148_s24 = sld [smem:[#allocation49_spill]]  ;;  %s5296_s2 = sadd.s32 1, %s5053_s28  }
  0x4f   : > { %s6149_s20 = sld [smem:[#allocation52_spill]]  ;;  %s328_s7 = sadd.s32 1, %s5049_s26 }
  0x50   : > { %s6150_s17 = sld [smem:[#allocation32_spill]]  ;;  %s325_s10 = ssub.s32 %s5053_s28, %s5296_s2 }
  0x51   : > { %s6151_s14 = sld [smem:[#allocation55_spill]]  ;;  %p335_p0 = scmp.ne.s32.totalorder %s5049_s26, %s5045_s23 }
  0x52   : > { %s6152_s13 = sld [smem:[#allocation31_spill]]  ;;  %p326_p1 = scmp.eq.s32.totalorder %s325_s10, 0 }
  0x53   : > { %s6153_s12 = sld [smem:[#allocation43_spill]]  ;;  %p336_p2 = scmp.eq.s32.totalorder %s5053_s28, 0 }
  0x54   : > { %s6154_s9 = sld [smem:[#allocation30_spill]]  ;;  %p341_p3 = scmp.ne.s32.totalorder %s5045_s23, %s5041_s22 }
  0x55   : > { %s6155_s4 = sld [smem:[#allocation54_spill]]  ;;  %p6086_p4 = scmp.eq.s32.totalorder %s5292_s0, 0 }
  0x56   : > { %s6156_s6 = sld [smem:[#allocation42_spill]]  ;;  %p5310_p5 = por %p336_p2, %p335_p0 }
  0x57   : > { %s6157_s19 = sld [smem:[#allocation39_spill]]  ;;  %p5316_p6 = por %p6086_p4, %p341_p3 }
  0x58   : > { %s6158_s5 = sld [smem:[#allocation29_spill]]  ;;  %p6085_p7 = scmp.eq.s32.totalorder %s5292_s0, 1 }
  0x59   : > { %6159 = sst [smem:[#allocation61_spill]] %s5041_s22  ;;  %p865_p8 = scmp.eq.s32.totalorder %s3931_s1, 1 }
  0x5a   : > { %6160 = sst [smem:[#allocation62_spill]] %s5045_s23  ;;  %p3932_p9 = scmp.ge.s32.totalorder %s5053_s28, 1 }
  0x5b   : > { %6161 = sst [smem:[#allocation63_spill]] %s5049_s26  ;;  %p893_p10 = scmp.lt.s32.totalorder %s5053_s28, 3 }
  0x5c   : > { %6162 = sst [smem:[#allocation64_spill]] %s5053_s28  ;;  %p5325_p11 = por %p6085_p7, %p335_p0 }
  0x5d   : > { %6163 = sst [smem:[#allocation65_spill]] %s5292_s0  ;;  %p5329_p12 = por %p865_p8, %p341_p3 }
  0x5e   : > { %6164 = sst [smem:[#allocation66_spill]] %s5296_s2  ;;  %p5333_p13 = pnand %p3932_p9, %p893_p10 }
  0x5f   : > { %s5308_s11 = scalar_select %p326_p1, %s5049_s26, %s328_s7  }
  0x60   : > { %s6167_s16 = scalar_select %p5316_p6, 1, 0 }
  0x61   : > { %6165 = sst [smem:[#allocation67_spill]] %s5308_s11  ;;  %s904_s11 = sshll.u32 %s6158_s5, 4  ;;  %s905_s11 = int_to_ptr.hbm [resolvable:$true] %s904_s11 }
  0x62   : > { %6168 = sst [smem:[#allocation68_spill]] %s6167_s16  ;;  %p4200_p2 = pneg %p5333_p13 }
  0x63   : > { %s6169_s18 = scalar_select %p5325_p11, 1, 0 }
  0x64   : > { %s6171_s7 = scalar_select %p5329_p12, 1, 0 }
  0x65   : > { %6170 = sst [smem:[#allocation69_spill]] %s6169_s18  ;;  %s5086_s1 = smov [#allocation3]  }
  0x66   : > { %6172 = sst [smem:[#allocation70_spill]] %s6171_s7  ;;  %s906_s2 = sshll.u32 %s5086_s1, 4  ;;  %s907_s2 = int_to_ptr.vmem [resolvable:$true] %s906_s2 }
  0x67   : > { %p5343_p0 = pnand %p4200_p2, %p6086_p4  ;;  %p3937_p3 = scmp.ge.s32.totalorder %s5053_s28, 2 }
  0x68   : > { %p4249_p8 = scmp.lt.s32.totalorder %s5053_s28, 2  ;;  %s4553_s7 = sshra.s32 %s905_s11, 4  ;;  %s4554_s7 = int_to_ptr.hbm [resolvable:$true] %s4553_s7 }
  0x69   : > { %s4555_s3 = scalar_lea.hbm %s4554_s7, 16  ;;  %p4557_p10 = pneg %p5343_p0 }
  0x6a   : > { %p4556_p9 = scmp.ne.s32.totalorder %s4554_s7, %s4555_s3  ;;  %s4560_s1 = scalar_lea.hbm %s6158_s5, 16 }
  0x6b   : > { %p4561_p12 = scmp.lt.s32.totalorder %s4554_s7, %s6158_s5  ;;  %p4562_p2 = scmp.lt.s32.totalorder %s4560_s1, %s4555_s3 }
  0x6c   : > { %p4558_p7 = pnand %p4557_p10, %p4556_p9 }
  0x6d   : > { %p4563_p4 = por %p4562_p2, %p4561_p12 }
  0x6e   : > { %p4559_p1 = pneg %p4558_p7 }
  0x70   : > { %p4564_p11 = pnand %p4563_p4, %p4559_p1 }
  0x72   : > { %4567 = shalt.err (!%p4564_p11)
}
  0x73   : > { %s5087_s18 = smov 128   ;;  %s5088_s21 = smov 8  }
  0x74   : > { %4203 = dma.hbm_to_vmem [thread:$0]  (!%p5343_p0), %s905_s11, 256, %s907_s2, [#allocation4], %s5087_s18, %s5087_s18, %s5088_s21  }
  0x75   : > { %p5362_p7 = pnand %p4249_p8, %p5310_p5  ;;  %s1004_s3 = sand.u32 1, %s5053_s28  }
  0x76   : > { %s5368_s7 = sand.u32 1, %s5049_s26   ;;  %s5371_s1 = sshll.u32 %s5053_s28, 4 }
  0x77   : > { %s5374_s5 = sshll.u32 %s5368_s7, 4  ;;  %s1013_s21 = scalar_lea.hbm %s6157_s19, %s5371_s1 }
  0x78   : > { %s1014_s2 = sshll.u32 %s1013_s21, 4  ;;  %s1008_s11 = scalar_lea.vmem [#allocation11], %s5374_s5  ;;  %s1015_s2 = int_to_ptr.hbm [resolvable:$true] %s1014_s2 }
  0x79   : > { %s1016_s15 = sshll.u32 %s1008_s11, 4  ;;  %s5379_s18 = scalar_lea.sflag [#allocation4], %s1004_s3  ;;  %s1017_s15 = int_to_ptr.vmem [resolvable:$true] %s1016_s15 }
  0x7a   : > { %s4583_s29 = sshra.s32 %s1015_s2, 4  ;;  %p5383_p5 = pneg %p5362_p7  ;;  %s4584_s29 = int_to_ptr.hbm [resolvable:$true] %s4583_s29 }
  0x7b   : > { %s4585_s26 = scalar_lea.hbm %s4584_s29, 16  ;;  %s4590_s21 = scalar_lea.hbm %s6157_s19, 32 }
  0x7c   : > { %p4586_p4 = scmp.ne.s32.totalorder %s4584_s29, %s4585_s26  ;;  %p4591_p1 = scmp.lt.s32.totalorder %s4584_s29, %s6157_s19 }
  0x7d   : > { %p4592_p8 = scmp.lt.s32.totalorder %s4590_s21, %s4585_s26 }
  0x7e   : > { %p4588_p11 = pnand %p5383_p5, %p4586_p4 }
  0x7f   : > { %p4593_p9 = por %p4592_p8, %p4591_p1 }
  0x80   : > { %p4589_p12 = pneg %p4588_p11 }
  0x82   : > { %p4594_p2 = pnand %p4593_p9, %p4589_p12 }
  0x84   : > { %4597 = shalt.err (!%p4594_p2)
}
  0x85   : > { %s6101_s3 = smov 64   ;;  %s5090_s11 = smov 4  }
  0x86   : > { %4216 = dma.hbm_to_vmem [thread:$0]  (!%p5362_p7), %s1015_s2, 256, %s1017_s15, %s5379_s18, %s6101_s3, %s6101_s3, %s5090_s11  }
  0x87   : > { %s1044_s29 = scalar_lea.hbm %s6156_s6, %s5053_s28  ;;  %s1041_s26 = scalar_lea.vmem [#allocation12], %s5368_s7 }
  0x88   : > { %s1048_s21 = sshll.u32 %s1041_s26, 4  ;;  %s1046_s19 = sshll.u32 %s1044_s29, 4  ;;  %s1049_s21 = int_to_ptr.vmem [resolvable:$true] %s1048_s21  ;;  %s1047_s19 = int_to_ptr.hbm [resolvable:$true] %s1046_s19 }
  0x89   : > { %s4613_s16 = sshra.s32 %s1047_s19, 4  ;;  %s4620_s0 = scalar_lea.hbm %s6156_s6, 2  ;;  %s4614_s16 = int_to_ptr.hbm [resolvable:$true] %s4613_s16 }
  0x8a   : > { %s4615_s23 = scalar_lea.hbm %s4614_s16, 1  ;;  %p4621_p1 = scmp.lt.s32.totalorder %s4614_s16, %s6156_s6 }
  0x8b   : > { %p4616_p4 = scmp.ne.s32.totalorder %s4614_s16, %s4615_s23  ;;  %p4622_p8 = scmp.lt.s32.totalorder %s4620_s0, %s4615_s23 }
  0x8d   : > { %p4618_p11 = pnand %p4616_p4, %p5383_p5  ;;  %p4623_p9 = por %p4622_p8, %p4621_p1 }
  0x8f   : > { %p4619_p12 = pneg %p4618_p11 }
  0x91   : > { %p4624_p2 = pnand %p4623_p9, %p4619_p12 }
  0x93   : > { %4627 = shalt.err (!%p4624_p2)
}
  0x94   : > { %4219 = dma.hbm_to_vmem [thread:$0]  (!%p5362_p7), %s1047_s19, 16, %s1049_s21, %s5379_s18  }
  0x95   : > { %s1064_s2 = scalar_lea.hbm %s6153_s12, %s5371_s1  ;;  %s1059_s15 = scalar_lea.vmem [#allocation13], %s5374_s5 }
  0x96   : > { %s1067_s29 = sshll.u32 %s1059_s15, 4  ;;  %s1065_s26 = sshll.u32 %s1064_s2, 4  ;;  %s1068_s29 = int_to_ptr.vmem [resolvable:$true] %s1067_s29  ;;  %s1066_s26 = int_to_ptr.hbm [resolvable:$true] %s1065_s26 }
  0x97   : > { %s4643_s23 = sshra.s32 %s1066_s26, 4  ;;  %s4650_s16 = scalar_lea.hbm %s6153_s12, 32  ;;  %s4644_s23 = int_to_ptr.hbm [resolvable:$true] %s4643_s23 }
  0x98   : > { %s4645_s0 = scalar_lea.hbm %s4644_s23, 16  ;;  %p4651_p1 = scmp.lt.s32.totalorder %s4644_s23, %s6153_s12 }
  0x99   : > { %p4646_p4 = scmp.ne.s32.totalorder %s4644_s23, %s4645_s0  ;;  %p4652_p8 = scmp.lt.s32.totalorder %s4650_s16, %s4645_s0 }
  0x9b   : > { %p4648_p11 = pnand %p4646_p4, %p5383_p5  ;;  %p4653_p9 = por %p4652_p8, %p4651_p1 }
  0x9d   : > { %p4649_p12 = pneg %p4648_p11 }
  0x9f   : > { %p4654_p2 = pnand %p4653_p9, %p4649_p12 }
  0xa1   : > { %4657 = shalt.err (!%p4654_p2)
}
  0xa2   : > { %4222 = dma.hbm_to_vmem [thread:$0]  (!%p5362_p7), %s1066_s26, 256, %s1068_s29, %s5379_s18, %s6101_s3, %s6101_s3, %s5090_s11  }
  0xa3   : > { %s1092_s19 = scalar_lea.hbm %s6147_s27, %s5371_s1  ;;  %s1087_s21 = scalar_lea.vmem [#allocation14], %s5374_s5 }
  0xa4   : > { %s1095_s2 = sshll.u32 %s1087_s21, 4  ;;  %s1093_s15 = sshll.u32 %s1092_s19, 4  ;;  %s1096_s2 = int_to_ptr.vmem [resolvable:$true] %s1095_s2  ;;  %s1094_s15 = int_to_ptr.hbm [resolvable:$true] %s1093_s15 }
  0xa5   : > { %s4673_s23 = sshra.s32 %s1094_s15, 4  ;;  %s4680_s16 = scalar_lea.hbm %s6147_s27, 32  ;;  %s4674_s23 = int_to_ptr.hbm [resolvable:$true] %s4673_s23 }
  0xa6   : > { %s4675_s0 = scalar_lea.hbm %s4674_s23, 16  ;;  %p4681_p1 = scmp.lt.s32.totalorder %s4674_s23, %s6147_s27 }
  0xa7   : > { %p4676_p4 = scmp.ne.s32.totalorder %s4674_s23, %s4675_s0  ;;  %p4682_p8 = scmp.lt.s32.totalorder %s4680_s16, %s4675_s0 }
  0xa9   : > { %p4678_p11 = pnand %p4676_p4, %p5383_p5  ;;  %p4683_p9 = por %p4682_p8, %p4681_p1 }
  0xab   : > { %p4679_p12 = pneg %p4678_p11 }
  0xad   : > { %p4684_p2 = pnand %p4683_p9, %p4679_p12 }
  0xaf   : > { %4687 = shalt.err (!%p4684_p2)
}
  0xb0   : > { %4225 = dma.hbm_to_vmem [thread:$0]  (!%p5362_p7), %s1094_s15, 256, %s1096_s2, %s5379_s18, %s6101_s3, %s6101_s3, %s5090_s11  }
  0xb1   : > { %s1120_s29 = scalar_lea.hbm %s6146_s30, %s5371_s1  ;;  %s1115_s26 = scalar_lea.vmem [#allocation15], %s5374_s5 }
  0xb2   : > { %s1123_s19 = sshll.u32 %s1115_s26, 4  ;;  %s1121_s21 = sshll.u32 %s1120_s29, 4  ;;  %s1124_s19 = int_to_ptr.vmem [resolvable:$true] %s1123_s19  ;;  %s1122_s21 = int_to_ptr.hbm [resolvable:$true] %s1121_s21 }
  0xb3   : > { %s4703_s23 = sshra.s32 %s1122_s21, 4  ;;  %s4710_s16 = scalar_lea.hbm %s6146_s30, 32  ;;  %s4704_s23 = int_to_ptr.hbm [resolvable:$true] %s4703_s23 }
  0xb4   : > { %s4705_s0 = scalar_lea.hbm %s4704_s23, 16  ;;  %p4711_p1 = scmp.lt.s32.totalorder %s4704_s23, %s6146_s30 }
  0xb5   : > { %p4706_p4 = scmp.ne.s32.totalorder %s4704_s23, %s4705_s0  ;;  %p4712_p8 = scmp.lt.s32.totalorder %s4710_s16, %s4705_s0 }
  0xb7   : > { %p4708_p11 = pnand %p4706_p4, %p5383_p5  ;;  %p4713_p9 = por %p4712_p8, %p4711_p1 }
  0xb9   : > { %p4709_p12 = pneg %p4708_p11 }
  0xbb   : > { %p4714_p2 = pnand %p4713_p9, %p4709_p12 }
  0xbd   : > { %4717 = shalt.err (!%p4714_p2)
}
  0xbe   : > { %4228 = dma.hbm_to_vmem [thread:$0]  (!%p5362_p7), %s1122_s21, 256, %s1124_s19, %s5379_s18, %s6101_s3, %s6101_s3, %s5090_s11  }
  0xbf   : > { %s1148_s2 = scalar_lea.hbm %s6148_s24, %s5371_s1  ;;  %s1143_s15 = scalar_lea.vmem [#allocation16], %s5374_s5 }
  0xc0   : > { %s1151_s29 = sshll.u32 %s1143_s15, 4  ;;  %s1149_s26 = sshll.u32 %s1148_s2, 4  ;;  %s1152_s29 = int_to_ptr.vmem [resolvable:$true] %s1151_s29  ;;  %s1150_s26 = int_to_ptr.hbm [resolvable:$true] %s1149_s26 }
  0xc1   : > { %s4733_s23 = sshra.s32 %s1150_s26, 4  ;;  %s4740_s16 = scalar_lea.hbm %s6148_s24, 32  ;;  %s4734_s23 = int_to_ptr.hbm [resolvable:$true] %s4733_s23 }
  0xc2   : > { %s4735_s0 = scalar_lea.hbm %s4734_s23, 16  ;;  %p4741_p1 = scmp.lt.s32.totalorder %s4734_s23, %s6148_s24 }
  0xc3   : > { %p4736_p4 = scmp.ne.s32.totalorder %s4734_s23, %s4735_s0  ;;  %p4742_p8 = scmp.lt.s32.totalorder %s4740_s16, %s4735_s0 }
  0xc5   : > { %p4738_p11 = pnand %p4736_p4, %p5383_p5  ;;  %p4743_p9 = por %p4742_p8, %p4741_p1 }
  0xc7   : > { %p4739_p12 = pneg %p4738_p11 }
  0xc9   : > { %p4744_p2 = pnand %p4743_p9, %p4739_p12 }
  0xcb   : > { %4747 = shalt.err (!%p4744_p2)
}
  0xcc   : > { %4231 = dma.hbm_to_vmem [thread:$0]  (!%p5362_p7), %s1150_s26, 256, %s1152_s29, %s5379_s18, %s6101_s3, %s6101_s3, %s5090_s11  }
  0xcd   : > { %s1179_s19 = scalar_lea.hbm %s6149_s20, %s5053_s28  ;;  %s1176_s21 = scalar_lea.vmem [#allocation17], %s5368_s7 }
  0xce   : > { %s1183_s2 = sshll.u32 %s1176_s21, 4  ;;  %s1181_s15 = sshll.u32 %s1179_s19, 4  ;;  %s1184_s2 = int_to_ptr.vmem [resolvable:$true] %s1183_s2  ;;  %s1182_s15 = int_to_ptr.hbm [resolvable:$true] %s1181_s15 }
  0xcf   : > { %s918_s23 = sshll.u32 %s6154_s9, 4  ;;  %s4763_s0 = sshra.s32 %s1182_s15, 4  ;;  %s4764_s0 = int_to_ptr.hbm [resolvable:$true] %s4763_s0  ;;  %s919_s23 = int_to_ptr.hbm [resolvable:$true] %s918_s23 }
  0xd0   : > { %s4765_s16 = scalar_lea.hbm %s4764_s0, 1  ;;  %s4770_s6 = scalar_lea.hbm %s6149_s20, 2 }
  0xd1   : > { %p4766_p4 = scmp.ne.s32.totalorder %s4764_s0, %s4765_s16  ;;  %p4771_p1 = scmp.lt.s32.totalorder %s4764_s0, %s6149_s20 }
  0xd2   : > { %p4772_p8 = scmp.lt.s32.totalorder %s4770_s6, %s4765_s16 }
  0xd3   : > { %p4768_p11 = pnand %p4766_p4, %p5383_p5 }
  0xd4   : > { %p4773_p9 = por %p4772_p8, %p4771_p1 }
  0xd5   : > { %p4769_p12 = pneg %p4768_p11 }
  0xd7   : > { %p4774_p2 = pnand %p4773_p9, %p4769_p12 }
  0xd9   : > { %4777 = shalt.err (!%p4774_p2)
}
  0xda   : > { %4234 = dma.hbm_to_vmem [thread:$0]  (!%p5362_p7), %s1182_s15, 16, %s1184_s2, %s5379_s18  }
  0xdb   : > { %s5091_s29 = smov [#allocation6]   ;;  %s1202_s19 = scalar_lea.hbm %s6155_s4, %s5053_s28 }
  0xdc   : > { %s920_s26 = sshll.u32 %s5091_s29, 4  ;;  %s4793_s21 = sshra.s32 %s919_s23, 4  ;;  %s921_s26 = int_to_ptr.vmem [resolvable:$true] %s920_s26  ;;  %s4794_s21 = int_to_ptr.hbm [resolvable:$true] %s4793_s21 }
  0xdd   : > { %s4795_s6 = scalar_lea.hbm %s4794_s21, 16  ;;  %s4800_s0 = scalar_lea.hbm %s6154_s9, 16 }
  0xde   : > { %p4796_p4 = scmp.ne.s32.totalorder %s4794_s21, %s4795_s6  ;;  %p4801_p1 = scmp.lt.s32.totalorder %s4794_s21, %s6154_s9 }
  0xdf   : > { %p4802_p8 = scmp.lt.s32.totalorder %s4800_s0, %s4795_s6 }
  0xe0   : > { %p4798_p11 = pnand %p4796_p4, %p4557_p10 }
  0xe1   : > { %p4803_p9 = por %p4802_p8, %p4801_p1 }
  0xe2   : > { %p4799_p12 = pneg %p4798_p11 }
  0xe4   : > { %p4804_p2 = pnand %p4803_p9, %p4799_p12 }
  0xe6   : > { %4807 = shalt.err (!%p4804_p2)
}
  0xe7   : > { %4206 = dma.hbm_to_vmem [thread:$0]  (!%p5343_p0), %s919_s23, 256, %s921_s26, [#allocation7], %s6101_s3, %s6101_s3, %s5090_s11  }
  0xe8   : > { %s1204_s2 = sshll.u32 %s1202_s19, 4  ;;  %s1199_s15 = scalar_lea.vmem [#allocation18], %s5368_s7  ;;  %s1205_s2 = int_to_ptr.hbm [resolvable:$true] %s1204_s2 }
  0xe9   : > { %s1206_s16 = sshll.u32 %s1199_s15, 4  ;;  %s4823_s29 = sshra.s32 %s1205_s2, 4  ;;  %s1207_s16 = int_to_ptr.vmem [resolvable:$true] %s1206_s16  ;;  %s4824_s29 = int_to_ptr.hbm [resolvable:$true] %s4823_s29 }
  0xea   : > { %s4825_s21 = scalar_lea.hbm %s4824_s29, 1  ;;  %s4830_s6 = scalar_lea.hbm %s6155_s4, 2 }
  0xeb   : > { %p4826_p4 = scmp.ne.s32.totalorder %s4824_s29, %s4825_s21  ;;  %p4831_p1 = scmp.lt.s32.totalorder %s4824_s29, %s6155_s4 }
  0xec   : > { %p4832_p8 = scmp.lt.s32.totalorder %s4830_s6, %s4825_s21 }
  0xed   : > { %p4828_p11 = pnand %p4826_p4, %p5383_p5 }
  0xee   : > { %p4833_p9 = por %p4832_p8, %p4831_p1 }
  0xef   : > { %p4829_p12 = pneg %p4828_p11 }
  0xf1   : > { %p4834_p2 = pnand %p4833_p9, %p4829_p12 }
  0xf3   : > { %4837 = shalt.err (!%p4834_p2)
}
  0xf4   : > { %4237 = dma.hbm_to_vmem [thread:$0]  (!%p5362_p7), %s1205_s2, 16, %s1207_s16, %s5379_s18  }
  0xf5   : > { %s932_s7 = sshll.u32 %s6152_s13, 4  ;;  %s5092_s23 = smov [#allocation8]   ;;  %s933_s7 = int_to_ptr.hbm [resolvable:$true] %s932_s7 }
  0xf6   : > { %s934_s26 = sshll.u32 %s5092_s23, 4  ;;  %s946_s19 = sshll.u32 %s6150_s17, 4  ;;  %s935_s26 = int_to_ptr.vmem [resolvable:$true] %s934_s26  ;;  %s947_s19 = int_to_ptr.hbm [resolvable:$true] %s946_s19 }
  0xf7   : > { %s4853_s0 = sshra.s32 %s933_s7, 4  ;;  %s4860_s29 = scalar_lea.hbm %s6152_s13, 2  ;;  %s4854_s0 = int_to_ptr.hbm [resolvable:$true] %s4853_s0 }
  0xf8   : > { %s4855_s15 = scalar_lea.hbm %s4854_s0, 2  ;;  %p4861_p1 = scmp.lt.s32.totalorder %s4854_s0, %s6152_s13 }
  0xf9   : > { %p4856_p4 = scmp.ne.s32.totalorder %s4854_s0, %s4855_s15  ;;  %p4862_p8 = scmp.lt.s32.totalorder %s4860_s29, %s4855_s15 }
  0xfb   : > { %p4858_p11 = pnand %p4856_p4, %p4557_p10  ;;  %p4863_p9 = por %p4862_p8, %p4861_p1 }
  0xfd   : > { %p4859_p12 = pneg %p4858_p11 }
  0xff   : > { %p4864_p2 = pnand %p4863_p9, %p4859_p12 }
 0x101   : > { %4867 = shalt.err (!%p4864_p2)
}
 0x102   : > { %s5093_s2 = smov 16   ;;  %s5094_s16 = smov 1  }
 0x103   : > { %4209 = dma.hbm_to_vmem [thread:$0]  (!%p5343_p0), %s933_s7, 32, %s935_s26, [#allocation7], %s5093_s2, %s5093_s2, %s5094_s16  }
 0x104   : > { %s5095_s21 = smov [#allocation9]   ;;  %s1222_s23 = scalar_lea.hbm %s6151_s14, %s5371_s1 }
 0x105   : > { %s948_s6 = sshll.u32 %s5095_s21, 4  ;;  %s4883_s0 = sshra.s32 %s947_s19, 4  ;;  %s949_s6 = int_to_ptr.vmem [resolvable:$true] %s948_s6  ;;  %s4884_s0 = int_to_ptr.hbm [resolvable:$true] %s4883_s0 }
 0x106   : > { %s4885_s15 = scalar_lea.hbm %s4884_s0, 2  ;;  %s4890_s29 = scalar_lea.hbm %s6150_s17, 2 }
 0x107   : > { %p4886_p4 = scmp.ne.s32.totalorder %s4884_s0, %s4885_s15  ;;  %p4891_p1 = scmp.lt.s32.totalorder %s4884_s0, %s6150_s17 }
 0x108   : > { %p4892_p8 = scmp.lt.s32.totalorder %s4890_s29, %s4885_s15 }
 0x109   : > { %p4888_p11 = pnand %p4886_p4, %p4557_p10 }
 0x10a   : > { %p4893_p9 = por %p4892_p8, %p4891_p1 }
 0x10b   : > { %p4889_p12 = pneg %p4888_p11 }
 0x10d   : > { %p4894_p2 = pnand %p4893_p9, %p4889_p12 }
 0x10f   : > { %4897 = shalt.err (!%p4894_p2)
}
 0x110   : > { %4212 = dma.hbm_to_vmem [thread:$0]  (!%p5343_p0), %s947_s19, 32, %s949_s6, [#allocation10], %s5093_s2, %s5093_s2, %s5094_s16  }
 0x111   : > { %s1223_s1 = sshll.u32 %s1222_s23, 4  ;;  %s1217_s7 = scalar_lea.vmem [#allocation19], %s5374_s5  ;;  %s1224_s1 = int_to_ptr.hbm [resolvable:$true] %s1223_s1 }
 0x112   : > { %s1225_s26 = sshll.u32 %s1217_s7, 4  ;;  %s4913_s21 = sshra.s32 %s1224_s1, 4  ;;  %s1226_s26 = int_to_ptr.vmem [resolvable:$true] %s1225_s26  ;;  %s4914_s21 = int_to_ptr.hbm [resolvable:$true] %s4913_s21 }
 0x113   : > { %s4915_s3 = scalar_lea.hbm %s4914_s21, 16  ;;  %s4920_s0 = scalar_lea.hbm %s6151_s14, 32 }
 0x114   : > { %p4916_p10 = scmp.ne.s32.totalorder %s4914_s21, %s4915_s3  ;;  %p4921_p12 = scmp.lt.s32.totalorder %s4914_s21, %s6151_s14 }
 0x115   : > { %p4922_p1 = scmp.lt.s32.totalorder %s4920_s0, %s4915_s3 }
 0x116   : > { %p4918_p4 = pnand %p4916_p10, %p5383_p5 }
 0x117   : > { %p4923_p8 = por %p4922_p1, %p4921_p12 }
 0x118   : > { %p4919_p11 = pneg %p4918_p4 }
 0x11a   : > { %p4924_p9 = pnand %p4923_p8, %p4919_p11 }
 0x11c   : > { %4927 = shalt.err (!%p4924_p9)
}
 0x11d   : > { %s6177_s5 = smov 64   ;;  %1257 = sbr.rel (%p5333_p13) target bundleno = 3691 (0xe6b), region = 140 }
 0x11e   : > { %4240 = dma.hbm_to_vmem [thread:$0]  (!%p5362_p7), %s1224_s1, 256, %s1226_s26, %s5379_s18, %s6177_s5, %s6177_s5, %s5090_s11  }
 0x122   : > { %s6178_s22 = sld [smem:[#allocation65_spill]] }
 0x128   : > { %p6179_p0 = scmp.eq.s32.totalorder %s6178_s22, 0 }
 0x12a   : > { %5016 = dma.done.wait (%p6179_p0), [#allocation4], 256   ;;  %p6180_p5 = pmov %p6179_p0 }
 0x12b   : > { %p6181_p2 = pmov %p6179_p0 }
 0x12c   : > { %5018 = vsyncadd (%p6180_p5), [#allocation4], 4294967040 }
 0x12d   : > { %5020 = dma.done.wait (%p6181_p2), [#allocation7], 288   ;;  %p6182_p10 = pmov %p6179_p0 }
 0x12e   : > { %p6183_p4 = pmov %p6179_p0 }
 0x12f   : > { %5022 = vsyncadd (%p6182_p10), [#allocation7], 4294967008 }
 0x130   : > { %5024 = dma.done.wait (%p6183_p4), [#allocation10], 32   ;;  %p6184_p7 = pmov %p6179_p0 }
 0x131   : > { %s6185_s25 = sld [smem:[#allocation62_spill]]  ;;  %s1279_s10 = sand.u32 1, %s6178_s22  }
 0x132   : > { %5026 = vsyncadd (%p6184_p7), [#allocation10], 4294967264  ;;  %s1280_s11 = scalar_lea.sflag [#allocation4], %s1279_s10 }
 0x137   : > { %s5535_s18 = sand.u32 1, %s6185_s25  }
 0x138   : > { %s5538_s3 = sshll.u32 %s5535_s18, 4 }
 0x139   : > { %5028 = dma.done.wait (%p5316_p6), %s1280_s11, 1584  }
 0x13a   : > { %5030 = vsyncadd (%p5316_p6), %s1280_s11, 4294965712  ;;  %s6188_s16 = sld [smem:[#allocation33_spill]]  ;;  %p1536_p13 = scmp.lt.s32.totalorder %s6178_s22, 1 }
 0x13b   : > { %s6189_s6 = sld [smem:[#allocation35_spill]]  ;;  %s1292_s29 = scalar_lea.vmem [#allocation12], %s5535_s18 }
 0x13c   : > { %s6191_s15 = sld [smem:[#allocation37_spill]]  ;;  %s1302_s24 = scalar_lea.vmem [#allocation13], %s5538_s3 }
 0x13d   : > { %s6196_s21 = sld [smem:[#allocation46_spill]]  ;;  %s1312_s1 = scalar_lea.vmem [#allocation14], %s5538_s3 }
 0x13e   : > { %s6197_s0 = sld [smem:[#allocation48_spill]]  ;;  %s1322_s27 = scalar_lea.vmem [#allocation15], %s5538_s3 }
 0x13f   : > { %s6198_s5 = sld [smem:[#allocation50_spill]]  ;;  %s1332_s7 = scalar_lea.vmem [#allocation16], %s5538_s3 }
 0x140   : > { %s6199_s25 = sld [smem:[#allocation51_spill]]  ;;  %s1341_s30 = scalar_lea.vmem [#allocation17], %s5535_s18 }
 0x141   : > { %s6200_s10 = sld [smem:[#allocation53_spill]]  ;;  %s1350_s26 = scalar_lea.vmem [#allocation18], %s5535_s18 }
 0x142   : > { %s5547_s19 = scalar_select %p1536_p13, %s6178_s22, 1 }
 0x143   : > { %s6201_s8 = sld [smem:[#allocation56_spill]]  ;;  %s1360_s2 = scalar_lea.vmem [#allocation19], %s5538_s3 }
 0x144   : > { %s4131_s11 = sshll.u32 %s5547_s19, 4  ;;  %s6202_s9 = sld [smem:[#allocation58_spill]] }
 0x145   : > { %s5553_s12 = scalar_lea.vmem %s6188_s16, %s4131_s11  ;;  %s6203_s13 = sld [smem:[#allocation57_spill]] }
 0x146   : > { %s5556_s14 = scalar_lea.vmem %s6189_s6, %s4131_s11  ;;  %s5561_s20 = scalar_lea.vmem %s6191_s15, %s4131_s11 }
 0x147   : > { %6204 = sst [smem:[#allocation71_spill]] %s5556_s14  ;;  %s1571_s4 = scalar_lea.vmem %s6196_s21, %s5547_s19 }
 0x148   : > { %s1574_s16 = scalar_lea.vmem %s6197_s0, %s5547_s19  ;;  %s1577_s6 = scalar_lea.vmem %s6198_s5, %s5547_s19 }
 0x149   : > { %s1580_s28 = scalar_lea.vmem %s6199_s25, %s5547_s19  ;;  %s1583_s14 = scalar_lea.vmem %s6200_s10, %s5547_s19 }
 0x14a   : > { %s1586_s23 = scalar_lea.vmem %s6201_s8, %s5547_s19  ;;  %s4134_s17 = sshll.u32 %s5547_s19, 5 }
 0x14b   : > { %s1594_s15 = scalar_lea.vmem %s6202_s9, %s5547_s19  ;;  %s5587_s11 = scalar_lea.vmem %s6203_s13, %s4134_s17 }
 0x14c   : > { %s5598_s21 = scalar_lea.vmem [#allocation20], %s5538_s3  ;;  %p6205_p6 = scmp.ne.s32.totalorder %s6178_s22, 0 }
 0x14e   : > { %1599 = sbr.rel (%p6205_p6) target bundleno = 342 (0x156), region = 196 }
 0x153   : > { %v1600_v0 = vld [vmem:[#allocation3] sm:$0xff]  ;;  %vm1602_vm0 = vcmask 261120   ;;  %v1601_v1 = vld [vmem:[#allocation3 + $0x8] sm:$0xff] }
 0x154   : > { %1603 = vst.msk [vmem:[#allocation2] sm:$0xff] %vm1602_vm0, %v1600_v0 }
 0x155   : > { %1604 = vst.msk [vmem:[#allocation2 + $0x8] sm:$0xff] %vm1602_vm0, %v1601_v1 }
 0x156 PF: > { %s6206_s9 = sld [smem:[#allocation71_spill]]  ;;  %v4138_v2 = vld [vmem:[%s5553_s12 + $0x8] sm:$0xff]  ;;  %v4137_v4 = vld [vmem:[%s5553_s12] sm:$0xff]  ;;  %vm1671_vm1 = vcmask 261120   ;;  %vm1825_vm2 = vcmask 64512   ;;  %s5096_s0 = smov 112   ;;  %v1611_v51 = vlaneseq }
 0x157   : > { %s6207_s13 = sld [smem:[#allocation34_spill]]  ;;  %1681 = vmatpush.bf16.msra.mxu0 %v4138_v2  ;;  %s5097_s5 = smov 120   ;;  %v4142_v33 = vld [vmem:[%s5561_s20 + $0x8] sm:$0xff]  ;;  %v4141_v34 = vld [vmem:[%s5561_s20] sm:$0xff]  ;;  %v4457_v63 = vld [vmem:[#allocation8] ss:$0 sm:$0xff] }
 0x158   : > { %s6208_s17 = sld [smem:[#allocation36_spill]]  ;;  %s5098_s25 = smov 104   ;;  %1741 = vmatpush.bf16.msra.mxu2 %v4142_v33  ;;  %v1612_v54 = vshrl.u32 %v1611_v51, 7  ;;  %v1614_v55 = vand.u32 127, %v1611_v51  ;;  %v5099_v1 = vmov 0.0   ;;  %vm2085_vm4 = vcmask 1043456  }
 0x159   : > { %s6211_s20 = sld [smem:[#allocation38_spill]]  ;;  %s5100_s8 = smov 8   ;;  %vm2261_vm5 = vcmask 130048   ;;  %vm2264_vm6 = vcmask 195584  }
 0x15a   : > { %vm1615_vm3 = vcmp.gt.s32.totalorder %v1614_v55, %v1612_v54 }
 0x15b   : > { %v5605_v5 = vld [vmem:[#allocation2] sm:$0xff]  ;;  %1682 = vmatpush.bf16.msra.mxu0 %v4137_v4  ;;  %v1616_v2 = vsel %vm1615_vm3, -1e+09, %v5099_v1  ;;  %v4458_v4 = vld [vmem:[#allocation8 + $0x1] ss:$0 sm:$0xff] }
 0x15c   : > { %v4140_v3 = vld [vmem:[%s6206_s9 + $0x8] sm:$0xff]  ;;  %v4139_v7 = vld [vmem:[%s6206_s9] sm:$0xff]  ;;  %v1649_v8 = vpack.c.bf16 %v5605_v5, %v5605_v5  ;;  %1742 = vmatpush.bf16.msra.mxu2 %v4141_v34  ;;  %s5101_s9 = smov 16  }
 0x15d   : > { %v5607_v6 = vld [vmem:[#allocation2 + $0x8] sm:$0xff]  ;;  %1712 = vmatpush.bf16.msra.mxu1 %v4140_v3  ;;  %s6209_s12 = scalar_lea.vmem %s6207_s13, %s5547_s19  ;;  %s5102_s13 = smov 24  }
 0x15e   : > { %v1650_v9 = vpack.c.bf16 %v5607_v6, %v5607_v6  ;;  %v1656_v10 = vunpack.c.l.b16 %v1649_v8  ;;  %v4455_v13 = vld [vmem:[%s6209_s12] ss:$0 sm:$0xff]  ;;  %s6210_s22 = scalar_lea.vmem %s6208_s17, %s5547_s19  ;;  %v1626_v8 = vadd.f32 %v4458_v4, %v1616_v2  ;;  %s6213_s17 = scalar_lea.vmem [#allocation11], %s5538_s3 }
 0x15f   : > { %v4456_v14 = vld [vmem:[%s6210_s22] ss:$0 sm:$0xff]  ;;  %s6212_s10 = scalar_lea.vmem %s6211_s20, %s5547_s19  ;;  %s6214_s12 = smov %s6213_s17 }
 0x160   : > { %v1657_v11 = vunpack.c.l.b16 %v1650_v9  ;;  %s6215_s22 = sld [smem:[#allocation40_spill]] }
 0x161   : > { %1713 = vmatpush.bf16.msra.mxu1 %v4139_v7  ;;  %v1625_v7 = vadd.f32 %v4457_v63, %v1616_v2  ;;  %s6228_s3 = sld [smem:[#allocation65_spill]] }
 0x162   : > { %v1658_v12 = vpack.c.b16 %v1657_v11, %v1656_v10 }
 0x164   : > { %3985 = vmatmul.msk.bf16.vlgmr.msra.gmra.mxu0 %vm1671_vm1, %v1658_v12  ;;  %3994 = vmatmul.msk.bf16.vlgmr.msra.gmra.mxu1 %vm1671_vm1, %v1658_v12 }
 0x165   : > { %4003 = vmatmul.msk.bf16.vlgmr.msra.gmra.mxu2 %vm1671_vm1, %v1658_v12 }
 0x166   : > { %s6216_s20 = scalar_lea.vmem %s6215_s22, %s5547_s19 }
 0x167   : > { %p4117_p11 = scmp.ne.s32.totalorder %s6228_s3, 1 }
 0x1e1   : > { %v1684_v15 = vpop.f32.mrf.mxu0  ;;  %v1715_v16 = vpop.f32.mrf.mxu1 }
 0x1e2   : > { %v1685_v17 = vadd.f32 %v4455_v13, %v1684_v15  ;;  %v1716_v18 = vadd.f32 %v4456_v14, %v1715_v16 }
 0x1e4   : > { %v1689_v19 = vmul.f32 0.35355338, %v1685_v17  ;;  %1777 = vrot.lane.b32.xlu1 %v1716_v18, %s5096_s0  ;;  %v1817_v20 = vpack.c.bf16 %v1716_v18, %v1716_v18 }
 0x1e6   : > { %1751 = vrot.lane.b32.xlu2 %v1689_v19, %s5097_s5  ;;  %v1830_v21 = vsel %vm1825_vm2, %v1817_v20, 0  ;;  %v1809_v27 = vpack.c.bf16 %v1689_v19, %v1689_v19 }
 0x1e7   : > { %1839 = vmatpush.bf16.xpose.msra.mxu3 %v1830_v21 }
 0x1e9   : > { %v1686_v22 = vpop.f32.mrf.mxu0  ;;  %v1717_v23 = vpop.f32.mrf.mxu1 }
 0x1ea   : > { %v1687_v24 = vadd.f32 %v4455_v13, %v1686_v22  ;;  %v1718_v25 = vadd.f32 %v4456_v14, %v1717_v23  ;;  %v1744_v22 = vpop.f32.mrf.mxu2  ;;  %v4459_v23 = vld [vmem:[%s6212_s10] ss:$0 sm:$0xff] }
 0x1ec   : > { %1773 = vrot.lane.b32.xlu0 %v1718_v25, %s5097_s5  ;;  %1785 = vrot.lane.b32.xlu1 %v1718_v25, %s5098_s25  ;;  %v4345_v26 = vpack.i.bf16 %v1718_v25, %v1689_v19  ;;  %v1818_v28 = vpack.c.bf16 %v1718_v25, %v1718_v25  ;;  %v1690_v29 = vmul.f32 0.35355338, %v1687_v24  ;;  %v5656_v24 = vadd.f32 %v4459_v23, %v1744_v22 }
 0x1ee   : > { %4346 = vrot.lane.b32.xlu2 %v4345_v26, %s5096_s0  ;;  %4004 = vmatmul.msk.bf16.vlgmr.msra.gmra.mxu3 %vm1825_vm2, %v1809_v27  ;;  %v1849_v30 = vsel %vm1825_vm2, %v1818_v28, 0  ;;  %v4340_v31 = vpack.i.bf16 %v1716_v18, %v1690_v29  ;;  %v1810_v32 = vpack.c.bf16 %v1690_v29, %v1690_v29  ;;  %v2074_v27 = vpack.c.bf16 %v5656_v24, %v5656_v24 }
 0x1ef   : > { %1858 = vmatpush.bf16.xpose.msrb.mxu0 %v1849_v30 }
 0x1f2   : > { %v1746_v25 = vpop.f32.mrf.mxu2 }
 0x1f3   : > { %v5658_v26 = vadd.f32 %v4459_v23, %v1746_v25 }
 0x1f4   : > { %1783 = vrot.lane.b32.xlu1 %v1716_v18, %s5098_s25  ;;  %4341 = vrot.lane.b32.xlu0 %v4340_v31, %s5097_s5 }
 0x1f5   : > { %v2075_v28 = vpack.c.bf16 %v5658_v26, %v5658_v26  ;;  %v4350_v1 = vpack.i.bf16 %v5656_v24, %v5658_v26 }
 0x1f6   : > { %4005 = vmatmul.msk.bf16.vlgmr.msrb.gmra.mxu0 %vm1825_vm2, %v1810_v32  ;;  %1759 = vrot.lane.b32.xlu2 %v1690_v29, %s5096_s0 }
 0x1f7   : > { %v2106_v30 = vsel %vm2085_vm4, %v2075_v28, 0 }
 0x1fc   : > { %1765 = vrot.lane.b32.xlu0 %v1690_v29, %s5098_s25  ;;  %v2087_v29 = vsel %vm2085_vm4, %v2074_v27, 0  ;;  %v4355_v27 = vpack.i.bf16 %v5658_v26, %v5656_v24 }
 0x204   : > { %1763 = vrot.lane.b32.xlu0 %v1689_v19, %s5098_s25 }
 0x240   : > { %v1752_v35 = vpop.permute.xlu2 %1751 }
 0x241   : > { %v1811_v9 = vpack.c.bf16 %v1752_v35, %v1752_v35 }
 0x248   : > { %v4347_v36 = vpop.permute.xlu2 %4346 }
 0x249   : > { %v4349_v37 = vunpack.i.h.bf16 %v4347_v36  ;;  %v4348_v45 = vunpack.i.l.bf16 %v4347_v36 }
 0x24b   : > { %v1822_v38 = vpack.c.bf16 %v4349_v37, %v4349_v37  ;;  %v1813_v48 = vpack.c.bf16 %v4348_v45, %v4348_v45 }
 0x24d   : > { %v1925_v39 = vsel %vm1825_vm2, %v1822_v38, 0 }
 0x24e   : > { %1934 = vmatpush.bf16.xpose.msra.mxu0 %v1925_v39 }
 0x250   : > { %v1760_v40 = vpop.permute.xlu2 %1759 }
 0x251   : > { %v1814_v41 = vpack.c.bf16 %v1760_v40, %v1760_v40 }
 0x255   : > { %4009 = vmatmul.msk.bf16.vlgmr.msra.gmra.mxu0 %vm1825_vm2, %v1814_v41 }
 0x256   : > { %v1778_v42 = vpop.permute.xlu1 %1777  ;;  %2115 = vmatpush.bf16.msrb.mxu0 %v2106_v30 }
 0x257   : > { %v1821_v43 = vpack.c.bf16 %v1778_v42, %v1778_v42 }
 0x259   : > { %v1906_v44 = vsel %vm1825_vm2, %v1821_v43, 0 }
 0x25a   : > { %1915 = vmatpush.bf16.xpose.msrb.mxu3 %v1906_v44 }
 0x25e   : > { %v1774_v46 = vpop.permute.xlu0 %1773  ;;  %v1786_v47 = vpop.permute.xlu1 %1785 }
 0x25f   : > { %v1820_v49 = vpack.c.bf16 %v1774_v46, %v1774_v46  ;;  %v1824_v50 = vpack.c.bf16 %v1786_v47, %v1786_v47 }
 0x261   : > { %v1963_v52 = vsel %vm1825_vm2, %v1824_v50, 0  ;;  %4008 = vmatmul.msk.bf16.vlgmr.msrb.gmra.mxu3 %vm1825_vm2, %v1813_v48  ;;  %v1887_v53 = vsel %vm1825_vm2, %v1820_v49, 0 }
 0x262   : > { %1896 = vmatpush.bf16.xpose.msrb.mxu2 %v1887_v53  ;;  %2096 = vmatpush.bf16.msra.mxu3 %v2087_v29 }
 0x266   : > { %v1784_v56 = vpop.permute.xlu1 %1783  ;;  %v4342_v57 = vpop.permute.xlu0 %4341 }
 0x267   : > { %v4344_v58 = vunpack.i.h.bf16 %v4342_v57  ;;  %v4343_v59 = vunpack.i.l.bf16 %v4342_v57  ;;  %v1823_v60 = vpack.c.bf16 %v1784_v56, %v1784_v56 }
 0x269   : > { %v1819_v61 = vpack.c.bf16 %v4344_v58, %v4344_v58  ;;  %v1812_v62 = vpack.c.bf16 %v4343_v59, %v4343_v59  ;;  %v1944_v3 = vsel %vm1825_vm2, %v1823_v60, 0 }
 0x26a   : > { %1972 = vmatpush.bf16.xpose.msra.mxu2 %v1963_v52 }
 0x26b   : > { %4007 = vmatmul.msk.bf16.vlgmr.msrb.gmra.mxu2 %vm1825_vm2, %v1812_v62  ;;  %v1868_v0 = vsel %vm1825_vm2, %v1819_v61, 0 }
 0x26c   : > { %1877 = vmatpush.bf16.xpose.msrb.mxu1 %v1868_v0 }
 0x26e   : > { %v1766_v13 = vpop.permute.xlu0 %1765 }
 0x26f   : > { %v1816_v17 = vpack.c.bf16 %v1766_v13, %v1766_v13 }
 0x271   : > { %v1841_v10 = vpop.f32.mrf.mxu3 }
 0x272   : > { %v1842_v11 = vadd.f32 %v1841_v10, %v1625_v7 }
 0x273   : > { %v1860_v12 = vpop.f32.mrf.mxu0  ;;  %4006 = vmatmul.msk.bf16.vlgmr.msrb.gmra.mxu1 %vm1825_vm2, %v1811_v9 }
 0x274   : > { %1953 = vmatpush.bf16.xpose.msra.mxu1 %v1944_v3  ;;  %v1861_v14 = vadd.f32 %v1860_v12, %v1626_v8  ;;  %v1978_v15 = vsel %vm1825_vm2, %v1842_v11, -inf }
 0x275   : > { %1979 = vmax.xlane.f32.xlu1 %v1978_v15 }
 0x276   : > { %v1981_v16 = vsel %vm1825_vm2, %v1861_v14, -inf  ;;  %v1764_v20 = vpop.permute.xlu0 %1763 }
 0x277   : > { %1982 = vmax.xlane.f32.xlu0 %v1981_v16  ;;  %v1815_v21 = vpack.c.bf16 %v1764_v20, %v1764_v20 }
 0x279   : > { %v1843_v18 = vpop.f32.mrf.mxu3 }
 0x27b   : > { %v1862_v19 = vpop.f32.mrf.mxu0  ;;  %4011 = vmatmul.msk.bf16.vlgmr.msra.gmra.mxu2 %vm1825_vm2, %v1816_v17 }
 0x283   : > { %4010 = vmatmul.msk.bf16.vlgmr.msra.gmra.mxu1 %vm1825_vm2, %v1815_v21 }
 0x2d2   : > { %v1936_v31 = vpop.f32.mrf.mxu0 }
 0x2d3   : > { %v5666_v32 = vadd.f32 %v1936_v31, %v1626_v8 }
 0x2d5   : > { %v1993_v33 = vsel %vm1825_vm2, %v5666_v32, -inf }
 0x2d6   : > { %1994 = vmax.xlane.f32.xlu0 %v1993_v33 }
 0x2da   : > { %v1938_v34 = vpop.f32.mrf.mxu0 }
 0x2e4   : > { %v1917_v35 = vpop.f32.mrf.mxu3 }
 0x2e5   : > { %v1918_v36 = vadd.f32 %v1917_v35, %v1625_v7 }
 0x2e7   : > { %v1990_v37 = vsel %vm1825_vm2, %v1918_v36, -inf }
 0x2e8   : > { %1991 = vmax.xlane.f32.xlu1 %v1990_v37  ;;  %v1980_v43 = vpop.xlane.xlu1 %1979 }
 0x2e9   : > { %v2002_v47 = vsub.f32 %v1842_v11, %v1980_v43 }
 0x2ea   : > { %v1983_v46 = vpop.xlane.xlu0 %1982 }
 0x2eb   : > { %v2003_v50 = vsub.f32 %v1861_v14, %v1983_v46  ;;  %v2010_v51 = vmul.f32 1.442695, %v2002_v47 }
 0x2ec   : > { %v1919_v38 = vpop.f32.mrf.mxu3 }
 0x2ed   : > { %v2012_v52 = vmul.f32 1.442695, %v2003_v50  ;;  %4475 = vpow2.f32 %v2010_v51 }
 0x2ee   : > { %v1898_v39 = vpop.f32.mrf.mxu2 }
 0x2ef   : > { %v1899_v40 = vadd.f32 %v1898_v39, %v1626_v8  ;;  %4477 = vpow2.f32 %v2012_v52 }
 0x2f0   : > { %v1879_v41 = vpop.f32.mrf.mxu1 }
 0x2f1   : > { %v1987_v42 = vsel %vm1825_vm2, %v1899_v40, -inf  ;;  %v1880_v44 = vadd.f32 %v1879_v41, %v1625_v7 }
 0x2f2   : > { %1988 = vmax.xlane.f32.xlu2 %v1987_v42 }
 0x2f3   : > { %v1984_v49 = vsel %vm1825_vm2, %v1880_v44, -inf  ;;  %v4476_v59 = vpop.eup %4475 }
 0x2f4   : > { %v2026_v63 = vsel %vm1825_vm2, %v4476_v59, 0.0 }
 0x2f5   : > { %v4478_v61 = vpop.eup %4477 }
 0x2f6   : > { %v1900_v45 = vpop.f32.mrf.mxu2  ;;  %v2029_v0 = vsel %vm1825_vm2, %v4478_v61, 0.0 }
 0x2f8   : > { %v1881_v48 = vpop.f32.mrf.mxu1 }
 0x2fa   : > { %1985 = vmax.xlane.f32.xlu2 %v1984_v49 }
 0x2fe   : > { %v1974_v53 = vpop.f32.mrf.mxu2 }
 0x2ff   : > { %v1975_v54 = vadd.f32 %v1974_v53, %v1626_v8 }
 0x300   : > { %v1955_v55 = vpop.f32.mrf.mxu1 }
 0x301   : > { %v5673_v56 = vadd.f32 %v1955_v55, %v1625_v7  ;;  %v1999_v57 = vsel %vm1825_vm2, %v1975_v54, -inf }
 0x302   : > { %2000 = vmax.xlane.f32.xlu2 %v1999_v57 }
 0x303   : > { %v1996_v58 = vsel %vm1825_vm2, %v5673_v56, -inf }
 0x304   : > { %1997 = vmax.xlane.f32.xlu1 %v1996_v58 }
 0x306   : > { %v1976_v60 = vpop.f32.mrf.mxu2 }
 0x308   : > { %v1957_v62 = vpop.f32.mrf.mxu1 }
 0x30a   : > { %2027 = vadd.xlane.f32.xlu2 %v2026_v63 }
 0x30c   : > { %2030 = vadd.xlane.f32.xlu1 %v2029_v0 }
 0x322   : > { %4351 = vrot.lane.b32.xlu2 %v4350_v1, %s5097_s5 }
 0x32a   : > { %1805 = vrot.lane.b32.xlu2 %v5658_v26, %s5098_s25 }
 0x332   : > { %1803 = vrot.lane.b32.xlu2 %v5656_v24, %s5098_s25 }
 0x349   : > { %v1995_v14 = vpop.xlane.xlu0 %1994 }
 0x34a   : > { %v2007_v17 = vsub.f32 %v5666_v32, %v1995_v14 }
 0x34c   : > { %v2020_v21 = vmul.f32 1.442695, %v2007_v17 }
 0x35b   : > { %v1992_v2 = vpop.xlane.xlu1 %1991 }
 0x35c   : > { %v2006_v3 = vsub.f32 %v1918_v36, %v1992_v2 }
 0x35e   : > { %v2018_v4 = vmul.f32 1.442695, %v2006_v3 }
 0x360   : > { %4479 = vpow2.f32 %v2018_v4 }
 0x365   : > { %v1989_v7 = vpop.xlane.xlu2 %1988 }
 0x366   : > { %v5687_v8 = vpop.eup %4479  ;;  %v2005_v12 = vsub.f32 %v1899_v40, %v1989_v7 }
 0x367   : > { %v2038_v9 = vsel %vm1825_vm2, %v5687_v8, 0.0 }
 0x368   : > { %2039 = vadd.xlane.f32.xlu1 %v2038_v9  ;;  %v2016_v15 = vmul.f32 1.442695, %v2005_v12 }
 0x36d   : > { %v1986_v10 = vpop.xlane.xlu2 %1985 }
 0x36e   : > { %v2004_v11 = vsub.f32 %v1880_v44, %v1986_v10 }
 0x370   : > { %v2014_v13 = vmul.f32 1.442695, %v2004_v11 }
 0x372   : > { %4481 = vpow2.f32 %v2014_v13 }
 0x373   : > { %4483 = vpow2.f32 %v2016_v15 }
 0x375   : > { %v2001_v16 = vpop.xlane.xlu2 %2000 }
 0x376   : > { %v2009_v28 = vsub.f32 %v1975_v54, %v2001_v16 }
 0x377   : > { %v1998_v18 = vpop.xlane.xlu1 %1997 }
 0x378   : > { %v5692_v19 = vpop.eup %4481  ;;  %v2024_v31 = vmul.f32 1.442695, %v2009_v28  ;;  %v2008_v24 = vsub.f32 %v5673_v56, %v1998_v18 }
 0x379   : > { %v2032_v20 = vsel %vm1825_vm2, %v5692_v19, 0.0  ;;  %v5696_v23 = vpop.eup %4483 }
 0x37a   : > { %2033 = vadd.xlane.f32.xlu0 %v2032_v20  ;;  %v2035_v29 = vsel %vm1825_vm2, %v5696_v23, 0.0  ;;  %v2022_v45 = vmul.f32 1.442695, %v2008_v24 }
 0x37d   : > { %v2028_v22 = vpop.xlane.xlu2 %2027 }
 0x37e   : > { %4485 = vrcp.f32 %v2028_v22 }
 0x37f   : > { %4487 = vpow2.f32 %v2020_v21  ;;  %v2031_v25 = vpop.xlane.xlu1 %2030 }
 0x380   : > { %4489 = vrcp.f32 %v2031_v25 }
 0x381   : > { %4356 = vrot.lane.b32.xlu1 %v4355_v27, %s5096_s0  ;;  %4491 = vpow2.f32 %v2024_v31 }
 0x382   : > { %2036 = vadd.xlane.f32.xlu0 %v2035_v29  ;;  %4493 = vpow2.f32 %v2022_v45  ;;  %v4143_v45 = vld [vmem:[%s6214_s12] sm:$0xff] }
 0x384   : > { %v4486_v30 = vpop.eup %4485 }
 0x385   : > { %v5703_v32 = vpop.eup %4487  ;;  %v2058_v33 = vmul.f32 %v4486_v30, %v4476_v59  ;;  %v4352_v34 = vpop.permute.xlu2 %4351 }
 0x386   : > { %v4490_v35 = vpop.eup %4489  ;;  %v4354_v36 = vunpack.i.h.bf16 %v4352_v34  ;;  %v4353_v37 = vunpack.i.l.bf16 %v4352_v34  ;;  %v2041_v42 = vsel %vm1825_vm2, %v5703_v32, 0.0 }
 0x387   : > { %v2066_v38 = vpack.c.bf16 %v2058_v33, %v2058_v33  ;;  %v2059_v39 = vmul.f32 %v4490_v35, %v4478_v61  ;;  %v4492_v47 = vpop.eup %4491 }
 0x388   : > { %v2076_v26 = vpack.c.bf16 %v4354_v36, %v4354_v36  ;;  %v2077_v40 = vpack.c.bf16 %v4353_v37, %v4353_v37  ;;  %v2047_v50 = vsel %vm1825_vm2, %v4492_v47, 0.0  ;;  %v4494_v52 = vpop.eup %4493 }
 0x389   : > { %v2067_v41 = vpack.c.bf16 %v2059_v39, %v2059_v39  ;;  %4012 = vmatmul.msk.bf16.vlgmr.msra.gmra.mxu3 %vm1825_vm2, %v2066_v38  ;;  %v2044_v55 = vsel %vm1825_vm2, %v4494_v52, 0.0 }
 0x38a   : > { %2042 = vadd.xlane.f32.xlu0 %v2041_v42  ;;  %v2125_v43 = vsel %vm2085_vm4, %v2076_v26, 0  ;;  %v2144_v44 = vsel %vm2085_vm4, %v2077_v40, 0 }
 0x38b   : > { %4013 = vmatmul.msk.bf16.vlgmr.msrb.gmra.mxu0 %vm1825_vm2, %v2067_v41  ;;  %2134 = vmatpush.bf16.msrb.mxu1 %v2125_v43 }
 0x38c   : > { %2153 = vmatpush.bf16.msrb.mxu2 %v2144_v44  ;;  %v4144_v44 = vld [vmem:[%s6213_s17 + $0x8] sm:$0xff] }
 0x38d   : > { %v1806_v46 = vpop.permute.xlu2 %1805 }
 0x38e   : > { %v2081_v48 = vpack.c.bf16 %v1806_v46, %v1806_v46 }
 0x390   : > { %v2220_v49 = vsel %vm2085_vm4, %v2081_v48, 0 }
 0x391   : > { %2229 = vmatpush.bf16.msra.mxu2 %v2220_v49 }
 0x392   : > { %2048 = vadd.xlane.f32.xlu0 %v2047_v50 }
 0x395   : > { %v1804_v51 = vpop.permute.xlu2 %1803 }
 0x396   : > { %v2080_v53 = vpack.c.bf16 %v1804_v51, %v1804_v51 }
 0x398   : > { %v2201_v54 = vsel %vm2085_vm4, %v2080_v53, 0 }
 0x399   : > { %2210 = vmatpush.bf16.msra.mxu1 %v2201_v54 }
 0x39a   : > { %2045 = vadd.xlane.f32.xlu0 %v2044_v55 }
 0x3db   : > { %v2040_v56 = vpop.xlane.xlu1 %2039 }
 0x3dc   : > { %4495 = vrcp.f32 %v2040_v56 }
 0x3e2   : > { %v4496_v58 = vpop.eup %4495 }
 0x3e3   : > { %v2062_v1 = vmul.f32 %v4496_v58, %v5687_v8 }
 0x3e5   : > { %v2070_v10 = vpack.c.bf16 %v2062_v1, %v2062_v1 }
 0x3ed   : > { %v2034_v57 = vpop.xlane.xlu0 %2033 }
 0x3ee   : > { %4497 = vrcp.f32 %v2034_v57 }
 0x3f3   : > { %v4357_v59 = vpop.permute.xlu1 %4356 }
 0x3f4   : > { %v4498_v60 = vpop.eup %4497  ;;  %v4359_v61 = vunpack.i.h.bf16 %v4357_v59  ;;  %v4358_v62 = vunpack.i.l.bf16 %v4357_v59 }
 0x3f5   : > { %v2060_v63 = vmul.f32 %v4498_v60, %v5692_v19  ;;  %v2037_v0 = vpop.xlane.xlu0 %2036 }
 0x3f6   : > { %v2079_v2 = vpack.c.bf16 %v4359_v61, %v4359_v61  ;;  %v2078_v3 = vpack.c.bf16 %v4358_v62, %v4358_v62  ;;  %4499 = vrcp.f32 %v2037_v0 }
 0x3f7   : > { %v2068_v4 = vpack.c.bf16 %v2060_v63, %v2060_v63 }
 0x3f8   : > { %v2163_v7 = vsel %vm2085_vm4, %v2078_v3, 0  ;;  %v2182_v9 = vsel %vm2085_vm4, %v2079_v2, 0  ;;  %v4460_v2 = vld [vmem:[%s6216_s20] ss:$0 sm:$0xff] }
 0x3f9   : > { %4014 = vmatmul.msk.bf16.vlgmr.msrb.gmra.mxu1 %vm1825_vm2, %v2068_v4  ;;  %2172 = vmatpush.bf16.msrb.mxu3 %v2163_v7 }
 0x3fa   : > { %2191 = vmatpush.bf16.msra.mxu0 %v2182_v9 }
 0x3fc   : > { %v4500_v11 = vpop.eup %4499  ;;  %4016 = vmatmul.msk.bf16.vlgmr.msrb.gmra.mxu3 %vm1825_vm2, %v2070_v10 }
 0x3fd   : > { %v2061_v12 = vmul.f32 %v4500_v11, %v5696_v23  ;;  %v2043_v13 = vpop.xlane.xlu0 %2042  ;;  %2298 = vmatpush.bf16.msra.mxu3 %v4144_v44 }
 0x3fe   : > { %4501 = vrcp.f32 %v2043_v13 }
 0x3ff   : > { %v2069_v8 = vpack.c.bf16 %v2061_v12, %v2061_v12 }
 0x401   : > { %4015 = vmatmul.msk.bf16.vlgmr.msrb.gmra.mxu2 %vm1825_vm2, %v2069_v8  ;;  %2299 = vmatpush.bf16.msra.mxu3 %v4143_v45  ;;  %v5103_v8 = vmov 32.0  }
 0x404   : > { %v4502_v14 = vpop.eup %4501 }
 0x405   : > { %v2063_v15 = vmul.f32 %v4502_v14, %v5703_v32  ;;  %v2049_v16 = vpop.xlane.xlu0 %2048 }
 0x406   : > { %4503 = vrcp.f32 %v2049_v16  ;;  %v4148_v16 = vld [vmem:[%s1312_s1 + $0x8] sm:$0xff] }
 0x407   : > { %v2071_v17 = vpack.c.bf16 %v2063_v15, %v2063_v15  ;;  %2469 = vmatpush.bf16.msrb.mxu1 %v4148_v16 }
 0x408   : > { %v2117_v18 = vpop.f32.mrf.mxu0 }
 0x409   : > { %4017 = vmatmul.msk.bf16.vlgmr.msra.gmra.mxu0 %vm1825_vm2, %v2071_v17 }
 0x40c   : > { %v4504_v19 = vpop.eup %4503  ;;  %v2098_v20 = vpop.f32.mrf.mxu3 }
 0x40d   : > { %v2065_v21 = vmul.f32 %v4504_v19, %v4492_v47  ;;  %v2046_v22 = vpop.xlane.xlu0 %2045 }
 0x40e   : > { %4505 = vrcp.f32 %v2046_v22 }
 0x40f   : > { %v2073_v23 = vpack.c.bf16 %v2065_v21, %v2065_v21  ;;  %4507 = vrcp.f32 %v5103_v8 }
 0x410   : > { %v2119_v25 = vpop.f32.mrf.mxu0 }
 0x411   : > { %4019 = vmatmul.msk.bf16.vlgmr.msra.gmra.mxu2 %vm1825_vm2, %v2073_v23 }
 0x414   : > { %v4506_v27 = vpop.eup %4505  ;;  %v2100_v28 = vpop.f32.mrf.mxu3 }
 0x415   : > { %v2064_v29 = vmul.f32 %v4506_v27, %v4494_v52  ;;  %v4508_v14 = vpop.eup %4507 }
 0x416   : > { %v2317_v15 = vmul.f32 32.0, %v4508_v14  ;;  %vm2321_vm7 = vweird.f32 %v4508_v14 }
 0x417   : > { %v2072_v30 = vpack.c.bf16 %v2064_v29, %v2064_v29 }
 0x418   : > { %v2318_v17 = vsub.f32 1.0, %v2317_v15 }
 0x419   : > { %4018 = vmatmul.msk.bf16.vlgmr.msra.gmra.mxu1 %vm1825_vm2, %v2072_v30 }
 0x41a   : > { %v2319_v19 = vmul.f32 %v4508_v14, %v2318_v17 }
 0x476   : > { %v2136_v31 = vpop.f32.mrf.mxu1 }
 0x47e   : > { %v2138_v32 = vpop.f32.mrf.mxu1 }
 0x47f   : > { %v2174_v33 = vpop.f32.mrf.mxu3 }
 0x484   : > { %v2155_v34 = vpop.f32.mrf.mxu2 }
 0x485   : > { %v4360_v35 = vpack.i.bf16 %v2155_v34, %v2136_v31 }
 0x486   : > { %v2193_v36 = vpop.f32.mrf.mxu0 }
 0x487   : > { %v4365_v37 = vpack.i.bf16 %v2193_v36, %v2174_v33  ;;  %4361 = vrot.lane.b32.xlu0 %v4360_v35, %s5100_s8  ;;  %v2176_v38 = vpop.f32.mrf.mxu3  ;;  %v5763_v33 = vld [vmem:[#allocation6 + $0x8] sm:$0xff] }
 0x488   : > { %v4145_v38 = vld [vmem:[%s1302_s24] sm:$0xff] }
 0x489   : > { %4366 = vrot.lane.b32.xlu1 %v4365_v37, %s5101_s9  ;;  %v4146_v37 = vld [vmem:[%s1302_s24 + $0x8] sm:$0xff] }
 0x48a   : > { %2422 = vmatpush.bf16.msrb.mxu0 %v4146_v37 }
 0x48c   : > { %v2157_v39 = vpop.f32.mrf.mxu2 }
 0x48e   : > { %v2195_v24 = vpop.f32.mrf.mxu0  ;;  %2423 = vmatpush.bf16.msrb.mxu0 %v4145_v38  ;;  %v4150_v38 = vld [vmem:[%s1322_s27 + $0x8] sm:$0xff] }
 0x48f   : > { %2503 = vmatpush.bf16.msrb.mxu2 %v4150_v38 }
 0x494   : > { %v2231_v26 = vpop.f32.mrf.mxu2 }
 0x496   : > { %v2212_v40 = vpop.f32.mrf.mxu1 }
 0x497   : > { %v4370_v41 = vpack.i.bf16 %v2231_v26, %v2212_v40 }
 0x499   : > { %4371 = vrot.lane.b32.xlu2 %v4370_v41, %s5102_s13 }
 0x49c   : > { %v2233_v42 = vpop.f32.mrf.mxu2 }
 0x49e   : > { %v2214_v43 = vpop.f32.mrf.mxu1 }
 0x4f3   : > { %v4372_v47 = vpop.permute.xlu2 %4371 }
 0x4f4   : > { %v4374_v55 = vunpack.i.h.bf16 %v4372_v47  ;;  %v4373_v56 = vunpack.i.l.bf16 %v4372_v47 }
 0x4f9   : > { %v4362_v46 = vpop.permute.xlu0 %4361 }
 0x4fa   : > { %v4364_v48 = vunpack.i.h.bf16 %v4362_v46  ;;  %v4363_v49 = vunpack.i.l.bf16 %v4362_v46 }
 0x4fb   : > { %v4367_v50 = vpop.permute.xlu1 %4366 }
 0x4fc   : > { %v2259_v51 = vsel %vm1825_vm2, %v2098_v20, %v4363_v49  ;;  %v2260_v52 = vsel %vm1825_vm2, %v2117_v18, %v4364_v48  ;;  %v4369_v53 = vunpack.i.h.bf16 %v4367_v50  ;;  %v4368_v54 = vunpack.i.l.bf16 %v4367_v50  ;;  %v5753_v18 = vld [vmem:[#allocation6] sm:$0xff] }
 0x4fe   : > { %v2263_v57 = vsel %vm2261_vm5, %v2260_v52, %v4369_v53  ;;  %v2262_v58 = vsel %vm2261_vm5, %v2259_v51, %v4368_v54  ;;  %v4462_v54 = vld [vmem:[%s1292_s29] ss:$0 sm:$0xff]  ;;  %s6220_s29 = sld [smem:[#allocation44_spill]] }
 0x4ff   : > { %v2266_v59 = vsel %vm2264_vm6, %v2263_v57, %v4374_v55  ;;  %v2265_v60 = vsel %vm2264_vm6, %v2262_v58, %v4373_v56 }
 0x500   : > { %v2268_v61 = vpack.c.bf16 %v2266_v59, %v2266_v59  ;;  %v2267_v62 = vpack.c.bf16 %v2265_v60, %v2265_v60 }
 0x502   : > { %v2275_v63 = vunpack.c.l.b16 %v2268_v61  ;;  %v2274_v0 = vunpack.c.l.b16 %v2267_v62 }
 0x504   : > { %v2276_v1 = vpack.c.b16 %v2275_v63, %v2274_v0 }
 0x506   : > { %4028 = vmatmul.msk.bf16.vlgmr.msra.gmra.mxu3 %vm1671_vm1, %v2276_v1 }
 0x589   : > { %v2301_v3 = vpop.f32.mrf.mxu3 }
 0x58a   : > { %v2302_v4 = vadd.f32 %v4460_v2, %v2301_v3 }
 0x58c   : > { %v2306_v7 = vadd.f32 %v2302_v4, %v5605_v5  ;;  %v4147_v5 = vld [vmem:[%s1312_s1] sm:$0xff]  ;;  %s6217_s1 = sld [smem:[#allocation41_spill]]  ;;  %v4463_v4 = vld [vmem:[%s1571_s4] ss:$0 sm:$0xff]  ;;  %s6221_s4 = scalar_lea.vmem %s6220_s29, %s5547_s19 }
 0x58d   : > { %2470 = vmatpush.bf16.msrb.mxu1 %v4147_v5 }
 0x58e   : > { %v2310_v9 = vsel %vm1671_vm1, %v2306_v7, 0.0 }
 0x58f   : > { %2311 = vadd.xlane.f32.xlu1 %v2310_v9 }
 0x590   : > { %4054 = vmatmul.msk.bf16.vlgmr.msrb.gmra.mxu1 %vm1671_vm1, %v5753_v18 }
 0x591   : > { %v2303_v10 = vpop.f32.mrf.mxu3 }
 0x592   : > { %v2304_v11 = vadd.f32 %v4460_v2, %v2303_v10  ;;  %s6218_s24 = scalar_lea.vmem %s6217_s1, %s5547_s19 }
 0x593   : > { %v4461_v50 = vld [vmem:[%s6218_s24] ss:$0 sm:$0xff] }
 0x594   : > { %v2307_v12 = vadd.f32 %v2304_v11, %v5607_v6  ;;  %v2320_v6 = vadd.f32 %v4508_v14, %v2319_v19 }
 0x596   : > { %v2313_v13 = vsel %vm1671_vm1, %v2307_v12, 0.0  ;;  %v5757_v20 = vsel %vm2321_vm7, %v4508_v14, %v2320_v6 }
 0x597   : > { %2314 = vadd.xlane.f32.xlu2 %v2313_v13 }
 0x5a0   : > { %4055 = vmatmul.msk.bf16.gmra.mxu1 %vm1671_vm1, %v5763_v33 }
 0x602   : > { %v2312_v21 = vpop.xlane.xlu1 %2311 }
 0x603   : > { %v2323_v22 = vmul.f32 %v5757_v20, %v2312_v21 }
 0x605   : > { %v2325_v23 = vsub.f32 %v2306_v7, %v2323_v22 }
 0x607   : > { %v2327_v25 = vmul.f32 %v2325_v23, %v2325_v23 }
 0x609   : > { %v2329_v27 = vsel %vm1671_vm1, %v2327_v25, 0.0 }
 0x60a   : > { %v2315_v28 = vpop.xlane.xlu2 %2314  ;;  %2330 = vadd.xlane.f32.xlu0 %v2329_v27 }
 0x60b   : > { %v2324_v29 = vmul.f32 %v5757_v20, %v2315_v28 }
 0x60d   : > { %v2326_v30 = vsub.f32 %v2307_v12, %v2324_v29  ;;  %v2472_v3 = vpop.f32.mrf.mxu1 }
 0x60e   : > { %v2473_v9 = vadd.f32 %v4463_v4, %v2472_v3 }
 0x60f   : > { %v2328_v31 = vmul.f32 %v2326_v30, %v2326_v30 }
 0x610   : > { %v2624_v12 = vpack.c.bf16 %v2473_v9, %v2473_v9 }
 0x611   : > { %v2332_v32 = vsel %vm1671_vm1, %v2328_v31, 0.0 }
 0x612   : > { %2333 = vadd.xlane.f32.xlu1 %v2332_v32  ;;  %v2648_v8 = vunpack.c.l.b16 %v2624_v12 }
 0x615   : > { %v2474_v7 = vpop.f32.mrf.mxu1 }
 0x616   : > { %v2475_v10 = vadd.f32 %v4463_v4, %v2474_v7 }
 0x618   : > { %v4375_v11 = vpack.i.bf16 %v2475_v10, %v2473_v9  ;;  %v2625_v13 = vpack.c.bf16 %v2475_v10, %v2475_v10 }
 0x61a   : > { %4376 = vrot.lane.b32.xlu2 %v4375_v11, %s5097_s5  ;;  %v2649_v14 = vunpack.c.l.b16 %v2625_v13 }
 0x61c   : > { %v2650_v15 = vpack.c.b16 %v2649_v14, %v2648_v8 }
 0x61d   : > { %v2477_v17 = vpop.f32.mrf.mxu1 }
 0x61e   : > { %v2655_v16 = vsel %vm1825_vm2, %v2650_v15, 0  ;;  %v2478_v5 = vadd.f32 %v4463_v4, %v2477_v17 }
 0x61f   : > { %2664 = vmatpush.bf16.xpose.msrb.mxu3 %v2655_v16 }
 0x620   : > { %v2626_v22 = vpack.c.bf16 %v2478_v5, %v2478_v5 }
 0x622   : > { %v2672_v25 = vunpack.c.l.b16 %v2626_v22  ;;  %v5822_v22 = vld [vmem:[#allocation9 + $0x1] ss:$0 sm:$0xff] }
 0x625   : > { %v2479_v19 = vpop.f32.mrf.mxu1 }
 0x626   : > { %v2480_v6 = vadd.f32 %v4463_v4, %v2479_v19 }
 0x628   : > { %v4380_v21 = vpack.i.bf16 %v2480_v6, %v2478_v5 }
 0x62a   : > { %4381 = vrot.lane.b32.xlu2 %v4380_v21, %s5096_s0 }
 0x632   : > { %2554 = vrot.lane.b32.xlu2 %v2475_v10, %s5096_s0 }
 0x674   : > { %v4377_v37 = vpop.permute.xlu2 %4376 }
 0x67d   : > { %v2331_v34 = vpop.xlane.xlu0 %2330 }
 0x67e   : > { %v2335_v35 = vmul.f32 %v2331_v34, %v5757_v20 }
 0x680   : > { %v2337_v36 = vadd.f32 1e-06, %v2335_v35 }
 0x682   : > { %4509 = vrsqrt.f32 %v2337_v36  ;;  %vm2345_vm9 = vweird.f32 %v2337_v36 }
 0x685   : > { %v2334_v39 = vpop.xlane.xlu1 %2333 }
 0x686   : > { %v2336_v24 = vmul.f32 %v2334_v39, %v5757_v20 }
 0x688   : > { %v4510_v26 = vpop.eup %4509  ;;  %v2338_v40 = vadd.f32 1e-06, %v2336_v24  ;;  %v4379_v24 = vunpack.i.h.bf16 %v4377_v37 }
 0x689   : > { %v2340_v41 = vmul.f32 %v4510_v26, %v2337_v36  ;;  %vm2346_vm8 = vweird.f32 %v4510_v26 }
 0x68a   : > { %4511 = vrsqrt.f32 %v2338_v40  ;;  %vm2347_vm10 = vmor %vm2345_vm9, %vm2346_vm8  ;;  %vm2355_vm12 = vweird.f32 %v2338_v40 }
 0x68b   : > { %v2341_v42 = vmul.f32 %v4510_v26, %v2340_v41  ;;  %v2629_v41 = vpack.c.bf16 %v4379_v24, %v4379_v24 }
 0x68d   : > { %v2342_v43 = vmul.f32 0.5, %v2341_v42 }
 0x68f   : > { %v2343_v44 = vsub.f32 1.5, %v2342_v43 }
 0x690   : > { %v4512_v45 = vpop.eup %4511 }
 0x691   : > { %v2344_v46 = vmul.f32 %v4510_v26, %v2343_v44  ;;  %v2350_v47 = vmul.f32 %v4512_v45, %v2338_v40  ;;  %vm2356_vm11 = vweird.f32 %v4512_v45  ;;  %v2697_v44 = vunpack.c.l.b16 %v2629_v41 }
 0x692   : > { %vm2357_vm13 = vmor %vm2355_vm12, %vm2356_vm11  ;;  %vm3398_vm12 = vcmask 523264  }
 0x693   : > { %v2348_v48 = vsel %vm2347_vm10, %v4510_v26, %v2344_v46  ;;  %v2351_v49 = vmul.f32 %v4512_v45, %v2350_v47  ;;  %v4378_v26 = vunpack.i.l.bf16 %v4377_v37 }
 0x694   : > { %v2359_v51 = vmul.f32 %v2348_v48, %v2325_v23  ;;  %v2627_v23 = vpack.c.bf16 %v2480_v6, %v2480_v6 }
 0x695   : > { %v2352_v52 = vmul.f32 0.5, %v2351_v49  ;;  %v2628_v42 = vpack.c.bf16 %v4378_v26, %v4378_v26 }
 0x696   : > { %v2364_v55 = vmul.f32 %v4461_v50, %v2359_v51  ;;  %v2673_v27 = vunpack.c.l.b16 %v2627_v23 }
 0x697   : > { %v2353_v53 = vsub.f32 1.5, %v2352_v52  ;;  %v4382_v52 = vpop.permute.xlu2 %4381 }
 0x698   : > { %v5778_v58 = vadd.f32 %v4462_v54, %v2364_v55  ;;  %v2674_v28 = vpack.c.b16 %v2673_v27, %v2672_v25 }
 0x699   : > { %v2354_v56 = vmul.f32 %v4512_v45, %v2353_v53  ;;  %v4384_v53 = vunpack.i.h.bf16 %v4382_v52 }
 0x69a   : > { %v2391_v62 = vpack.c.bf16 %v5778_v58, %v5778_v58  ;;  %v2679_v29 = vsel %vm1825_vm2, %v2674_v28, 0 }
 0x69b   : > { %v2358_v57 = vsel %vm2357_vm13, %v4512_v45, %v2354_v56  ;;  %2688 = vmatpush.bf16.xpose.msra.mxu0 %v2679_v29  ;;  %v2696_v45 = vunpack.c.l.b16 %v2628_v42  ;;  %v2635_v55 = vpack.c.bf16 %v4384_v53, %v4384_v53 }
 0x69c   : > { %v2360_v59 = vmul.f32 %v2358_v57, %v2326_v30  ;;  %v2398_v0 = vunpack.c.l.b16 %v2391_v62  ;;  %v4464_v30 = vld [vmem:[%s6221_s4] ss:$0 sm:$0xff] }
 0x69d   : > { %v2698_v49 = vpack.c.b16 %v2697_v44, %v2696_v45  ;;  %v2769_v57 = vunpack.c.l.b16 %v2635_v55 }
 0x69e   : > { %v2365_v60 = vmul.f32 %v4461_v50, %v2360_v59  ;;  %v4149_v50 = vld [vmem:[%s1322_s27] sm:$0xff] }
 0x69f   : > { %2504 = vmatpush.bf16.msrb.mxu2 %v4149_v50  ;;  %v2703_v51 = vsel %vm1825_vm2, %v2698_v49, 0 }
 0x6a0   : > { %v5780_v61 = vadd.f32 %v4462_v54, %v2365_v60  ;;  %2712 = vmatpush.bf16.xpose.msra.mxu3 %v2703_v51  ;;  %v4383_v54 = vunpack.i.l.bf16 %v4382_v52 }
 0x6a2   : > { %v2392_v63 = vpack.c.bf16 %v5780_v61, %v5780_v61  ;;  %4064 = vmatmul.msk.bf16.vlgmr.msrb.gmra.mxu2 %vm1671_vm1, %v5753_v18  ;;  %v2634_v56 = vpack.c.bf16 %v4383_v54, %v4383_v54 }
 0x6a4   : > { %v2399_v1 = vunpack.c.l.b16 %v2392_v63  ;;  %v2768_v59 = vunpack.c.l.b16 %v2634_v56 }
 0x6a6   : > { %v2400_v2 = vpack.c.b16 %v2399_v1, %v2398_v0  ;;  %v2770_v18 = vpack.c.b16 %v2769_v57, %v2768_v59  ;;  %v4467_v57 = vld [vmem:[%s1574_s16] ss:$0 sm:$0xff] }
 0x6a8   : > { %4037 = vmatmul.msk.bf16.vlgmr.msrb.gmra.mxu0 %vm1671_vm1, %v2400_v2  ;;  %v2775_v60 = vsel %vm1825_vm2, %v2770_v18, 0 }
 0x6a9   : > { %2784 = vmatpush.bf16.xpose.msra.mxu2 %v2775_v60 }
 0x6b2   : > { %4065 = vmatmul.msk.bf16.gmra.mxu2 %vm1671_vm1, %v5763_v33  ;;  %v2555_v33 = vpop.permute.xlu2 %2554 }
 0x725   : > { %v2425_v31 = vpop.f32.mrf.mxu0  ;;  %v2506_v54 = vpop.f32.mrf.mxu2 }
 0x726   : > { %v2426_v32 = vadd.f32 %v4464_v30, %v2425_v31  ;;  %v2507_v18 = vadd.f32 %v4467_v57, %v2506_v54 }
 0x728   : > { %v2430_v34 = vmul.f32 0.35355338, %v2426_v32 }
 0x72a   : > { %v2616_v35 = vpack.c.bf16 %v2430_v34, %v2430_v34  ;;  %2524 = vrot.lane.b32.xlu2 %v2430_v34, %s5096_s0  ;;  %v4385_v36 = vpack.i.bf16 %v2478_v5, %v2430_v34  ;;  %v5820_v5 = vld [vmem:[#allocation9] ss:$0 sm:$0xff] }
 0x72c   : > { %4386 = vrot.lane.b32.xlu1 %v4385_v36, %s5097_s5  ;;  %4066 = vmatmul.msk.bf16.vlgmr.msrb.gmra.mxu3 %vm1825_vm2, %v2616_v35 }
 0x72d   : > { %v2427_v39 = vpop.f32.mrf.mxu0 }
 0x72e   : > { %v2428_v40 = vadd.f32 %v4464_v30, %v2427_v39 }
 0x730   : > { %v2431_v43 = vmul.f32 0.35355338, %v2428_v40 }
 0x732   : > { %v2617_v46 = vpack.c.bf16 %v2431_v43, %v2431_v43  ;;  %v4390_v47 = vpack.i.bf16 %v2431_v43, %v2480_v6  ;;  %v4405_v48 = vpack.i.bf16 %v2473_v9, %v2431_v43  ;;  %v2633_v9 = vpack.c.bf16 %v2555_v33, %v2555_v33 }
 0x734   : > { %4391 = vrot.lane.b32.xlu0 %v4390_v47, %s5097_s5  ;;  %4067 = vmatmul.msk.bf16.vlgmr.msra.gmra.mxu0 %vm1825_vm2, %v2617_v46  ;;  %v2745_v16 = vunpack.c.l.b16 %v2633_v9 }
 0x735   : > { %4406 = vrot.lane.b32.xlu1 %v4405_v48, %s5096_s0 }
 0x73c   : > { %4396 = vrot.lane.b32.xlu0 %v4375_v11, %s5098_s25 }
 0x73d   : > { %2570 = vrot.lane.b32.xlu1 %v2480_v6, %s5098_s25 }
 0x744   : > { %4401 = vrot.lane.b32.xlu0 %v4385_v36, %s5098_s25 }
 0x74c   : > { %2532 = vrot.lane.b32.xlu0 %v2431_v43, %s5098_s25 }
 0x784   : > { %v2525_v38 = vpop.permute.xlu2 %2524 }
 0x785   : > { %v2620_v43 = vpack.c.bf16 %v2525_v38, %v2525_v38 }
 0x79e   : > { %v4387_v62 = vpop.permute.xlu1 %4386 }
 0x79f   : > { %v4388_v63 = vunpack.i.l.bf16 %v4387_v62  ;;  %v4389_v1 = vunpack.i.h.bf16 %v4387_v62  ;;  %v2934_v62 = vpack.c.bf16 %v2507_v18, %v2507_v18 }
 0x7a1   : > { %v2618_v0 = vpack.c.bf16 %v4388_v63, %v4388_v63  ;;  %v2630_v3 = vpack.c.bf16 %v4389_v1, %v4389_v1  ;;  %v2508_v63 = vpop.f32.mrf.mxu2  ;;  %v2952_v33 = vunpack.c.l.b16 %v2934_v62 }
 0x7a2   : > { %v2509_v1 = vadd.f32 %v4467_v57, %v2508_v63 }
 0x7a3   : > { %4068 = vmatmul.msk.bf16.vlgmr.msra.gmra.mxu3 %vm1825_vm2, %v2618_v0  ;;  %v2720_v14 = vunpack.c.l.b16 %v2630_v3 }
 0x7a4   : > { %v5845_v3 = vpack.i.bf16 %v2509_v1, %v2507_v18 }
 0x7a6   : > { %v4392_v2 = vpop.permute.xlu0 %4391  ;;  %4411 = vrot.lane.b32.xlu2 %v5845_v3, %s5097_s5 }
 0x7a7   : > { %v4393_v4 = vunpack.i.l.bf16 %v4392_v2  ;;  %v4407_v7 = vpop.permute.xlu1 %4406  ;;  %v4394_v31 = vunpack.i.h.bf16 %v4392_v2  ;;  %v2935_v2 = vpack.c.bf16 %v2509_v1, %v2509_v1 }
 0x7a8   : > { %v4409_v10 = vunpack.i.h.bf16 %v4407_v7  ;;  %v4408_v11 = vunpack.i.l.bf16 %v4407_v7 }
 0x7a9   : > { %v2631_v12 = vpack.c.bf16 %v4393_v4, %v4393_v4  ;;  %v2619_v41 = vpack.c.bf16 %v4394_v31, %v4394_v31  ;;  %v2953_v4 = vunpack.c.l.b16 %v2935_v2  ;;  %v2511_v9 = vpop.f32.mrf.mxu2 }
 0x7aa   : > { %v2632_v13 = vpack.c.bf16 %v4409_v10, %v4409_v10  ;;  %v2621_v8 = vpack.c.bf16 %v4408_v11, %v4408_v11  ;;  %v2512_v11 = vadd.f32 %v4467_v57, %v2511_v9 }
 0x7ab   : > { %v2721_v15 = vunpack.c.l.b16 %v2631_v12  ;;  %v2954_v7 = vpack.c.b16 %v2953_v4, %v2952_v33 }
 0x7ac   : > { %v2744_v17 = vunpack.c.l.b16 %v2632_v13  ;;  %4071 = vmatmul.msk.bf16.vlgmr.msra.gmra.mxu2 %vm1825_vm2, %v2621_v8  ;;  %v2936_v13 = vpack.c.bf16 %v2512_v11, %v2512_v11 }
 0x7ad   : > { %v2722_v19 = vpack.c.b16 %v2721_v15, %v2720_v14 }
 0x7ae   : > { %v2746_v6 = vpack.c.b16 %v2745_v16, %v2744_v17  ;;  %v4397_v21 = vpop.permute.xlu0 %4396  ;;  %v2974_v14 = vunpack.c.l.b16 %v2936_v13 }
 0x7af   : > { %v4399_v23 = vunpack.i.h.bf16 %v4397_v21  ;;  %v4398_v25 = vunpack.i.l.bf16 %v4397_v21  ;;  %v2666_v27 = vpop.f32.mrf.mxu3  ;;  %v2727_v28 = vsel %vm1825_vm2, %v2722_v19, 0  ;;  %v2571_v26 = vpop.permute.xlu1 %2570 }
 0x7b0   : > { %v5826_v29 = vadd.f32 %v5820_v5, %v2666_v27  ;;  %2736 = vmatpush.bf16.xpose.msrb.mxu0 %v2727_v28  ;;  %v2751_v30 = vsel %vm1825_vm2, %v2746_v6, 0  ;;  %v2639_v45 = vpack.c.bf16 %v2571_v26, %v2571_v26 }
 0x7b1   : > { %v2637_v32 = vpack.c.bf16 %v4399_v23, %v4399_v23  ;;  %v2636_v34 = vpack.c.bf16 %v4398_v25, %v4398_v25  ;;  %2760 = vmatpush.bf16.xpose.msra.mxu1 %v2751_v30  ;;  %v2690_v35 = vpop.f32.mrf.mxu0  ;;  %v2513_v10 = vpop.f32.mrf.mxu2 }
 0x7b2   : > { %v5830_v36 = vadd.f32 %v5822_v22, %v2690_v35  ;;  %v2838_v37 = vsel %vm2261_vm5, %v5826_v29, -inf  ;;  %v2817_v52 = vunpack.c.l.b16 %v2639_v45  ;;  %v2514_v12 = vadd.f32 %v4467_v57, %v2513_v10 }
 0x7b3   : > { %v2793_v39 = vunpack.c.l.b16 %v2637_v32  ;;  %v2792_v24 = vunpack.c.l.b16 %v2636_v34  ;;  %2839 = vmax.xlane.f32.xlu0 %v2838_v37 }
 0x7b4   : > { %v2841_v40 = vsel %vm2261_vm5, %v5830_v36, -inf  ;;  %v2937_v8 = vpack.c.bf16 %v2514_v12, %v2514_v12  ;;  %v5868_v63 = vpack.i.bf16 %v2514_v12, %v2512_v11 }
 0x7b5   : > { %v2794_v42 = vpack.c.b16 %v2793_v39, %v2792_v24  ;;  %2842 = vmax.xlane.f32.xlu1 %v2841_v40 }
 0x7b6   : > { %v4402_v44 = vpop.permute.xlu0 %4401  ;;  %v2975_v15 = vunpack.c.l.b16 %v2937_v8 }
 0x7b7   : > { %v4404_v46 = vunpack.i.h.bf16 %v4402_v44  ;;  %v2668_v47 = vpop.f32.mrf.mxu3  ;;  %4069 = vmatmul.msk.bf16.vlgmr.msrb.gmra.mxu0 %vm1825_vm2, %v2619_v41  ;;  %v2799_v48 = vsel %vm1825_vm2, %v2794_v42, 0  ;;  %v4403_v50 = vunpack.i.l.bf16 %v4402_v44 }
 0x7b8   : > { %4070 = vmatmul.msk.bf16.vlgmr.msra.gmra.mxu1 %vm1825_vm2, %v2620_v43  ;;  %2808 = vmatpush.bf16.xpose.msrb.mxu3 %v2799_v48  ;;  %v2976_v16 = vpack.c.b16 %v2975_v15, %v2974_v14 }
 0x7b9   : > { %v2638_v49 = vpack.c.bf16 %v4404_v46, %v4404_v46  ;;  %v2692_v51 = vpop.f32.mrf.mxu0  ;;  %v2622_v55 = vpack.c.bf16 %v4403_v50, %v4403_v50  ;;  %2966 = vmatpush.bf16.msrb.mxu1 %v2954_v7 }
 0x7ba   : > { %2988 = vmatpush.bf16.msrb.mxu2 %v2976_v16 }
 0x7bb   : > { %v2816_v53 = vunpack.c.l.b16 %v2638_v49 }
 0x7bd   : > { %v2818_v56 = vpack.c.b16 %v2817_v52, %v2816_v53 }
 0x7be   : > { %v2533_v60 = vpop.permute.xlu0 %2532 }
 0x7bf   : > { %4072 = vmatmul.msk.bf16.vlgmr.msrb.gmra.mxu3 %vm1825_vm2, %v2622_v55  ;;  %v2823_v59 = vsel %vm1825_vm2, %v2818_v56, 0  ;;  %v2623_v0 = vpack.c.bf16 %v2533_v60, %v2533_v60 }
 0x7c0   : > { %2832 = vmatpush.bf16.xpose.msra.mxu0 %v2823_v59 }
 0x7c7   : > { %4073 = vmatmul.msk.bf16.vlgmr.msra.gmra.mxu0 %vm1825_vm2, %v2623_v0 }
 0x800   : > { %v4412_v46 = vpop.permute.xlu2 %4411 }
 0x801   : > { %v4414_v47 = vunpack.i.h.bf16 %v4412_v46  ;;  %v4413_v48 = vunpack.i.l.bf16 %v4412_v46 }
 0x803   : > { %v2939_v51 = vpack.c.bf16 %v4414_v47, %v4414_v47  ;;  %v2938_v52 = vpack.c.bf16 %v4413_v48, %v4413_v48 }
 0x805   : > { %v2997_v56 = vunpack.c.l.b16 %v2939_v51  ;;  %v2996_v57 = vunpack.c.l.b16 %v2938_v52 }
 0x807   : > { %v2998_v18 = vpack.c.b16 %v2997_v56, %v2996_v57 }
 0x809   : > { %3010 = vmatpush.bf16.msra.mxu3 %v2998_v18 }
 0x826   : > { %v2714_v17 = vpop.f32.mrf.mxu3  ;;  %v2840_v19 = vpop.xlane.xlu0 %2839 }
 0x827   : > { %v2715_v6 = vadd.f32 %v5820_v5, %v2714_v17  ;;  %v2862_v21 = vsub.f32 %v5826_v29, %v2840_v19 }
 0x828   : > { %v2843_v23 = vpop.xlane.xlu1 %2842 }
 0x829   : > { %v2870_v25 = vmul.f32 1.442695, %v2862_v21  ;;  %v2863_v27 = vsub.f32 %v5830_v36, %v2843_v23  ;;  %v2844_v28 = vsel %vm2261_vm5, %v2715_v6, -inf }
 0x82a   : > { %2845 = vmax.xlane.f32.xlu2 %v2844_v28 }
 0x82b   : > { %4513 = vpow2.f32 %v2870_v25  ;;  %v2872_v30 = vmul.f32 1.442695, %v2863_v27 }
 0x82d   : > { %4515 = vpow2.f32 %v2872_v30 }
 0x82e   : > { %v2716_v31 = vpop.f32.mrf.mxu3 }
 0x82f   : > { %v2786_v32 = vpop.f32.mrf.mxu2 }
 0x830   : > { %v5854_v34 = vadd.f32 %v5822_v22, %v2786_v32 }
 0x831   : > { %v4514_v35 = vpop.eup %4513 }
 0x832   : > { %v2853_v37 = vsel %vm2261_vm5, %v5854_v34, -inf  ;;  %v2886_v29 = vsel %vm2261_vm5, %v4514_v35, 0.0 }
 0x833   : > { %2854 = vmax.xlane.f32.xlu2 %v2853_v37  ;;  %2887 = vadd.xlane.f32.xlu0 %v2886_v29  ;;  %v4516_v24 = vpop.eup %4515 }
 0x834   : > { %v2738_v36 = vpop.f32.mrf.mxu0  ;;  %v2889_v41 = vsel %vm2261_vm5, %v4516_v24, 0.0 }
 0x835   : > { %v2762_v38 = vpop.f32.mrf.mxu1  ;;  %v2739_v42 = vadd.f32 %v5822_v22, %v2738_v36 }
 0x836   : > { %v2763_v39 = vadd.f32 %v5820_v5, %v2762_v38 }
 0x837   : > { %v2788_v26 = vpop.f32.mrf.mxu2  ;;  %v2847_v45 = vsel %vm2261_vm5, %v2739_v42, -inf }
 0x838   : > { %v2850_v40 = vsel %vm2261_vm5, %v2763_v39, -inf }
 0x839   : > { %2851 = vmax.xlane.f32.xlu1 %v2850_v40 }
 0x83b   : > { %2890 = vadd.xlane.f32.xlu0 %v2889_v41 }
 0x83c   : > { %v2740_v43 = vpop.f32.mrf.mxu0 }
 0x83d   : > { %v2764_v44 = vpop.f32.mrf.mxu1 }
 0x841   : > { %2848 = vmax.xlane.f32.xlu1 %v2847_v45 }
 0x842   : > { %v2810_v49 = vpop.f32.mrf.mxu3 }
 0x843   : > { %v2811_v50 = vadd.f32 %v5820_v5, %v2810_v49 }
 0x844   : > { %v2834_v53 = vpop.f32.mrf.mxu0 }
 0x845   : > { %v2835_v54 = vadd.f32 %v5822_v22, %v2834_v53  ;;  %v2856_v55 = vsel %vm2261_vm5, %v2811_v50, -inf }
 0x846   : > { %2857 = vmax.xlane.f32.xlu0 %v2856_v55 }
 0x847   : > { %v2859_v59 = vsel %vm2261_vm5, %v2835_v54, -inf }
 0x848   : > { %2860 = vmax.xlane.f32.xlu2 %v2859_v59 }
 0x84a   : > { %v2812_v60 = vpop.f32.mrf.mxu3 }
 0x84c   : > { %v2836_v62 = vpop.f32.mrf.mxu0 }
 0x85a   : > { %4426 = vrot.lane.b32.xlu1 %v5845_v3, %s5098_s25  ;;  %4416 = vrot.lane.b32.xlu0 %v5868_v63, %s5097_s5 }
 0x860   : > { %4421 = vrot.lane.b32.xlu2 %v5868_v63, %s5096_s0 }
 0x89d   : > { %v2846_v5 = vpop.xlane.xlu2 %2845 }
 0x89e   : > { %v2864_v22 = vsub.f32 %v2715_v6, %v2846_v5 }
 0x8a0   : > { %v2874_v0 = vmul.f32 1.442695, %v2864_v22 }
 0x8a2   : > { %4517 = vpow2.f32 %v2874_v0 }
 0x8a6   : > { %v2888_v1 = vpop.xlane.xlu0 %2887  ;;  %v2855_v8 = vpop.xlane.xlu2 %2854 }
 0x8a7   : > { %4519 = vrcp.f32 %v2888_v1  ;;  %v2867_v6 = vsub.f32 %v5854_v34, %v2855_v8 }
 0x8a8   : > { %v5876_v33 = vpop.eup %4517 }
 0x8a9   : > { %v2892_v2 = vsel %vm2261_vm5, %v5876_v33, 0.0  ;;  %v2880_v27 = vmul.f32 1.442695, %v2867_v6 }
 0x8aa   : > { %2893 = vadd.xlane.f32.xlu1 %v2892_v2 }
 0x8ac   : > { %v2852_v4 = vpop.xlane.xlu1 %2851 }
 0x8ad   : > { %v4520_v7 = vpop.eup %4519  ;;  %v2866_v9 = vsub.f32 %v2763_v39, %v2852_v4 }
 0x8ae   : > { %v5880_v10 = vmul.f32 %v4520_v7, %v4514_v35  ;;  %v2891_v11 = vpop.xlane.xlu0 %2890 }
 0x8af   : > { %v2878_v12 = vmul.f32 1.442695, %v2866_v9  ;;  %4521 = vrcp.f32 %v2891_v11 }
 0x8b0   : > { %v2926_v13 = vpack.c.bf16 %v5880_v10, %v5880_v10 }
 0x8b1   : > { %4523 = vpow2.f32 %v2878_v12 }
 0x8b2   : > { %4074 = vmatmul.msk.bf16.vlgmr.msrb.gmra.mxu1 %vm2261_vm5, %v2926_v13 }
 0x8b4   : > { %v2849_v14 = vpop.xlane.xlu1 %2848 }
 0x8b5   : > { %v4522_v15 = vpop.eup %4521  ;;  %v2865_v16 = vsub.f32 %v2739_v42, %v2849_v14 }
 0x8b6   : > { %v5885_v17 = vmul.f32 %v4522_v15, %v4516_v24 }
 0x8b7   : > { %v5887_v19 = vpop.eup %4523  ;;  %v2876_v21 = vmul.f32 1.442695, %v2865_v16 }
 0x8b8   : > { %v2927_v23 = vpack.c.bf16 %v5885_v17, %v5885_v17  ;;  %v2898_v25 = vsel %vm2261_vm5, %v5887_v19, 0.0 }
 0x8b9   : > { %4525 = vpow2.f32 %v2876_v21  ;;  %2899 = vadd.xlane.f32.xlu0 %v2898_v25  ;;  %v2858_v30 = vpop.xlane.xlu0 %2857 }
 0x8ba   : > { %4075 = vmatmul.msk.bf16.vlgmr.msrb.gmra.mxu2 %vm2261_vm5, %v2927_v23  ;;  %4527 = vpow2.f32 %v2880_v27  ;;  %v2868_v37 = vsub.f32 %v2811_v50, %v2858_v30 }
 0x8bb   : > { %v2861_v28 = vpop.xlane.xlu2 %2860 }
 0x8bc   : > { %v2869_v31 = vsub.f32 %v2835_v54, %v2861_v28  ;;  %v2882_v29 = vmul.f32 1.442695, %v2868_v37 }
 0x8be   : > { %v2884_v32 = vmul.f32 1.442695, %v2869_v31 }
 0x8bf   : > { %v4526_v35 = vpop.eup %4525 }
 0x8c0   : > { %4529 = vpow2.f32 %v2884_v32  ;;  %v2895_v34 = vsel %vm2261_vm5, %v4526_v35, 0.0  ;;  %v4528_v24 = vpop.eup %4527 }
 0x8c1   : > { %2896 = vadd.xlane.f32.xlu1 %v2895_v34  ;;  %4531 = vpow2.f32 %v2882_v29  ;;  %v2901_v45 = vsel %vm2261_vm5, %v4528_v24, 0.0 }
 0x8c3   : > { %v4422_v36 = vpop.permute.xlu2 %4421 }
 0x8c4   : > { %v4424_v38 = vunpack.i.h.bf16 %v4422_v36  ;;  %v4423_v39 = vunpack.i.l.bf16 %v4422_v36 }
 0x8c6   : > { %v5896_v26 = vpop.eup %4529  ;;  %v2945_v40 = vpack.c.bf16 %v4424_v38, %v4424_v38  ;;  %v2944_v41 = vpack.c.bf16 %v4423_v39, %v4423_v39 }
 0x8c7   : > { %v2907_v42 = vsel %vm2261_vm5, %v5896_v26, 0.0  ;;  %v4532_v49 = vpop.eup %4531 }
 0x8c8   : > { %v3063_v43 = vunpack.c.l.b16 %v2945_v40  ;;  %v3062_v44 = vunpack.c.l.b16 %v2944_v41  ;;  %2908 = vadd.xlane.f32.xlu2 %v2907_v42  ;;  %v2904_v59 = vsel %vm2261_vm5, %v4532_v49, 0.0 }
 0x8c9   : > { %2902 = vadd.xlane.f32.xlu1 %v2901_v45 }
 0x8ca   : > { %v3064_v46 = vpack.c.b16 %v3063_v43, %v3062_v44 }
 0x8cc   : > { %v4427_v47 = vpop.permute.xlu1 %4426  ;;  %3076 = vmatpush.bf16.msra.mxu2 %v3064_v46  ;;  %v4417_v48 = vpop.permute.xlu0 %4416 }
 0x8cd   : > { %v4429_v50 = vunpack.i.h.bf16 %v4427_v47  ;;  %v4428_v51 = vunpack.i.l.bf16 %v4427_v47  ;;  %v4419_v52 = vunpack.i.h.bf16 %v4417_v48  ;;  %v4418_v53 = vunpack.i.l.bf16 %v4417_v48 }
 0x8cf   : > { %v2947_v54 = vpack.c.bf16 %v4429_v50, %v4429_v50  ;;  %v2946_v55 = vpack.c.bf16 %v4428_v51, %v4428_v51  ;;  %v2941_v56 = vpack.c.bf16 %v4419_v52, %v4419_v52  ;;  %v2940_v57 = vpack.c.bf16 %v4418_v53, %v4418_v53 }
 0x8d1   : > { %v3085_v18 = vunpack.c.l.b16 %v2947_v54  ;;  %v3084_v60 = vunpack.c.l.b16 %v2946_v55  ;;  %v3019_v62 = vunpack.c.l.b16 %v2941_v56  ;;  %v3018_v5 = vunpack.c.l.b16 %v2940_v57  ;;  %2905 = vadd.xlane.f32.xlu1 %v2904_v59 }
 0x8d3   : > { %v3086_v22 = vpack.c.b16 %v3085_v18, %v3084_v60  ;;  %v3020_v0 = vpack.c.b16 %v3019_v62, %v3018_v5 }
 0x8d5   : > { %3098 = vmatpush.bf16.msrb.mxu3 %v3086_v22  ;;  %3032 = vmatpush.bf16.msrb.mxu0 %v3020_v0 }
 0x8ea   : > { %4431 = vrot.lane.b32.xlu1 %v5845_v3, %s5096_s0 }
 0x8f2   : > { %4436 = vrot.lane.b32.xlu1 %v5868_v63, %s5098_s25 }
 0x91d   : > { %v2894_v1 = vpop.xlane.xlu1 %2893 }
 0x91e   : > { %4533 = vrcp.f32 %v2894_v1  ;;  %v4152_v1 = vld [vmem:[%s1332_s7 + $0x8] sm:$0xff] }
 0x924   : > { %v4534_v2 = vpop.eup %4533 }
 0x925   : > { %v5907_v4 = vmul.f32 %v4534_v2, %v5876_v33  ;;  %v4151_v2 = vld [vmem:[%s1332_s7] sm:$0xff] }
 0x927   : > { %v2928_v7 = vpack.c.bf16 %v5907_v4, %v5907_v4 }
 0x929   : > { %4076 = vmatmul.msk.bf16.vlgmr.msra.gmra.mxu3 %vm2261_vm5, %v2928_v7 }
 0x92c   : > { %v2900_v28 = vpop.xlane.xlu0 %2899 }
 0x92f   : > { %v5912_v9 = vpop.f32.mrf.mxu1 }
 0x934   : > { %v2897_v11 = vpop.xlane.xlu1 %2896 }
 0x935   : > { %4535 = vrcp.f32 %v2897_v11 }
 0x937   : > { %v2970_v12 = vpop.f32.mrf.mxu1 }
 0x93b   : > { %v4536_v3 = vpop.eup %4535 }
 0x93c   : > { %v5914_v13 = vmul.f32 %v4536_v3, %v4526_v35  ;;  %v2903_v63 = vpop.xlane.xlu1 %2902  ;;  %v2909_v35 = vpop.xlane.xlu2 %2908 }
 0x93d   : > { %4537 = vrcp.f32 %v2903_v63  ;;  %v5916_v8 = vpop.f32.mrf.mxu2 }
 0x93e   : > { %v2929_v33 = vpack.c.bf16 %v5914_v13, %v5914_v13 }
 0x940   : > { %4077 = vmatmul.msk.bf16.vlgmr.msrb.gmra.mxu0 %vm2261_vm5, %v2929_v33 }
 0x943   : > { %v4538_v14 = vpop.eup %4537 }
 0x944   : > { %v5921_v15 = vmul.f32 %v4538_v14, %v4528_v24  ;;  %v2906_v16 = vpop.xlane.xlu1 %2905 }
 0x945   : > { %4539 = vrcp.f32 %v2906_v16  ;;  %v2992_v6 = vpop.f32.mrf.mxu2 }
 0x946   : > { %v2931_v21 = vpack.c.bf16 %v5921_v15, %v5921_v15  ;;  %4541 = vrcp.f32 %v2900_v28 }
 0x947   : > { %4543 = vrcp.f32 %v2909_v35 }
 0x948   : > { %4079 = vmatmul.msk.bf16.vlgmr.msra.gmra.mxu2 %vm2261_vm5, %v2931_v21 }
 0x94b   : > { %v4540_v23 = vpop.eup %4539 }
 0x94c   : > { %v5926_v25 = vmul.f32 %v4540_v23, %v4532_v49  ;;  %v4542_v37 = vpop.eup %4541 }
 0x94d   : > { %v5932_v39 = vmul.f32 %v4542_v37, %v5887_v19  ;;  %v4544_v44 = vpop.eup %4543 }
 0x94e   : > { %v2932_v27 = vpack.c.bf16 %v5926_v25, %v5926_v25  ;;  %v5938_v49 = vmul.f32 %v4544_v44, %v5896_v26 }
 0x94f   : > { %v2930_v43 = vpack.c.bf16 %v5932_v39, %v5932_v39 }
 0x950   : > { %4080 = vmatmul.msk.bf16.vlgmr.msrb.gmra.mxu3 %vm2261_vm5, %v2932_v27  ;;  %v2933_v50 = vpack.c.bf16 %v5938_v49, %v5938_v49 }
 0x95c   : > { %v4432_v30 = vpop.permute.xlu1 %4431 }
 0x95d   : > { %v4434_v31 = vunpack.i.h.bf16 %v4432_v30  ;;  %v4433_v32 = vunpack.i.l.bf16 %v4432_v30 }
 0x95f   : > { %v2943_v34 = vpack.c.bf16 %v4434_v31, %v4434_v31  ;;  %v2942_v29 = vpack.c.bf16 %v4433_v32, %v4433_v32 }
 0x961   : > { %v3041_v36 = vunpack.c.l.b16 %v2943_v34  ;;  %v3040_v38 = vunpack.c.l.b16 %v2942_v29 }
 0x963   : > { %v3042_v24 = vpack.c.b16 %v3041_v36, %v3040_v38 }
 0x964   : > { %v4437_v40 = vpop.permute.xlu1 %4436 }
 0x965   : > { %v4439_v41 = vunpack.i.h.bf16 %v4437_v40  ;;  %v4438_v42 = vunpack.i.l.bf16 %v4437_v40  ;;  %3054 = vmatpush.bf16.msra.mxu1 %v3042_v24 }
 0x967   : > { %v2949_v45 = vpack.c.bf16 %v4439_v41, %v4439_v41  ;;  %v2948_v46 = vpack.c.bf16 %v4438_v42, %v4438_v42 }
 0x968   : > { %4078 = vmatmul.msk.bf16.vlgmr.msra.gmra.mxu1 %vm2261_vm5, %v2930_v43 }
 0x969   : > { %v3107_v47 = vunpack.c.l.b16 %v2949_v45  ;;  %v3106_v48 = vunpack.c.l.b16 %v2948_v46  ;;  %3187 = vmatpush.bf16.msrb.mxu1 %v4152_v1  ;;  %v4469_v1 = vld [vmem:[%s1580_s28] ss:$0 sm:$0xff] }
 0x96b   : > { %v3108_v19 = vpack.c.b16 %v3107_v47, %v3106_v48 }
 0x96d   : > { %3120 = vmatpush.bf16.msra.mxu0 %v3108_v19  ;;  %3188 = vmatpush.bf16.msrb.mxu1 %v4151_v2 }
 0x970   : > { %4081 = vmatmul.msk.bf16.vlgmr.msra.gmra.mxu0 %vm2261_vm5, %v2933_v50 }
 0x9ac   : > { %v3012_v51 = vpop.f32.mrf.mxu3 }
 0x9b4   : > { %v3014_v52 = vpop.f32.mrf.mxu3 }
 0x9bd   : > { %v3034_v53 = vpop.f32.mrf.mxu0 }
 0x9be   : > { %v4440_v54 = vpack.i.bf16 %v3034_v53, %v3012_v51 }
 0x9c0   : > { %4441 = vrot.lane.b32.xlu1 %v4440_v54, %s5100_s8 }
 0x9c5   : > { %v3036_v55 = vpop.f32.mrf.mxu0 }
 0x9cb   : > { %v3078_v56 = vpop.f32.mrf.mxu2 }
 0x9d3   : > { %v3080_v57 = vpop.f32.mrf.mxu2  ;;  %v3100_v26 = vpop.f32.mrf.mxu3 }
 0x9db   : > { %v3102_v59 = vpop.f32.mrf.mxu3 }
 0x9e5   : > { %v3056_v18 = vpop.f32.mrf.mxu1 }
 0x9e6   : > { %v4445_v60 = vpack.i.bf16 %v3078_v56, %v3056_v18 }
 0x9e8   : > { %4446 = vrot.lane.b32.xlu0 %v4445_v60, %s5101_s9 }
 0x9ed   : > { %v3058_v62 = vpop.f32.mrf.mxu1  ;;  %v3122_v5 = vpop.f32.mrf.mxu0 }
 0x9ee   : > { %v4450_v22 = vpack.i.bf16 %v3122_v5, %v3100_v26 }
 0x9f0   : > { %4451 = vrot.lane.b32.xlu2 %v4450_v22, %s5102_s13 }
 0x9f5   : > { %v3124_v0 = vpop.f32.mrf.mxu0 }
 0xa32   : > { %v4442_v7 = vpop.permute.xlu1 %4441 }
 0xa33   : > { %v4444_v11 = vunpack.i.h.bf16 %v4442_v7  ;;  %v4443_v12 = vunpack.i.l.bf16 %v4442_v7 }
 0xa35   : > { %v3151_v16 = vsel %vm1825_vm2, %v5916_v8, %v4444_v11  ;;  %v3150_v6 = vsel %vm1825_vm2, %v5912_v9, %v4443_v12  ;;  %v4468_v8 = vld [vmem:[%s1577_s6] ss:$0 sm:$0xff] }
 0xa36   : > { %v4470_v12 = vld [vmem:[%s1341_s30] ss:$0 sm:$0xff] }
 0xa4a   : > { %v4452_v3 = vpop.permute.xlu2 %4451 }
 0xa4b   : > { %v4454_v21 = vunpack.i.h.bf16 %v4452_v3  ;;  %v4453_v23 = vunpack.i.l.bf16 %v4452_v3 }
 0xa5a   : > { %v4447_v63 = vpop.permute.xlu0 %4446 }
 0xa5b   : > { %v4449_v33 = vunpack.i.h.bf16 %v4447_v63  ;;  %v4448_v14 = vunpack.i.l.bf16 %v4447_v63 }
 0xa5d   : > { %v3152_v27 = vsel %vm2261_vm5, %v3150_v6, %v4448_v14  ;;  %v3153_v28 = vsel %vm2261_vm5, %v3151_v16, %v4449_v33 }
 0xa5e   : > { %v3154_v30 = vsel %vm2264_vm6, %v3152_v27, %v4453_v23  ;;  %v3155_v31 = vsel %vm2264_vm6, %v3153_v28, %v4454_v21 }
 0xa5f   : > { %v3156_v32 = vpack.c.bf16 %v3154_v30, %v3154_v30  ;;  %v3157_v35 = vpack.c.bf16 %v3155_v31, %v3155_v31 }
 0xa61   : > { %v3163_v37 = vunpack.c.l.b16 %v3156_v32  ;;  %v3164_v34 = vunpack.c.l.b16 %v3157_v35 }
 0xa63   : > { %v3165_v29 = vpack.c.b16 %v3164_v34, %v3163_v37 }
 0xa65   : > { %4090 = vmatmul.msk.bf16.vlgmr.msrb.gmra.mxu1 %vm1671_vm1, %v3165_v29 }
 0xae2   : > { %v3190_v9 = vpop.f32.mrf.mxu1 }
 0xae3   : > { %v3191_v36 = vadd.f32 %v4468_v8, %v3190_v9 }
 0xae5   : > { %v3195_v38 = vadd.f32 %v3191_v36, %v5778_v58 }
 0xae7   : > { %v3199_v24 = vsel %vm1671_vm1, %v3195_v38, 0.0 }
 0xae8   : > { %3200 = vadd.xlane.f32.xlu1 %v3199_v24 }
 0xaea   : > { %v3192_v40 = vpop.f32.mrf.mxu1 }
 0xaeb   : > { %v3193_v41 = vadd.f32 %v4468_v8, %v3192_v40 }
 0xaed   : > { %v3196_v42 = vadd.f32 %v3193_v41, %v5780_v61  ;;  %v4154_v41 = vld [vmem:[%s1360_s2 + $0x8] sm:$0xff] }
 0xaee   : > { %3345 = vmatpush.bf16.msrb.mxu2 %v4154_v41 }
 0xaef   : > { %v3202_v43 = vsel %vm1671_vm1, %v3196_v42, 0.0 }
 0xaf0   : > { %3203 = vadd.xlane.f32.xlu0 %v3202_v43  ;;  %v4153_v43 = vld [vmem:[%s1360_s2] sm:$0xff] }
 0xaf2   : > { %3346 = vmatpush.bf16.msrb.mxu2 %v4153_v43 }
 0xb5b   : > { %v3201_v44 = vpop.xlane.xlu1 %3200 }
 0xb5c   : > { %v3205_v45 = vmul.f32 %v3201_v44, %v5757_v20 }
 0xb5e   : > { %v3207_v46 = vsub.f32 %v3195_v38, %v3205_v45 }
 0xb60   : > { %v3209_v47 = vmul.f32 %v3207_v46, %v3207_v46 }
 0xb62   : > { %v3211_v48 = vsel %vm1671_vm1, %v3209_v47, 0.0 }
 0xb63   : > { %v3204_v19 = vpop.xlane.xlu0 %3203  ;;  %3212 = vadd.xlane.f32.xlu2 %v3211_v48 }
 0xb64   : > { %v3206_v58 = vmul.f32 %v3204_v19, %v5757_v20 }
 0xb66   : > { %v3208_v50 = vsub.f32 %v3196_v42, %v3206_v58 }
 0xb68   : > { %v3210_v51 = vmul.f32 %v3208_v50, %v3208_v50 }
 0xb6a   : > { %v3214_v52 = vsel %vm1671_vm1, %v3210_v51, 0.0 }
 0xb6b   : > { %3215 = vadd.xlane.f32.xlu1 %v3214_v52 }
 0xbd6   : > { %v3213_v61 = vpop.xlane.xlu2 %3212 }
 0xbd7   : > { %v3217_v53 = vmul.f32 %v3213_v61, %v5757_v20 }
 0xbd9   : > { %v3219_v54 = vadd.f32 1e-06, %v3217_v53 }
 0xbdb   : > { %4545 = vrsqrt.f32 %v3219_v54  ;;  %vm3227_vm15 = vweird.f32 %v3219_v54 }
 0xbde   : > { %v3216_v55 = vpop.xlane.xlu1 %3215 }
 0xbdf   : > { %v3218_v56 = vmul.f32 %v3216_v55, %v5757_v20 }
 0xbe1   : > { %v4546_v57 = vpop.eup %4545  ;;  %v3220_v26 = vadd.f32 1e-06, %v3218_v56 }
 0xbe2   : > { %v3222_v59 = vmul.f32 %v4546_v57, %v3219_v54  ;;  %vm3228_vm14 = vweird.f32 %v4546_v57 }
 0xbe3   : > { %4547 = vrsqrt.f32 %v3220_v26  ;;  %vm3229_vm0 = vmor %vm3227_vm15, %vm3228_vm14  ;;  %vm3237_vm3 = vweird.f32 %v3220_v26 }
 0xbe4   : > { %v3223_v18 = vmul.f32 %v4546_v57, %v3222_v59 }
 0xbe6   : > { %v3224_v60 = vmul.f32 0.5, %v3223_v18 }
 0xbe8   : > { %v3225_v62 = vsub.f32 1.5, %v3224_v60 }
 0xbe9   : > { %v4548_v5 = vpop.eup %4547 }
 0xbea   : > { %v3226_v22 = vmul.f32 %v4546_v57, %v3225_v62  ;;  %v3232_v0 = vmul.f32 %v4548_v5, %v3220_v26  ;;  %vm3238_vm2 = vweird.f32 %v4548_v5  ;;  %v4472_v26 = vld [vmem:[%s1350_s26] ss:$0 sm:$0xff] }
 0xbeb   : > { %vm3239_vm4 = vmor %vm3237_vm3, %vm3238_vm2 }
 0xbec   : > { %v3230_v2 = vsel %vm3229_vm0, %v4546_v57, %v3226_v22  ;;  %v3233_v7 = vmul.f32 %v4548_v5, %v3232_v0 }
 0xbed   : > { %v3241_v11 = vmul.f32 %v3230_v2, %v3207_v46 }
 0xbee   : > { %v3234_v3 = vmul.f32 0.5, %v3233_v7 }
 0xbef   : > { %v3246_v63 = vmul.f32 %v4469_v1, %v3241_v11 }
 0xbf0   : > { %v3235_v33 = vsub.f32 1.5, %v3234_v3  ;;  %v4158_v3 = vld [vmem:[%s5587_s11 + $0x18] sm:$0xff] }
 0xbf1   : > { %v5977_v14 = vadd.f32 %v4470_v12, %v3246_v63  ;;  %3406 = vmatpush.bf16.msra.mxu3 %v4158_v3  ;;  %v4157_v63 = vld [vmem:[%s5587_s11 + $0x10] sm:$0xff] }
 0xbf2   : > { %v3236_v16 = vmul.f32 %v4548_v5, %v3235_v33  ;;  %v4156_v33 = vld [vmem:[%s5587_s11 + $0x8] sm:$0xff] }
 0xbf3   : > { %v3255_v6 = vsel %vm1671_vm1, %v5977_v14, 0.0 }
 0xbf4   : > { %v3240_v21 = vsel %vm3239_vm4, %v4548_v5, %v3236_v16  ;;  %3256 = vadd.xlane.f32.xlu1 %v3255_v6  ;;  %v4155_v16 = vld [vmem:[%s5587_s11] sm:$0xff] }
 0xbf5   : > { %v3242_v23 = vmul.f32 %v3240_v21, %v3208_v50  ;;  %3407 = vmatpush.bf16.msra.mxu3 %v4157_v63  ;;  %v4473_v6 = vld [vmem:[%s1586_s23] ss:$0 sm:$0xff] }
 0xbf7   : > { %v3247_v27 = vmul.f32 %v4469_v1, %v3242_v23 }
 0xbf9   : > { %v5981_v28 = vadd.f32 %v4470_v12, %v3247_v27  ;;  %3408 = vmatpush.bf16.msra.mxu3 %v4156_v33 }
 0xbfb   : > { %v3258_v30 = vsel %vm1671_vm1, %v5981_v28, 0.0 }
 0xbfc   : > { %3259 = vadd.xlane.f32.xlu0 %v3258_v30 }
 0xbfd   : > { %3409 = vmatpush.bf16.msra.mxu3 %v4155_v16 }
 0xc67   : > { %v3257_v31 = vpop.xlane.xlu1 %3256 }
 0xc68   : > { %v3261_v32 = vmul.f32 %v3257_v31, %v5757_v20 }
 0xc6a   : > { %v3263_v35 = vsub.f32 %v5977_v14, %v3261_v32 }
 0xc6c   : > { %v3265_v37 = vmul.f32 %v3263_v35, %v3263_v35 }
 0xc6e   : > { %v3267_v34 = vsel %vm1671_vm1, %v3265_v37, 0.0 }
 0xc6f   : > { %v3260_v29 = vpop.xlane.xlu0 %3259  ;;  %3268 = vadd.xlane.f32.xlu1 %v3267_v34 }
 0xc70   : > { %v3262_v8 = vmul.f32 %v3260_v29, %v5757_v20 }
 0xc72   : > { %v3264_v9 = vsub.f32 %v5981_v28, %v3262_v8 }
 0xc74   : > { %v3266_v36 = vmul.f32 %v3264_v9, %v3264_v9 }
 0xc76   : > { %v3270_v38 = vsel %vm1671_vm1, %v3266_v36, 0.0 }
 0xc77   : > { %3271 = vadd.xlane.f32.xlu2 %v3270_v38 }
 0xce2   : > { %v3269_v24 = vpop.xlane.xlu1 %3268 }
 0xce3   : > { %v3273_v40 = vmul.f32 %v3269_v24, %v5757_v20 }
 0xce5   : > { %v3275_v42 = vadd.f32 1e-06, %v3273_v40 }
 0xce7   : > { %4549 = vrsqrt.f32 %v3275_v42  ;;  %vm3283_vm7 = vweird.f32 %v3275_v42 }
 0xcea   : > { %v3272_v44 = vpop.xlane.xlu2 %3271 }
 0xceb   : > { %v3274_v45 = vmul.f32 %v3272_v44, %v5757_v20  ;;  %v4471_v20 = vld [vmem:[%s1583_s14] ss:$0 sm:$0xff] }
 0xced   : > { %v4550_v46 = vpop.eup %4549  ;;  %v3276_v47 = vadd.f32 1e-06, %v3274_v45 }
 0xcee   : > { %v3278_v48 = vmul.f32 %v4550_v46, %v3275_v42  ;;  %vm3284_vm6 = vweird.f32 %v4550_v46 }
 0xcef   : > { %4551 = vrsqrt.f32 %v3276_v47  ;;  %vm3285_vm8 = vmor %vm3283_vm7, %vm3284_vm6  ;;  %vm3293_vm10 = vweird.f32 %v3276_v47 }
 0xcf0   : > { %v3279_v19 = vmul.f32 %v4550_v46, %v3278_v48 }
 0xcf2   : > { %v3280_v58 = vmul.f32 0.5, %v3279_v19 }
 0xcf4   : > { %v3281_v50 = vsub.f32 1.5, %v3280_v58 }
 0xcf5   : > { %v4552_v51 = vpop.eup %4551 }
 0xcf6   : > { %v3282_v52 = vmul.f32 %v4550_v46, %v3281_v50  ;;  %v3288_v61 = vmul.f32 %v4552_v51, %v3276_v47  ;;  %vm3294_vm9 = vweird.f32 %v4552_v51 }
 0xcf7   : > { %vm3295_vm11 = vmor %vm3293_vm10, %vm3294_vm9 }
 0xcf8   : > { %v3286_v53 = vsel %vm3285_vm8, %v4550_v46, %v3282_v52  ;;  %v3289_v54 = vmul.f32 %v4552_v51, %v3288_v61 }
 0xcf9   : > { %v3297_v55 = vmul.f32 %v3286_v53, %v3263_v35 }
 0xcfa   : > { %v3290_v56 = vmul.f32 0.5, %v3289_v54 }
 0xcfb   : > { %v3302_v59 = vmul.f32 %v4471_v20, %v3297_v55 }
 0xcfc   : > { %v3291_v57 = vsub.f32 1.5, %v3290_v56 }
 0xcfd   : > { %v3307_v62 = vadd.f32 %v4472_v26, %v3302_v59 }
 0xcfe   : > { %v3292_v18 = vmul.f32 %v4552_v51, %v3291_v57 }
 0xcff   : > { %v3314_v0 = vpack.c.bf16 %v3307_v62, %v3307_v62 }
 0xd00   : > { %v3296_v60 = vsel %vm3295_vm11, %v4552_v51, %v3292_v18 }
 0xd01   : > { %v3298_v5 = vmul.f32 %v3296_v60, %v3264_v9  ;;  %v3321_v7 = vunpack.c.l.b16 %v3314_v0  ;;  %v4474_v9 = vld [vmem:[%s1594_s15] ss:$0 sm:$0xff] }
 0xd03   : > { %v3303_v22 = vmul.f32 %v4471_v20, %v3298_v5 }
 0xd05   : > { %v3308_v1 = vadd.f32 %v4472_v26, %v3303_v22 }
 0xd07   : > { %v3315_v2 = vpack.c.bf16 %v3308_v1, %v3308_v1 }
 0xd09   : > { %v3322_v11 = vunpack.c.l.b16 %v3315_v2 }
 0xd0b   : > { %v3323_v12 = vpack.c.b16 %v3322_v11, %v3321_v7 }
 0xd0d   : > { %4099 = vmatmul.msk.bf16.vlgmr.msrb.gmra.mxu2 %vm1671_vm1, %v3323_v12 }
 0xd90   : > { %v3348_v21 = vpop.f32.mrf.mxu2 }
 0xd91   : > { %v3349_v23 = vadd.f32 %v4473_v6, %v3348_v21 }
 0xd93   : > { %v3353_v27 = vmax.f32 %v3349_v23, 0.0 }
 0xd95   : > { %v3364_v32 = vpack.c.bf16 %v3353_v27, %v3353_v27 }
 0xd97   : > { %v3371_v34 = vunpack.c.l.b16 %v3364_v32 }
 0xd98   : > { %v3350_v30 = vpop.f32.mrf.mxu2 }
 0xd99   : > { %v3351_v31 = vadd.f32 %v4473_v6, %v3350_v30 }
 0xd9b   : > { %v3354_v35 = vmax.f32 %v3351_v31, 0.0 }
 0xd9d   : > { %v3365_v37 = vpack.c.bf16 %v3354_v35, %v3354_v35 }
 0xd9f   : > { %v3372_v29 = vunpack.c.l.b16 %v3365_v37 }
 0xda1   : > { %v3373_v8 = vpack.c.b16 %v3372_v29, %v3371_v34 }
 0xda3   : > { %4116 = vmatmul.msk.bf16.vlgmr.msra.gmra.mxu3 %vm3398_vm12, %v3373_v8 }
 0xe26   : > { %v3411_v36 = vpop.f32.mrf.mxu3 }
 0xe27   : > { %v3412_v38 = vadd.f32 %v4474_v9, %v3411_v36 }
 0xe29   : > { %v3416_v24 = vadd.f32 %v3412_v38, %v5977_v14 }
 0xe2b   : > { %3418 = vst.msk [vmem:[#allocation2] sm:$0xff] %vm1671_vm1, %v3416_v24 }
 0xe2c   : > { %3420 = vst.msk [vmem:[%s5598_s21] sm:$0xff] %vm1671_vm1, %v3416_v24 }
 0xe2e   : > { %v3413_v40 = vpop.f32.mrf.mxu3 }
 0xe2f   : > { %v3414_v41 = vadd.f32 %v4474_v9, %v3413_v40 }
 0xe30   : > { %3425 = sbr.rel (%p4117_p11) target bundleno = 3645 (0xe3d), region = 200 }
 0xe31   : > { %v3417_v42 = vadd.f32 %v3414_v41, %v5981_v28 }
 0xe33   : > { %3419 = vst.msk [vmem:[#allocation2 + $0x8] sm:$0xff] %vm1671_vm1, %v3417_v42 }
 0xe34   : > { %3421 = vst.msk [vmem:[%s5598_s21 + $0x8] sm:$0xff] %vm1671_vm1, %v3417_v42 }
 0xe35   : > { %3426 = vst.msk [vmem:[#allocation21] sm:$0xff] %vm2261_vm5, %v5880_v10 }
 0xe36   : > { %3427 = vst.msk [vmem:[#allocation21 + $0x8] sm:$0xff] %vm2261_vm5, %v5885_v17 }
 0xe37   : > { %3428 = vst.msk [vmem:[#allocation21 + $0x10] sm:$0xff] %vm2261_vm5, %v5907_v4 }
 0xe38   : > { %3429 = vst.msk [vmem:[#allocation21 + $0x18] sm:$0xff] %vm2261_vm5, %v5914_v13 }
 0xe39   : > { %3430 = vst.msk [vmem:[#allocation21 + $0x20] sm:$0xff] %vm2261_vm5, %v5932_v39 }
 0xe3a   : > { %3431 = vst.msk [vmem:[#allocation21 + $0x28] sm:$0xff] %vm2261_vm5, %v5921_v15 }
 0xe3b   : > { %3432 = vst.msk [vmem:[#allocation21 + $0x30] sm:$0xff] %vm2261_vm5, %v5926_v25 }
 0xe3c   : > { %3433 = vst.msk [vmem:[#allocation21 + $0x38] sm:$0xff] %vm2261_vm5, %v5938_v49 }
 0xe3d PF: > { %s6229_s19 = sld [smem:[#allocation65_spill]]  ;;  %s3447_s7 = sshll.u32 %s5598_s21, 4  ;;  %s3448_s7 = int_to_ptr.vmem [resolvable:$true] %s3447_s7 }
 0xe3e   : > { %s6230_s2 = sld [smem:[#allocation59_spill]]  ;;  %s3435_s0 = scalar_lea.sflag [#allocation5], %s5535_s18 }
 0xe3f   : > { %s6231_s23 = sld [smem:[#allocation69_spill]] }
 0xe43   : > { %s4159_s15 = sshll.u32 %s6229_s19, 4 }
 0xe44   : > { %s3446_s11 = scalar_lea.hbm %s6230_s2, %s4159_s15  ;;  %s4963_s9 = scalar_lea.hbm %s6230_s2, 32 }
 0xe45   : > { %s3449_s26 = sshll.u32 %s3446_s11, 4  ;;  %p6232_p1 = scmp.ne.s32.totalorder %s6231_s23, 0  ;;  %s3450_s26 = int_to_ptr.hbm [resolvable:$true] %s3449_s26 }
 0xe46   : > { %s4957_s5 = sshra.s32 %s3450_s26, 4  ;;  %s4958_s5 = int_to_ptr.hbm [resolvable:$true] %s4957_s5 }
 0xe47   : > { %s4959_s25 = scalar_lea.hbm %s4958_s5, 16  ;;  %p4964_p0 = scmp.lt.s32.totalorder %s4958_s5, %s6230_s2 }
 0xe48   : > { %p4960_p12 = scmp.ne.s32.totalorder %s4958_s5, %s4959_s25  ;;  %p4965_p5 = scmp.lt.s32.totalorder %s4963_s9, %s4959_s25 }
 0xe4a   : > { %p4961_p8 = pnand %p4960_p12, %p6232_p1  ;;  %p4966_p2 = por %p4965_p5, %p4964_p0 }
 0xe4c   : > { %p4962_p9 = pneg %p4961_p8 }
 0xe4e   : > { %p4967_p10 = pnand %p4966_p2, %p4962_p9 }
 0xe50   : > { %4970 = shalt.err (!%p4967_p10)
}
 0xe51   : > { %s5104_s13 = smov 128   ;;  %s6233_s21 = sld [smem:[#allocation60_spill]] }
 0xe52   : > { %4194 = dma.vmem_to_hbm [thread:$0]  (%p6232_p1), %s3448_s7, 256, %s3450_s26, %s3435_s0, %s5104_s13, %s5104_s13, %s5100_s8  }
 0xe53   : > { %s5105_s17 = smov [#allocation21]   ;;  %p6234_p7 = scmp.eq.s32.totalorder %s6229_s19, 1 }
 0xe54   : > { %s3461_s12 = sshll.u32 %s5105_s17, 4  ;;  %s3462_s12 = int_to_ptr.vmem [resolvable:$true] %s3461_s12 }
 0xe57   : > { %s3463_s18 = sshll.u32 %s6233_s21, 4  ;;  %s4991_s1 = scalar_lea.hbm %s6233_s21, 64  ;;  %s3464_s18 = int_to_ptr.hbm [resolvable:$true] %s3463_s18 }
 0xe58   : > { %s4985_s22 = sshra.s32 %s3464_s18, 4  ;;  %s4986_s22 = int_to_ptr.hbm [resolvable:$true] %s4985_s22 }
 0xe59   : > { %s4987_s20 = scalar_lea.hbm %s4986_s22, 64  ;;  %p4992_p11 = scmp.lt.s32.totalorder %s4986_s22, %s6233_s21 }
 0xe5a   : > { %p4988_p4 = scmp.ne.s32.totalorder %s4986_s22, %s4987_s20  ;;  %p4993_p12 = scmp.lt.s32.totalorder %s4991_s1, %s4987_s20 }
 0xe5c   : > { %p4989_p13 = pnand %p4988_p4, %p6234_p7  ;;  %p4994_p8 = por %p4993_p12, %p4992_p11 }
 0xe5e   : > { %p4990_p6 = pneg %p4989_p13 }
 0xe60   : > { %p4995_p9 = pnand %p4994_p8, %p4990_p6 }
 0xe62   : > { %4998 = shalt.err (!%p4995_p9)
}
 0xe63   : > { %p6235_p1 = pmov %p6234_p7 }
 0xe65   : > { %4196 = dma.vmem_to_hbm [thread:$0]  (%p6235_p1), %s3462_s12, 1024, %s3464_s18, [#allocation22], %s5104_s13, %s5104_s13, %s5100_s8  }
 0xe66   : > { %p6236_p0 = pmov %p6235_p1 }
 0xe68   : > { %5032 = dma.done.wait (%p6236_p0), [#allocation22], 1024   ;;  %p6237_p5 = pmov %p6236_p0 }
 0xe6a   : > { %5034 = vsyncadd (%p6237_p5), [#allocation22], 4294966272 }
 0xe6b PF: > { %s6238_s24 = sld [smem:[#allocation61_spill]] }
 0xe6c   : > { %s6239_s10 = sld [smem:[#allocation70_spill]] }
 0xe71   : > { %s3483_s4 = sand.u32 1, %s6238_s24  }
 0xe72   : > { %p6241_p2 = scmp.ne.s32.totalorder %s6239_s10, 0  ;;  %s3484_s27 = scalar_lea.sflag [#allocation5], %s3483_s4 }
 0xe74   : > { %p4242_p10 = pnand %p3937_p3, %p6241_p2 }
 0xe76   : > { %p4243_p4 = pneg %p4242_p10 }
 0xe78   : > { %5036 = dma.done.wait (%p4243_p4), %s3484_s27, 256  }
 0xe79   : > { %5038 = vsyncadd (%p4243_p4), %s3484_s27, 4294967040  ;;  %s6242_s28 = sld [smem:[#allocation66_spill]] }
 0xe7a   : > { %s6243_s22 = sld [smem:[#allocation62_spill]] }
 0xe7b   : > { %s6244_s23 = sld [smem:[#allocation63_spill]] }
 0xe7c   : > { %s6245_s26 = sld [smem:[#allocation67_spill]] }
 0xe7f   : > { %p78_p7 = scmp.ge.s32.totalorder %s6242_s28, 4  }
 0xe81   :  { %80 = sbr.rel (!%p78_p7) target bundleno = 76 (0x4c), region = 386 }
 0xe86   :  { %3490 = vsyncpa [#allocation4], 1 }
 0xe87   :  { %3492 = vsyncpa [#allocation4 + $0x1], 1 }
 0xe88   :  { %3493 = vsyncpa [#allocation7], 1 }
 0xe89   :  { %3494 = vsyncpa [#allocation10], 1 }
 0xe8a   :  { %3495 = vsyncpa [#allocation5], 1 }
 0xe8b   :  { %3497 = vsyncpa [#allocation5 + $0x1], 1 }
 0xe8c   :  { %3498 = vsyncpa [#allocation22], 1 }

</bundles_post_ra>
